<compile_context>
chip_gen: v5e
topology: v5e:2x2
jax: 0.10.0
libtpu: 0.0.40
codegen_flags: <defaults>
</compile_context>

<pallas_src>
import jax
import jax.numpy as jnp
from jax.experimental import pallas as pl
from jax.experimental.pallas import tpu as pltpu

FEAT_CH = 16          # each backbone emits 16 channels -> concat = 32 = Conv3d in_channels
NUM_OUTPUTS = 4       # config.number_of_outputs (synthetic)


def _fusion_kernel(a_ref, b_ref, w1_ref, w2_ref, bias_ref, o_ref):
    """a_ref: (C, TD, H, W) oct features (VMEM)
       b_ref: (C, TD, 1, W) 2D-branch features (VMEM, broadcast over H here)
       w1_ref, w2_ref: (Cout, C) folded-concat conv weights (SMEM)
       bias_ref: (Cout,) (SMEM)
       o_ref: (Cout, TD, H, W)"""
    C = a_ref.shape[0]
    Cout = o_ref.shape[0]
    for co in range(Cout):
        # oct contribution: VPU scalar-broadcast FMAs over the full (TD,H,W) slab.
        acc = w1_ref[co, 0] * a_ref[0].astype(jnp.float32)
        for c in range(1, C):
            acc = acc + w1_ref[co, c] * a_ref[c].astype(jnp.float32)
        # 2D-branch contribution: accumulated at (TD,1,W), broadcast over H once.
        bacc = w2_ref[co, 0] * b_ref[0].astype(jnp.float32)
        for c in range(1, C):
            bacc = bacc + w2_ref[co, c] * b_ref[c].astype(jnp.float32)
        z = acc + bacc + bias_ref[co]                  # (TD,1,W) broadcasts over H
        # sigmoid(x) == 0.5 * tanh(0.5 * x) + 0.5  (tanh -> EUP slot, no VALU divide)
        o_ref[co] = (0.5 * jnp.tanh(0.5 * z) + 0.5).astype(o_ref.dtype)


def fuse_features_sigmoid(oct_seg, fused_feat, weight, bias, *, tile_d=None):
    """oct_seg: (N, C, D, H, W); fused_feat: (N, C, D, W) (H-broadcast happens in-kernel).
    weight: (Cout, 2*C, 1, 1, 1) PyTorch Conv3d layout; bias: (Cout,).
    Returns sigmoid(Conv3d_1x1x1(cat([oct_seg, broadcast_H(fused_feat)], dim=1)))
    as (N, Cout, D, H, W)."""
    N, C, D, H, W = oct_seg.shape
    Cout = weight.shape[0]

    wmat = weight.reshape(Cout, 2 * C).astype(jnp.float32)
    w1 = wmat[:, :C]      # oct half of the folded concat
    w2 = wmat[:, C:]      # fused half
    bias = bias.astype(jnp.float32)

    # Free reshape: explicit singleton H axis so the kernel block is (C, tile_d, 1, W).
    b5 = fused_feat.reshape(N, C, D, 1, W)

    if tile_d is None:
        # ~<=2 MiB oct block per grid step; with double buffering plus the output
        # block this stays far below even v7x's 64 MiB VMEM.
        bytes_per_d = C * H * W * jnp.dtype(oct_seg.dtype).itemsize
        tile_d = max(1, min(D, (2 * 1024 * 1024) // max(1, bytes_per_d)))

    grid = (N, pl.cdiv(D, tile_d))

    return pl.pallas_call(
        _fusion_kernel,
        out_shape=jax.ShapeDtypeStruct((N, Cout, D, H, W), oct_seg.dtype),
        grid_spec=pltpu.PrefetchScalarGridSpec(
            num_scalar_prefetch=0,
            grid=grid,
            in_specs=[
                # oct features: (C, tile_d, H, W) per step, lane-dense on W.
                pl.BlockSpec((None, C, tile_d, H, W), lambda n, db: (n, 0, db, 0, 0)),
                # 2D-branch features: (C, tile_d, 1, W); broadcast over H inside kernel.
                pl.BlockSpec((None, C, tile_d, 1, W), lambda n, db: (n, 0, db, 0, 0)),
                # Tiny channel-mix weights / bias live in SMEM (cheap scalar reads).
                pl.BlockSpec(memory_space=pltpu.MemorySpace.SMEM),
                pl.BlockSpec(memory_space=pltpu.MemorySpace.SMEM),
                pl.BlockSpec(memory_space=pltpu.MemorySpace.SMEM),
            ],
            out_specs=pl.BlockSpec((None, Cout, tile_d, H, W),
                                   lambda n, db: (n, 0, db, 0, 0)),
        ),
        compiler_params=pltpu.CompilerParams(
            dimension_semantics=("parallel", "parallel")),
    )(oct_seg, b5, w1, w2, bias)


def fpn_late_fusion_forward(x, params):
    """Mirrors FPNLateFusion.forward with emulated backbones (interpolate=None)."""
    # oct = x['image'].permute(0, 1, 2, 4, 3)
    oct = jnp.transpose(x['image'], (0, 1, 2, 4, 3))
    # TODO(synk): ModifiedUnet3D not provided; emulate with a 1x1x1 channel projection.
    oct_feat = jnp.einsum('ncdhw,cf->nfdhw', oct, params['backbone3d_w'])
    # oct_seg = oct_seg.permute(0, 1, 2, 4, 3)
    oct_seg = jnp.transpose(oct_feat, (0, 1, 2, 4, 3))

    # fused = x[fusion_modality][:, :, :, 0, :]
    fused = x['fusion'][:, :, :, 0, :]                       # (N, C, D, W)
    # TODO(synk): ModifiedUnet2DLevel5 not provided; emulate with a channel projection.
    fused_feat = jnp.einsum('ncdw,cf->nfdw', fused, params['backbone2d_w'])

    # fuse_features (1x1x1 conv on folded concat) + sigmoid -> Pallas kernel.
    # The H-broadcast of fused_feat is done inside the kernel (no HBM blow-up).
    seg = fuse_features_sigmoid(oct_seg, fused_feat,
                                params['fusion_w'], params['fusion_b'])
    return {'prediction': seg}


if __name__ == "__main__":
    key = jax.random.PRNGKey(0)
    k_img, k_fus, k_b3, k_b2, k_w, k_bias = jax.random.split(key, 6)

    # Small shapes; W = 128 so the kernel's lane axis is fully dense.
    N, Cin, D, H, W = 2, 1, 4, 8, 128
    x = {
        'image': jax.random.normal(k_img, (N, Cin, D, H, W), dtype=jnp.float32),
        'fusion': jax.random.normal(k_fus, (N, Cin, D, H, W), dtype=jnp.float32),
    }
    params = {
        'backbone3d_w': jax.random.normal(k_b3, (Cin, FEAT_CH), dtype=jnp.float32) * 0.1,
        'backbone2d_w': jax.random.normal(k_b2, (Cin, FEAT_CH), dtype=jnp.float32) * 0.1,
        # nn.Conv3d(32, number_of_outputs, (1,1,1)) weight/bias
        'fusion_w': jax.random.normal(k_w, (NUM_OUTPUTS, 2 * FEAT_CH, 1, 1, 1),
                                      dtype=jnp.float32) * 0.1,
        'fusion_b': jax.random.normal(k_bias, (NUM_OUTPUTS,), dtype=jnp.float32) * 0.1,
    }

    out = fpn_late_fusion_forward(x, params)
    pred = jax.block_until_ready(out['prediction'])
    assert pred.shape == (N, NUM_OUTPUTS, D, H, W)

    # Pure-JAX reference for the kernelized part (concat -> 1x1x1 conv -> sigmoid)
    oct = jnp.transpose(x['image'], (0, 1, 2, 4, 3))
    oct_seg = jnp.transpose(jnp.einsum('ncdhw,cf->nfdhw', oct, params['backbone3d_w']),
                            (0, 1, 2, 4, 3))
    fused = x['fusion'][:, :, :, 0, :]
    fused_seg = jnp.broadcast_to(
        jnp.einsum('ncdw,cf->nfdw', fused, params['backbone2d_w'])[:, :, :, None, :],
        oct_seg.shape)
    cat = jnp.concatenate([oct_seg, fused_seg], axis=1)
    wmat = params['fusion_w'].reshape(NUM_OUTPUTS, 2 * FEAT_CH)
    ref = jax.nn.sigmoid(
        jnp.einsum('ncdhw,oc->nodhw', cat, wmat)
        + params['fusion_b'][None, :, None, None, None])
    assert jnp.allclose(pred, ref, atol=1e-5, rtol=1e-5)

    print("KERNEL_OK")
</pallas_src>

<mosaic_0001>
module attributes {stable_mosaic.version = 11 : i64} {
  func.func @_fusion_kernel(%arg0: i32, %arg1: i32, %arg2: memref<1x16x4x8x128xf32, #tpu.memory_space<vmem>>, %arg3: memref<1x16x4x1x128xf32, #tpu.memory_space<vmem>>, %arg4: memref<4x16xf32, #tpu.memory_space<smem>>, %arg5: memref<4x16xf32, #tpu.memory_space<smem>>, %arg6: memref<4xf32, #tpu.memory_space<smem>>, %arg7: memref<1x4x4x8x128xf32, #tpu.memory_space<vmem>>) attributes {dimension_semantics = [#tpu.dimension_semantics<parallel>, #tpu.dimension_semantics<parallel>], iteration_bounds = array<i64: 2, 1>, scalar_prefetch = 0 : i64, scratch_operands = 0 : i64, tpu.core_type = #tpu.core_type<tc>, window_params = [{transform_indices = @transform_0, window_bounds = array<i64: 1, 16, 4, 8, 128>}, {transform_indices = @transform_1, window_bounds = array<i64: 1, 16, 4, 1, 128>}, {transform_indices = @transform_2, window_bounds = array<i64: 4, 16>}, {transform_indices = @transform_3, window_bounds = array<i64: 4, 16>}, {transform_indices = @transform_4, window_bounds = array<i64: 4>}, {transform_indices = @transform_5, window_bounds = array<i64: 1, 4, 4, 8, 128>}]} {
    %c0 = arith.constant 0 : index
    %c0_0 = arith.constant 0 : index
    %0 = memref.load %arg4[%c0, %c0_0] : memref<4x16xf32, #tpu.memory_space<smem>>
    %c0_1 = arith.constant 0 : index
    %c0_2 = arith.constant 0 : index
    %c0_3 = arith.constant 0 : index
    %c0_4 = arith.constant 0 : index
    %c0_5 = arith.constant 0 : index
    %1 = vector.load %arg2[%c0_1, %c0_2, %c0_3, %c0_4, %c0_5] : memref<1x16x4x8x128xf32, #tpu.memory_space<vmem>>, vector<1x1x4x8x128xf32>
    %2 = vector.shape_cast %1 : vector<1x1x4x8x128xf32> to vector<4x8x128xf32>
    %3 = vector.broadcast %0 : f32 to vector<4x8x128xf32>
    %4 = arith.mulf %3, %2 : vector<4x8x128xf32>
    %c0_6 = arith.constant 0 : index
    %c1 = arith.constant 1 : index
    %5 = memref.load %arg4[%c0_6, %c1] : memref<4x16xf32, #tpu.memory_space<smem>>
    %c0_7 = arith.constant 0 : index
    %c1_8 = arith.constant 1 : index
    %c0_9 = arith.constant 0 : index
    %c0_10 = arith.constant 0 : index
    %c0_11 = arith.constant 0 : index
    %6 = vector.load %arg2[%c0_7, %c1_8, %c0_9, %c0_10, %c0_11] : memref<1x16x4x8x128xf32, #tpu.memory_space<vmem>>, vector<1x1x4x8x128xf32>
    %7 = vector.shape_cast %6 : vector<1x1x4x8x128xf32> to vector<4x8x128xf32>
    %8 = vector.broadcast %5 : f32 to vector<4x8x128xf32>
    %9 = arith.mulf %8, %7 : vector<4x8x128xf32>
    %10 = arith.addf %4, %9 : vector<4x8x128xf32>
    %c0_12 = arith.constant 0 : index
    %c2 = arith.constant 2 : index
    %11 = memref.load %arg4[%c0_12, %c2] : memref<4x16xf32, #tpu.memory_space<smem>>
    %c0_13 = arith.constant 0 : index
    %c2_14 = arith.constant 2 : index
    %c0_15 = arith.constant 0 : index
    %c0_16 = arith.constant 0 : index
    %c0_17 = arith.constant 0 : index
    %12 = vector.load %arg2[%c0_13, %c2_14, %c0_15, %c0_16, %c0_17] : memref<1x16x4x8x128xf32, #tpu.memory_space<vmem>>, vector<1x1x4x8x128xf32>
    %13 = vector.shape_cast %12 : vector<1x1x4x8x128xf32> to vector<4x8x128xf32>
    %14 = vector.broadcast %11 : f32 to vector<4x8x128xf32>
    %15 = arith.mulf %14, %13 : vector<4x8x128xf32>
    %16 = arith.addf %10, %15 : vector<4x8x128xf32>
    %c0_18 = arith.constant 0 : index
    %c3 = arith.constant 3 : index
    %17 = memref.load %arg4[%c0_18, %c3] : memref<4x16xf32, #tpu.memory_space<smem>>
    %c0_19 = arith.constant 0 : index
    %c3_20 = arith.constant 3 : index
    %c0_21 = arith.constant 0 : index
    %c0_22 = arith.constant 0 : index
    %c0_23 = arith.constant 0 : index
    %18 = vector.load %arg2[%c0_19, %c3_20, %c0_21, %c0_22, %c0_23] : memref<1x16x4x8x128xf32, #tpu.memory_space<vmem>>, vector<1x1x4x8x128xf32>
    %19 = vector.shape_cast %18 : vector<1x1x4x8x128xf32> to vector<4x8x128xf32>
    %20 = vector.broadcast %17 : f32 to vector<4x8x128xf32>
    %21 = arith.mulf %20, %19 : vector<4x8x128xf32>
    %22 = arith.addf %16, %21 : vector<4x8x128xf32>
    %c0_24 = arith.constant 0 : index
    %c4 = arith.constant 4 : index
    %23 = memref.load %arg4[%c0_24, %c4] : memref<4x16xf32, #tpu.memory_space<smem>>
    %c0_25 = arith.constant 0 : index
    %c4_26 = arith.constant 4 : index
    %c0_27 = arith.constant 0 : index
    %c0_28 = arith.constant 0 : index
    %c0_29 = arith.constant 0 : index
    %24 = vector.load %arg2[%c0_25, %c4_26, %c0_27, %c0_28, %c0_29] : memref<1x16x4x8x128xf32, #tpu.memory_space<vmem>>, vector<1x1x4x8x128xf32>
    %25 = vector.shape_cast %24 : vector<1x1x4x8x128xf32> to vector<4x8x128xf32>
    %26 = vector.broadcast %23 : f32 to vector<4x8x128xf32>
    %27 = arith.mulf %26, %25 : vector<4x8x128xf32>
    %28 = arith.addf %22, %27 : vector<4x8x128xf32>
    %c0_30 = arith.constant 0 : index
    %c5 = arith.constant 5 : index
    %29 = memref.load %arg4[%c0_30, %c5] : memref<4x16xf32, #tpu.memory_space<smem>>
    %c0_31 = arith.constant 0 : index
    %c5_32 = arith.constant 5 : index
    %c0_33 = arith.constant 0 : index
    %c0_34 = arith.constant 0 : index
    %c0_35 = arith.constant 0 : index
    %30 = vector.load %arg2[%c0_31, %c5_32, %c0_33, %c0_34, %c0_35] : memref<1x16x4x8x128xf32, #tpu.memory_space<vmem>>, vector<1x1x4x8x128xf32>
    %31 = vector.shape_cast %30 : vector<1x1x4x8x128xf32> to vector<4x8x128xf32>
    %32 = vector.broadcast %29 : f32 to vector<4x8x128xf32>
    %33 = arith.mulf %32, %31 : vector<4x8x128xf32>
    %34 = arith.addf %28, %33 : vector<4x8x128xf32>
    %c0_36 = arith.constant 0 : index
    %c6 = arith.constant 6 : index
    %35 = memref.load %arg4[%c0_36, %c6] : memref<4x16xf32, #tpu.memory_space<smem>>
    %c0_37 = arith.constant 0 : index
    %c6_38 = arith.constant 6 : index
    %c0_39 = arith.constant 0 : index
    %c0_40 = arith.constant 0 : index
    %c0_41 = arith.constant 0 : index
    %36 = vector.load %arg2[%c0_37, %c6_38, %c0_39, %c0_40, %c0_41] : memref<1x16x4x8x128xf32, #tpu.memory_space<vmem>>, vector<1x1x4x8x128xf32>
    %37 = vector.shape_cast %36 : vector<1x1x4x8x128xf32> to vector<4x8x128xf32>
    %38 = vector.broadcast %35 : f32 to vector<4x8x128xf32>
    %39 = arith.mulf %38, %37 : vector<4x8x128xf32>
    %40 = arith.addf %34, %39 : vector<4x8x128xf32>
    %c0_42 = arith.constant 0 : index
    %c7 = arith.constant 7 : index
    %41 = memref.load %arg4[%c0_42, %c7] : memref<4x16xf32, #tpu.memory_space<smem>>
    %c0_43 = arith.constant 0 : index
    %c7_44 = arith.constant 7 : index
    %c0_45 = arith.constant 0 : index
    %c0_46 = arith.constant 0 : index
    %c0_47 = arith.constant 0 : index
    %42 = vector.load %arg2[%c0_43, %c7_44, %c0_45, %c0_46, %c0_47] : memref<1x16x4x8x128xf32, #tpu.memory_space<vmem>>, vector<1x1x4x8x128xf32>
    %43 = vector.shape_cast %42 : vector<1x1x4x8x128xf32> to vector<4x8x128xf32>
    %44 = vector.broadcast %41 : f32 to vector<4x8x128xf32>
    %45 = arith.mulf %44, %43 : vector<4x8x128xf32>
    %46 = arith.addf %40, %45 : vector<4x8x128xf32>
    %c0_48 = arith.constant 0 : index
    %c8 = arith.constant 8 : index
    %47 = memref.load %arg4[%c0_48, %c8] : memref<4x16xf32, #tpu.memory_space<smem>>
    %c0_49 = arith.constant 0 : index
    %c8_50 = arith.constant 8 : index
    %c0_51 = arith.constant 0 : index
    %c0_52 = arith.constant 0 : index
    %c0_53 = arith.constant 0 : index
    %48 = vector.load %arg2[%c0_49, %c8_50, %c0_51, %c0_52, %c0_53] : memref<1x16x4x8x128xf32, #tpu.memory_space<vmem>>, vector<1x1x4x8x128xf32>
    %49 = vector.shape_cast %48 : vector<1x1x4x8x128xf32> to vector<4x8x128xf32>
    %50 = vector.broadcast %47 : f32 to vector<4x8x128xf32>
    %51 = arith.mulf %50, %49 : vector<4x8x128xf32>
    %52 = arith.addf %46, %51 : vector<4x8x128xf32>
    %c0_54 = arith.constant 0 : index
    %c9 = arith.constant 9 : index
    %53 = memref.load %arg4[%c0_54, %c9] : memref<4x16xf32, #tpu.memory_space<smem>>
    %c0_55 = arith.constant 0 : index
    %c9_56 = arith.constant 9 : index
    %c0_57 = arith.constant 0 : index
    %c0_58 = arith.constant 0 : index
    %c0_59 = arith.constant 0 : index
    %54 = vector.load %arg2[%c0_55, %c9_56, %c0_57, %c0_58, %c0_59] : memref<1x16x4x8x128xf32, #tpu.memory_space<vmem>>, vector<1x1x4x8x128xf32>
    %55 = vector.shape_cast %54 : vector<1x1x4x8x128xf32> to vector<4x8x128xf32>
    %56 = vector.broadcast %53 : f32 to vector<4x8x128xf32>
    %57 = arith.mulf %56, %55 : vector<4x8x128xf32>
    %58 = arith.addf %52, %57 : vector<4x8x128xf32>
    %c0_60 = arith.constant 0 : index
    %c10 = arith.constant 10 : index
    %59 = memref.load %arg4[%c0_60, %c10] : memref<4x16xf32, #tpu.memory_space<smem>>
    %c0_61 = arith.constant 0 : index
    %c10_62 = arith.constant 10 : index
    %c0_63 = arith.constant 0 : index
    %c0_64 = arith.constant 0 : index
    %c0_65 = arith.constant 0 : index
    %60 = vector.load %arg2[%c0_61, %c10_62, %c0_63, %c0_64, %c0_65] : memref<1x16x4x8x128xf32, #tpu.memory_space<vmem>>, vector<1x1x4x8x128xf32>
    %61 = vector.shape_cast %60 : vector<1x1x4x8x128xf32> to vector<4x8x128xf32>
    %62 = vector.broadcast %59 : f32 to vector<4x8x128xf32>
    %63 = arith.mulf %62, %61 : vector<4x8x128xf32>
    %64 = arith.addf %58, %63 : vector<4x8x128xf32>
    %c0_66 = arith.constant 0 : index
    %c11 = arith.constant 11 : index
    %65 = memref.load %arg4[%c0_66, %c11] : memref<4x16xf32, #tpu.memory_space<smem>>
    %c0_67 = arith.constant 0 : index
    %c11_68 = arith.constant 11 : index
    %c0_69 = arith.constant 0 : index
    %c0_70 = arith.constant 0 : index
    %c0_71 = arith.constant 0 : index
    %66 = vector.load %arg2[%c0_67, %c11_68, %c0_69, %c0_70, %c0_71] : memref<1x16x4x8x128xf32, #tpu.memory_space<vmem>>, vector<1x1x4x8x128xf32>
    %67 = vector.shape_cast %66 : vector<1x1x4x8x128xf32> to vector<4x8x128xf32>
    %68 = vector.broadcast %65 : f32 to vector<4x8x128xf32>
    %69 = arith.mulf %68, %67 : vector<4x8x128xf32>
    %70 = arith.addf %64, %69 : vector<4x8x128xf32>
    %c0_72 = arith.constant 0 : index
    %c12 = arith.constant 12 : index
    %71 = memref.load %arg4[%c0_72, %c12] : memref<4x16xf32, #tpu.memory_space<smem>>
    %c0_73 = arith.constant 0 : index
    %c12_74 = arith.constant 12 : index
    %c0_75 = arith.constant 0 : index
    %c0_76 = arith.constant 0 : index
    %c0_77 = arith.constant 0 : index
    %72 = vector.load %arg2[%c0_73, %c12_74, %c0_75, %c0_76, %c0_77] : memref<1x16x4x8x128xf32, #tpu.memory_space<vmem>>, vector<1x1x4x8x128xf32>
    %73 = vector.shape_cast %72 : vector<1x1x4x8x128xf32> to vector<4x8x128xf32>
    %74 = vector.broadcast %71 : f32 to vector<4x8x128xf32>
    %75 = arith.mulf %74, %73 : vector<4x8x128xf32>
    %76 = arith.addf %70, %75 : vector<4x8x128xf32>
    %c0_78 = arith.constant 0 : index
    %c13 = arith.constant 13 : index
    %77 = memref.load %arg4[%c0_78, %c13] : memref<4x16xf32, #tpu.memory_space<smem>>
    %c0_79 = arith.constant 0 : index
    %c13_80 = arith.constant 13 : index
    %c0_81 = arith.constant 0 : index
    %c0_82 = arith.constant 0 : index
    %c0_83 = arith.constant 0 : index
    %78 = vector.load %arg2[%c0_79, %c13_80, %c0_81, %c0_82, %c0_83] : memref<1x16x4x8x128xf32, #tpu.memory_space<vmem>>, vector<1x1x4x8x128xf32>
    %79 = vector.shape_cast %78 : vector<1x1x4x8x128xf32> to vector<4x8x128xf32>
    %80 = vector.broadcast %77 : f32 to vector<4x8x128xf32>
    %81 = arith.mulf %80, %79 : vector<4x8x128xf32>
    %82 = arith.addf %76, %81 : vector<4x8x128xf32>
    %c0_84 = arith.constant 0 : index
    %c14 = arith.constant 14 : index
    %83 = memref.load %arg4[%c0_84, %c14] : memref<4x16xf32, #tpu.memory_space<smem>>
    %c0_85 = arith.constant 0 : index
    %c14_86 = arith.constant 14 : index
    %c0_87 = arith.constant 0 : index
    %c0_88 = arith.constant 0 : index
    %c0_89 = arith.constant 0 : index
    %84 = vector.load %arg2[%c0_85, %c14_86, %c0_87, %c0_88, %c0_89] : memref<1x16x4x8x128xf32, #tpu.memory_space<vmem>>, vector<1x1x4x8x128xf32>
    %85 = vector.shape_cast %84 : vector<1x1x4x8x128xf32> to vector<4x8x128xf32>
    %86 = vector.broadcast %83 : f32 to vector<4x8x128xf32>
    %87 = arith.mulf %86, %85 : vector<4x8x128xf32>
    %88 = arith.addf %82, %87 : vector<4x8x128xf32>
    %c0_90 = arith.constant 0 : index
    %c15 = arith.constant 15 : index
    %89 = memref.load %arg4[%c0_90, %c15] : memref<4x16xf32, #tpu.memory_space<smem>>
    %c0_91 = arith.constant 0 : index
    %c15_92 = arith.constant 15 : index
    %c0_93 = arith.constant 0 : index
    %c0_94 = arith.constant 0 : index
    %c0_95 = arith.constant 0 : index
    %90 = vector.load %arg2[%c0_91, %c15_92, %c0_93, %c0_94, %c0_95] : memref<1x16x4x8x128xf32, #tpu.memory_space<vmem>>, vector<1x1x4x8x128xf32>
    %91 = vector.shape_cast %90 : vector<1x1x4x8x128xf32> to vector<4x8x128xf32>
    %92 = vector.broadcast %89 : f32 to vector<4x8x128xf32>
    %93 = arith.mulf %92, %91 : vector<4x8x128xf32>
    %94 = arith.addf %88, %93 : vector<4x8x128xf32>
    %c0_96 = arith.constant 0 : index
    %c0_97 = arith.constant 0 : index
    %95 = memref.load %arg5[%c0_96, %c0_97] : memref<4x16xf32, #tpu.memory_space<smem>>
    %c0_98 = arith.constant 0 : index
    %c0_99 = arith.constant 0 : index
    %c0_100 = arith.constant 0 : index
    %c0_101 = arith.constant 0 : index
    %c0_102 = arith.constant 0 : index
    %96 = vector.load %arg3[%c0_98, %c0_99, %c0_100, %c0_101, %c0_102] : memref<1x16x4x1x128xf32, #tpu.memory_space<vmem>>, vector<1x1x4x1x128xf32>
    %97 = vector.shape_cast %96 : vector<1x1x4x1x128xf32> to vector<4x1x128xf32>
    %98 = vector.broadcast %95 : f32 to vector<4x1x128xf32>
    %99 = arith.mulf %98, %97 : vector<4x1x128xf32>
    %c0_103 = arith.constant 0 : index
    %c1_104 = arith.constant 1 : index
    %100 = memref.load %arg5[%c0_103, %c1_104] : memref<4x16xf32, #tpu.memory_space<smem>>
    %c0_105 = arith.constant 0 : index
    %c1_106 = arith.constant 1 : index
    %c0_107 = arith.constant 0 : index
    %c0_108 = arith.constant 0 : index
    %c0_109 = arith.constant 0 : index
    %101 = vector.load %arg3[%c0_105, %c1_106, %c0_107, %c0_108, %c0_109] : memref<1x16x4x1x128xf32, #tpu.memory_space<vmem>>, vector<1x1x4x1x128xf32>
    %102 = vector.shape_cast %101 : vector<1x1x4x1x128xf32> to vector<4x1x128xf32>
    %103 = vector.broadcast %100 : f32 to vector<4x1x128xf32>
    %104 = arith.mulf %103, %102 : vector<4x1x128xf32>
    %105 = arith.addf %99, %104 : vector<4x1x128xf32>
    %c0_110 = arith.constant 0 : index
    %c2_111 = arith.constant 2 : index
    %106 = memref.load %arg5[%c0_110, %c2_111] : memref<4x16xf32, #tpu.memory_space<smem>>
    %c0_112 = arith.constant 0 : index
    %c2_113 = arith.constant 2 : index
    %c0_114 = arith.constant 0 : index
    %c0_115 = arith.constant 0 : index
    %c0_116 = arith.constant 0 : index
    %107 = vector.load %arg3[%c0_112, %c2_113, %c0_114, %c0_115, %c0_116] : memref<1x16x4x1x128xf32, #tpu.memory_space<vmem>>, vector<1x1x4x1x128xf32>
    %108 = vector.shape_cast %107 : vector<1x1x4x1x128xf32> to vector<4x1x128xf32>
    %109 = vector.broadcast %106 : f32 to vector<4x1x128xf32>
    %110 = arith.mulf %109, %108 : vector<4x1x128xf32>
    %111 = arith.addf %105, %110 : vector<4x1x128xf32>
    %c0_117 = arith.constant 0 : index
    %c3_118 = arith.constant 3 : index
    %112 = memref.load %arg5[%c0_117, %c3_118] : memref<4x16xf32, #tpu.memory_space<smem>>
    %c0_119 = arith.constant 0 : index
    %c3_120 = arith.constant 3 : index
    %c0_121 = arith.constant 0 : index
    %c0_122 = arith.constant 0 : index
    %c0_123 = arith.constant 0 : index
    %113 = vector.load %arg3[%c0_119, %c3_120, %c0_121, %c0_122, %c0_123] : memref<1x16x4x1x128xf32, #tpu.memory_space<vmem>>, vector<1x1x4x1x128xf32>
    %114 = vector.shape_cast %113 : vector<1x1x4x1x128xf32> to vector<4x1x128xf32>
    %115 = vector.broadcast %112 : f32 to vector<4x1x128xf32>
    %116 = arith.mulf %115, %114 : vector<4x1x128xf32>
    %117 = arith.addf %111, %116 : vector<4x1x128xf32>
    %c0_124 = arith.constant 0 : index
    %c4_125 = arith.constant 4 : index
    %118 = memref.load %arg5[%c0_124, %c4_125] : memref<4x16xf32, #tpu.memory_space<smem>>
    %c0_126 = arith.constant 0 : index
    %c4_127 = arith.constant 4 : index
    %c0_128 = arith.constant 0 : index
    %c0_129 = arith.constant 0 : index
    %c0_130 = arith.constant 0 : index
    %119 = vector.load %arg3[%c0_126, %c4_127, %c0_128, %c0_129, %c0_130] : memref<1x16x4x1x128xf32, #tpu.memory_space<vmem>>, vector<1x1x4x1x128xf32>
    %120 = vector.shape_cast %119 : vector<1x1x4x1x128xf32> to vector<4x1x128xf32>
    %121 = vector.broadcast %118 : f32 to vector<4x1x128xf32>
    %122 = arith.mulf %121, %120 : vector<4x1x128xf32>
    %123 = arith.addf %117, %122 : vector<4x1x128xf32>
    %c0_131 = arith.constant 0 : index
    %c5_132 = arith.constant 5 : index
    %124 = memref.load %arg5[%c0_131, %c5_132] : memref<4x16xf32, #tpu.memory_space<smem>>
    %c0_133 = arith.constant 0 : index
    %c5_134 = arith.constant 5 : index
    %c0_135 = arith.constant 0 : index
    %c0_136 = arith.constant 0 : index
    %c0_137 = arith.constant 0 : index
    %125 = vector.load %arg3[%c0_133, %c5_134, %c0_135, %c0_136, %c0_137] : memref<1x16x4x1x128xf32, #tpu.memory_space<vmem>>, vector<1x1x4x1x128xf32>
    %126 = vector.shape_cast %125 : vector<1x1x4x1x128xf32> to vector<4x1x128xf32>
    %127 = vector.broadcast %124 : f32 to vector<4x1x128xf32>
    %128 = arith.mulf %127, %126 : vector<4x1x128xf32>
    %129 = arith.addf %123, %128 : vector<4x1x128xf32>
    %c0_138 = arith.constant 0 : index
    %c6_139 = arith.constant 6 : index
    %130 = memref.load %arg5[%c0_138, %c6_139] : memref<4x16xf32, #tpu.memory_space<smem>>
    %c0_140 = arith.constant 0 : index
    %c6_141 = arith.constant 6 : index
    %c0_142 = arith.constant 0 : index
    %c0_143 = arith.constant 0 : index
    %c0_144 = arith.constant 0 : index
    %131 = vector.load %arg3[%c0_140, %c6_141, %c0_142, %c0_143, %c0_144] : memref<1x16x4x1x128xf32, #tpu.memory_space<vmem>>, vector<1x1x4x1x128xf32>
    %132 = vector.shape_cast %131 : vector<1x1x4x1x128xf32> to vector<4x1x128xf32>
    %133 = vector.broadcast %130 : f32 to vector<4x1x128xf32>
    %134 = arith.mulf %133, %132 : vector<4x1x128xf32>
    %135 = arith.addf %129, %134 : vector<4x1x128xf32>
    %c0_145 = arith.constant 0 : index
    %c7_146 = arith.constant 7 : index
    %136 = memref.load %arg5[%c0_145, %c7_146] : memref<4x16xf32, #tpu.memory_space<smem>>
    %c0_147 = arith.constant 0 : index
    %c7_148 = arith.constant 7 : index
    %c0_149 = arith.constant 0 : index
    %c0_150 = arith.constant 0 : index
    %c0_151 = arith.constant 0 : index
    %137 = vector.load %arg3[%c0_147, %c7_148, %c0_149, %c0_150, %c0_151] : memref<1x16x4x1x128xf32, #tpu.memory_space<vmem>>, vector<1x1x4x1x128xf32>
    %138 = vector.shape_cast %137 : vector<1x1x4x1x128xf32> to vector<4x1x128xf32>
    %139 = vector.broadcast %136 : f32 to vector<4x1x128xf32>
    %140 = arith.mulf %139, %138 : vector<4x1x128xf32>
    %141 = arith.addf %135, %140 : vector<4x1x128xf32>
    %c0_152 = arith.constant 0 : index
    %c8_153 = arith.constant 8 : index
    %142 = memref.load %arg5[%c0_152, %c8_153] : memref<4x16xf32, #tpu.memory_space<smem>>
    %c0_154 = arith.constant 0 : index
    %c8_155 = arith.constant 8 : index
    %c0_156 = arith.constant 0 : index
    %c0_157 = arith.constant 0 : index
    %c0_158 = arith.constant 0 : index
    %143 = vector.load %arg3[%c0_154, %c8_155, %c0_156, %c0_157, %c0_158] : memref<1x16x4x1x128xf32, #tpu.memory_space<vmem>>, vector<1x1x4x1x128xf32>
    %144 = vector.shape_cast %143 : vector<1x1x4x1x128xf32> to vector<4x1x128xf32>
    %145 = vector.broadcast %142 : f32 to vector<4x1x128xf32>
    %146 = arith.mulf %145, %144 : vector<4x1x128xf32>
    %147 = arith.addf %141, %146 : vector<4x1x128xf32>
    %c0_159 = arith.constant 0 : index
    %c9_160 = arith.constant 9 : index
    %148 = memref.load %arg5[%c0_159, %c9_160] : memref<4x16xf32, #tpu.memory_space<smem>>
    %c0_161 = arith.constant 0 : index
    %c9_162 = arith.constant 9 : index
    %c0_163 = arith.constant 0 : index
    %c0_164 = arith.constant 0 : index
    %c0_165 = arith.constant 0 : index
    %149 = vector.load %arg3[%c0_161, %c9_162, %c0_163, %c0_164, %c0_165] : memref<1x16x4x1x128xf32, #tpu.memory_space<vmem>>, vector<1x1x4x1x128xf32>
    %150 = vector.shape_cast %149 : vector<1x1x4x1x128xf32> to vector<4x1x128xf32>
    %151 = vector.broadcast %148 : f32 to vector<4x1x128xf32>
    %152 = arith.mulf %151, %150 : vector<4x1x128xf32>
    %153 = arith.addf %147, %152 : vector<4x1x128xf32>
    %c0_166 = arith.constant 0 : index
    %c10_167 = arith.constant 10 : index
    %154 = memref.load %arg5[%c0_166, %c10_167] : memref<4x16xf32, #tpu.memory_space<smem>>
    %c0_168 = arith.constant 0 : index
    %c10_169 = arith.constant 10 : index
    %c0_170 = arith.constant 0 : index
    %c0_171 = arith.constant 0 : index
    %c0_172 = arith.constant 0 : index
    %155 = vector.load %arg3[%c0_168, %c10_169, %c0_170, %c0_171, %c0_172] : memref<1x16x4x1x128xf32, #tpu.memory_space<vmem>>, vector<1x1x4x1x128xf32>
    %156 = vector.shape_cast %155 : vector<1x1x4x1x128xf32> to vector<4x1x128xf32>
    %157 = vector.broadcast %154 : f32 to vector<4x1x128xf32>
    %158 = arith.mulf %157, %156 : vector<4x1x128xf32>
    %159 = arith.addf %153, %158 : vector<4x1x128xf32>
    %c0_173 = arith.constant 0 : index
    %c11_174 = arith.constant 11 : index
    %160 = memref.load %arg5[%c0_173, %c11_174] : memref<4x16xf32, #tpu.memory_space<smem>>
    %c0_175 = arith.constant 0 : index
    %c11_176 = arith.constant 11 : index
    %c0_177 = arith.constant 0 : index
    %c0_178 = arith.constant 0 : index
    %c0_179 = arith.constant 0 : index
    %161 = vector.load %arg3[%c0_175, %c11_176, %c0_177, %c0_178, %c0_179] : memref<1x16x4x1x128xf32, #tpu.memory_space<vmem>>, vector<1x1x4x1x128xf32>
    %162 = vector.shape_cast %161 : vector<1x1x4x1x128xf32> to vector<4x1x128xf32>
    %163 = vector.broadcast %160 : f32 to vector<4x1x128xf32>
    %164 = arith.mulf %163, %162 : vector<4x1x128xf32>
    %165 = arith.addf %159, %164 : vector<4x1x128xf32>
    %c0_180 = arith.constant 0 : index
    %c12_181 = arith.constant 12 : index
    %166 = memref.load %arg5[%c0_180, %c12_181] : memref<4x16xf32, #tpu.memory_space<smem>>
    %c0_182 = arith.constant 0 : index
    %c12_183 = arith.constant 12 : index
    %c0_184 = arith.constant 0 : index
    %c0_185 = arith.constant 0 : index
    %c0_186 = arith.constant 0 : index
    %167 = vector.load %arg3[%c0_182, %c12_183, %c0_184, %c0_185, %c0_186] : memref<1x16x4x1x128xf32, #tpu.memory_space<vmem>>, vector<1x1x4x1x128xf32>
    %168 = vector.shape_cast %167 : vector<1x1x4x1x128xf32> to vector<4x1x128xf32>
    %169 = vector.broadcast %166 : f32 to vector<4x1x128xf32>
    %170 = arith.mulf %169, %168 : vector<4x1x128xf32>
    %171 = arith.addf %165, %170 : vector<4x1x128xf32>
    %c0_187 = arith.constant 0 : index
    %c13_188 = arith.constant 13 : index
    %172 = memref.load %arg5[%c0_187, %c13_188] : memref<4x16xf32, #tpu.memory_space<smem>>
    %c0_189 = arith.constant 0 : index
    %c13_190 = arith.constant 13 : index
    %c0_191 = arith.constant 0 : index
    %c0_192 = arith.constant 0 : index
    %c0_193 = arith.constant 0 : index
    %173 = vector.load %arg3[%c0_189, %c13_190, %c0_191, %c0_192, %c0_193] : memref<1x16x4x1x128xf32, #tpu.memory_space<vmem>>, vector<1x1x4x1x128xf32>
    %174 = vector.shape_cast %173 : vector<1x1x4x1x128xf32> to vector<4x1x128xf32>
    %175 = vector.broadcast %172 : f32 to vector<4x1x128xf32>
    %176 = arith.mulf %175, %174 : vector<4x1x128xf32>
    %177 = arith.addf %171, %176 : vector<4x1x128xf32>
    %c0_194 = arith.constant 0 : index
    %c14_195 = arith.constant 14 : index
    %178 = memref.load %arg5[%c0_194, %c14_195] : memref<4x16xf32, #tpu.memory_space<smem>>
    %c0_196 = arith.constant 0 : index
    %c14_197 = arith.constant 14 : index
    %c0_198 = arith.constant 0 : index
    %c0_199 = arith.constant 0 : index
    %c0_200 = arith.constant 0 : index
    %179 = vector.load %arg3[%c0_196, %c14_197, %c0_198, %c0_199, %c0_200] : memref<1x16x4x1x128xf32, #tpu.memory_space<vmem>>, vector<1x1x4x1x128xf32>
    %180 = vector.shape_cast %179 : vector<1x1x4x1x128xf32> to vector<4x1x128xf32>
    %181 = vector.broadcast %178 : f32 to vector<4x1x128xf32>
    %182 = arith.mulf %181, %180 : vector<4x1x128xf32>
    %183 = arith.addf %177, %182 : vector<4x1x128xf32>
    %c0_201 = arith.constant 0 : index
    %c15_202 = arith.constant 15 : index
    %184 = memref.load %arg5[%c0_201, %c15_202] : memref<4x16xf32, #tpu.memory_space<smem>>
    %c0_203 = arith.constant 0 : index
    %c15_204 = arith.constant 15 : index
    %c0_205 = arith.constant 0 : index
    %c0_206 = arith.constant 0 : index
    %c0_207 = arith.constant 0 : index
    %185 = vector.load %arg3[%c0_203, %c15_204, %c0_205, %c0_206, %c0_207] : memref<1x16x4x1x128xf32, #tpu.memory_space<vmem>>, vector<1x1x4x1x128xf32>
    %186 = vector.shape_cast %185 : vector<1x1x4x1x128xf32> to vector<4x1x128xf32>
    %187 = vector.broadcast %184 : f32 to vector<4x1x128xf32>
    %188 = arith.mulf %187, %186 : vector<4x1x128xf32>
    %189 = arith.addf %183, %188 : vector<4x1x128xf32>
    %190 = vector.broadcast %189 : vector<4x1x128xf32> to vector<4x8x128xf32>
    %191 = arith.addf %94, %190 : vector<4x8x128xf32>
    %c0_208 = arith.constant 0 : index
    %192 = memref.load %arg6[%c0_208] : memref<4xf32, #tpu.memory_space<smem>>
    %193 = vector.broadcast %192 : f32 to vector<4x8x128xf32>
    %194 = arith.addf %191, %193 : vector<4x8x128xf32>
    %cst = arith.constant 5.000000e-01 : f32
    %195 = vector.broadcast %cst : f32 to vector<4x8x128xf32>
    %196 = arith.mulf %195, %194 : vector<4x8x128xf32>
    %197 = math.tanh %196 : vector<4x8x128xf32>
    %cst_209 = arith.constant 5.000000e-01 : f32
    %198 = vector.broadcast %cst_209 : f32 to vector<4x8x128xf32>
    %199 = arith.mulf %198, %197 : vector<4x8x128xf32>
    %cst_210 = arith.constant 5.000000e-01 : f32
    %200 = vector.broadcast %cst_210 : f32 to vector<4x8x128xf32>
    %201 = arith.addf %199, %200 : vector<4x8x128xf32>
    %c0_211 = arith.constant 0 : index
    %c0_212 = arith.constant 0 : index
    %c0_213 = arith.constant 0 : index
    %c0_214 = arith.constant 0 : index
    %c0_215 = arith.constant 0 : index
    %202 = vector.load %arg7[%c0_211, %c0_212, %c0_213, %c0_214, %c0_215] : memref<1x4x4x8x128xf32, #tpu.memory_space<vmem>>, vector<1x1x4x8x128xf32>
    %203 = vector.shape_cast %202 : vector<1x1x4x8x128xf32> to vector<4x8x128xf32>
    %204 = vector.shape_cast %201 : vector<4x8x128xf32> to vector<1x1x4x8x128xf32>
    tpu.vector_store %arg7[%c0_211, %c0_212, %c0_213, %c0_214, %c0_215], %204 {strides = array<i32>} : memref<1x4x4x8x128xf32, #tpu.memory_space<vmem>>, vector<1x1x4x8x128xf32>,
    %c1_216 = arith.constant 1 : index
    %c0_217 = arith.constant 0 : index
    %205 = memref.load %arg4[%c1_216, %c0_217] : memref<4x16xf32, #tpu.memory_space<smem>>
    %c0_218 = arith.constant 0 : index
    %c0_219 = arith.constant 0 : index
    %c0_220 = arith.constant 0 : index
    %c0_221 = arith.constant 0 : index
    %c0_222 = arith.constant 0 : index
    %206 = vector.load %arg2[%c0_218, %c0_219, %c0_220, %c0_221, %c0_222] : memref<1x16x4x8x128xf32, #tpu.memory_space<vmem>>, vector<1x1x4x8x128xf32>
    %207 = vector.shape_cast %206 : vector<1x1x4x8x128xf32> to vector<4x8x128xf32>
    %208 = vector.broadcast %205 : f32 to vector<4x8x128xf32>
    %209 = arith.mulf %208, %207 : vector<4x8x128xf32>
    %c1_223 = arith.constant 1 : index
    %c1_224 = arith.constant 1 : index
    %210 = memref.load %arg4[%c1_223, %c1_224] : memref<4x16xf32, #tpu.memory_space<smem>>
    %c0_225 = arith.constant 0 : index
    %c1_226 = arith.constant 1 : index
    %c0_227 = arith.constant 0 : index
    %c0_228 = arith.constant 0 : index
    %c0_229 = arith.constant 0 : index
    %211 = vector.load %arg2[%c0_225, %c1_226, %c0_227, %c0_228, %c0_229] : memref<1x16x4x8x128xf32, #tpu.memory_space<vmem>>, vector<1x1x4x8x128xf32>
    %212 = vector.shape_cast %211 : vector<1x1x4x8x128xf32> to vector<4x8x128xf32>
    %213 = vector.broadcast %210 : f32 to vector<4x8x128xf32>
    %214 = arith.mulf %213, %212 : vector<4x8x128xf32>
    %215 = arith.addf %209, %214 : vector<4x8x128xf32>
    %c1_230 = arith.constant 1 : index
    %c2_231 = arith.constant 2 : index
    %216 = memref.load %arg4[%c1_230, %c2_231] : memref<4x16xf32, #tpu.memory_space<smem>>
    %c0_232 = arith.constant 0 : index
    %c2_233 = arith.constant 2 : index
    %c0_234 = arith.constant 0 : index
    %c0_235 = arith.constant 0 : index
    %c0_236 = arith.constant 0 : index
    %217 = vector.load %arg2[%c0_232, %c2_233, %c0_234, %c0_235, %c0_236] : memref<1x16x4x8x128xf32, #tpu.memory_space<vmem>>, vector<1x1x4x8x128xf32>
    %218 = vector.shape_cast %217 : vector<1x1x4x8x128xf32> to vector<4x8x128xf32>
    %219 = vector.broadcast %216 : f32 to vector<4x8x128xf32>
    %220 = arith.mulf %219, %218 : vector<4x8x128xf32>
    %221 = arith.addf %215, %220 : vector<4x8x128xf32>
    %c1_237 = arith.constant 1 : index
    %c3_238 = arith.constant 3 : index
    %222 = memref.load %arg4[%c1_237, %c3_238] : memref<4x16xf32, #tpu.memory_space<smem>>
    %c0_239 = arith.constant 0 : index
    %c3_240 = arith.constant 3 : index
    %c0_241 = arith.constant 0 : index
    %c0_242 = arith.constant 0 : index
    %c0_243 = arith.constant 0 : index
    %223 = vector.load %arg2[%c0_239, %c3_240, %c0_241, %c0_242, %c0_243] : memref<1x16x4x8x128xf32, #tpu.memory_space<vmem>>, vector<1x1x4x8x128xf32>
    %224 = vector.shape_cast %223 : vector<1x1x4x8x128xf32> to vector<4x8x128xf32>
    %225 = vector.broadcast %222 : f32 to vector<4x8x128xf32>
    %226 = arith.mulf %225, %224 : vector<4x8x128xf32>
    %227 = arith.addf %221, %226 : vector<4x8x128xf32>
    %c1_244 = arith.constant 1 : index
    %c4_245 = arith.constant 4 : index
    %228 = memref.load %arg4[%c1_244, %c4_245] : memref<4x16xf32, #tpu.memory_space<smem>>
    %c0_246 = arith.constant 0 : index
    %c4_247 = arith.constant 4 : index
    %c0_248 = arith.constant 0 : index
    %c0_249 = arith.constant 0 : index
    %c0_250 = arith.constant 0 : index
    %229 = vector.load %arg2[%c0_246, %c4_247, %c0_248, %c0_249, %c0_250] : memref<1x16x4x8x128xf32, #tpu.memory_space<vmem>>, vector<1x1x4x8x128xf32>
    %230 = vector.shape_cast %229 : vector<1x1x4x8x128xf32> to vector<4x8x128xf32>
    %231 = vector.broadcast %228 : f32 to vector<4x8x128xf32>
    %232 = arith.mulf %231, %230 : vector<4x8x128xf32>
    %233 = arith.addf %227, %232 : vector<4x8x128xf32>
    %c1_251 = arith.constant 1 : index
    %c5_252 = arith.constant 5 : index
    %234 = memref.load %arg4[%c1_251, %c5_252] : memref<4x16xf32, #tpu.memory_space<smem>>
    %c0_253 = arith.constant 0 : index
    %c5_254 = arith.constant 5 : index
    %c0_255 = arith.constant 0 : index
    %c0_256 = arith.constant 0 : index
    %c0_257 = arith.constant 0 : index
    %235 = vector.load %arg2[%c0_253, %c5_254, %c0_255, %c0_256, %c0_257] : memref<1x16x4x8x128xf32, #tpu.memory_space<vmem>>, vector<1x1x4x8x128xf32>
    %236 = vector.shape_cast %235 : vector<1x1x4x8x128xf32> to vector<4x8x128xf32>
    %237 = vector.broadcast %234 : f32 to vector<4x8x128xf32>
    %238 = arith.mulf %237, %236 : vector<4x8x128xf32>
    %239 = arith.addf %233, %238 : vector<4x8x128xf32>
    %c1_258 = arith.constant 1 : index
    %c6_259 = arith.constant 6 : index
    %240 = memref.load %arg4[%c1_258, %c6_259] : memref<4x16xf32, #tpu.memory_space<smem>>
    %c0_260 = arith.constant 0 : index
    %c6_261 = arith.constant 6 : index
    %c0_262 = arith.constant 0 : index
    %c0_263 = arith.constant 0 : index
    %c0_264 = arith.constant 0 : index
    %241 = vector.load %arg2[%c0_260, %c6_261, %c0_262, %c0_263, %c0_264] : memref<1x16x4x8x128xf32, #tpu.memory_space<vmem>>, vector<1x1x4x8x128xf32>
    %242 = vector.shape_cast %241 : vector<1x1x4x8x128xf32> to vector<4x8x128xf32>
    %243 = vector.broadcast %240 : f32 to vector<4x8x128xf32>
    %244 = arith.mulf %243, %242 : vector<4x8x128xf32>
    %245 = arith.addf %239, %244 : vector<4x8x128xf32>
    %c1_265 = arith.constant 1 : index
    %c7_266 = arith.constant 7 : index
    %246 = memref.load %arg4[%c1_265, %c7_266] : memref<4x16xf32, #tpu.memory_space<smem>>
    %c0_267 = arith.constant 0 : index
    %c7_268 = arith.constant 7 : index
    %c0_269 = arith.constant 0 : index
    %c0_270 = arith.constant 0 : index
    %c0_271 = arith.constant 0 : index
    %247 = vector.load %arg2[%c0_267, %c7_268, %c0_269, %c0_270, %c0_271] : memref<1x16x4x8x128xf32, #tpu.memory_space<vmem>>, vector<1x1x4x8x128xf32>
    %248 = vector.shape_cast %247 : vector<1x1x4x8x128xf32> to vector<4x8x128xf32>
    %249 = vector.broadcast %246 : f32 to vector<4x8x128xf32>
    %250 = arith.mulf %249, %248 : vector<4x8x128xf32>
    %251 = arith.addf %245, %250 : vector<4x8x128xf32>
    %c1_272 = arith.constant 1 : index
    %c8_273 = arith.constant 8 : index
    %252 = memref.load %arg4[%c1_272, %c8_273] : memref<4x16xf32, #tpu.memory_space<smem>>
    %c0_274 = arith.constant 0 : index
    %c8_275 = arith.constant 8 : index
    %c0_276 = arith.constant 0 : index
    %c0_277 = arith.constant 0 : index
    %c0_278 = arith.constant 0 : index
    %253 = vector.load %arg2[%c0_274, %c8_275, %c0_276, %c0_277, %c0_278] : memref<1x16x4x8x128xf32, #tpu.memory_space<vmem>>, vector<1x1x4x8x128xf32>
    %254 = vector.shape_cast %253 : vector<1x1x4x8x128xf32> to vector<4x8x128xf32>
    %255 = vector.broadcast %252 : f32 to vector<4x8x128xf32>
    %256 = arith.mulf %255, %254 : vector<4x8x128xf32>
    %257 = arith.addf %251, %256 : vector<4x8x128xf32>
    %c1_279 = arith.constant 1 : index
    %c9_280 = arith.constant 9 : index
    %258 = memref.load %arg4[%c1_279, %c9_280] : memref<4x16xf32, #tpu.memory_space<smem>>
    %c0_281 = arith.constant 0 : index
    %c9_282 = arith.constant 9 : index
    %c0_283 = arith.constant 0 : index
    %c0_284 = arith.constant 0 : index
    %c0_285 = arith.constant 0 : index
    %259 = vector.load %arg2[%c0_281, %c9_282, %c0_283, %c0_284, %c0_285] : memref<1x16x4x8x128xf32, #tpu.memory_space<vmem>>, vector<1x1x4x8x128xf32>
    %260 = vector.shape_cast %259 : vector<1x1x4x8x128xf32> to vector<4x8x128xf32>
    %261 = vector.broadcast %258 : f32 to vector<4x8x128xf32>
    %262 = arith.mulf %261, %260 : vector<4x8x128xf32>
    %263 = arith.addf %257, %262 : vector<4x8x128xf32>
    %c1_286 = arith.constant 1 : index
    %c10_287 = arith.constant 10 : index
    %264 = memref.load %arg4[%c1_286, %c10_287] : memref<4x16xf32, #tpu.memory_space<smem>>
    %c0_288 = arith.constant 0 : index
    %c10_289 = arith.constant 10 : index
    %c0_290 = arith.constant 0 : index
    %c0_291 = arith.constant 0 : index
    %c0_292 = arith.constant 0 : index
    %265 = vector.load %arg2[%c0_288, %c10_289, %c0_290, %c0_291, %c0_292] : memref<1x16x4x8x128xf32, #tpu.memory_space<vmem>>, vector<1x1x4x8x128xf32>
    %266 = vector.shape_cast %265 : vector<1x1x4x8x128xf32> to vector<4x8x128xf32>
    %267 = vector.broadcast %264 : f32 to vector<4x8x128xf32>
    %268 = arith.mulf %267, %266 : vector<4x8x128xf32>
    %269 = arith.addf %263, %268 : vector<4x8x128xf32>
    %c1_293 = arith.constant 1 : index
    %c11_294 = arith.constant 11 : index
    %270 = memref.load %arg4[%c1_293, %c11_294] : memref<4x16xf32, #tpu.memory_space<smem>>
    %c0_295 = arith.constant 0 : index
    %c11_296 = arith.constant 11 : index
    %c0_297 = arith.constant 0 : index
    %c0_298 = arith.constant 0 : index
    %c0_299 = arith.constant 0 : index
    %271 = vector.load %arg2[%c0_295, %c11_296, %c0_297, %c0_298, %c0_299] : memref<1x16x4x8x128xf32, #tpu.memory_space<vmem>>, vector<1x1x4x8x128xf32>
    %272 = vector.shape_cast %271 : vector<1x1x4x8x128xf32> to vector<4x8x128xf32>
    %273 = vector.broadcast %270 : f32 to vector<4x8x128xf32>
    %274 = arith.mulf %273, %272 : vector<4x8x128xf32>
    %275 = arith.addf %269, %274 : vector<4x8x128xf32>
    %c1_300 = arith.constant 1 : index
    %c12_301 = arith.constant 12 : index
    %276 = memref.load %arg4[%c1_300, %c12_301] : memref<4x16xf32, #tpu.memory_space<smem>>
    %c0_302 = arith.constant 0 : index
    %c12_303 = arith.constant 12 : index
    %c0_304 = arith.constant 0 : index
    %c0_305 = arith.constant 0 : index
    %c0_306 = arith.constant 0 : index
    %277 = vector.load %arg2[%c0_302, %c12_303, %c0_304, %c0_305, %c0_306] : memref<1x16x4x8x128xf32, #tpu.memory_space<vmem>>, vector<1x1x4x8x128xf32>
    %278 = vector.shape_cast %277 : vector<1x1x4x8x128xf32> to vector<4x8x128xf32>
    %279 = vector.broadcast %276 : f32 to vector<4x8x128xf32>
    %280 = arith.mulf %279, %278 : vector<4x8x128xf32>
    %281 = arith.addf %275, %280 : vector<4x8x128xf32>
    %c1_307 = arith.constant 1 : index
    %c13_308 = arith.constant 13 : index
    %282 = memref.load %arg4[%c1_307, %c13_308] : memref<4x16xf32, #tpu.memory_space<smem>>
    %c0_309 = arith.constant 0 : index
    %c13_310 = arith.constant 13 : index
    %c0_311 = arith.constant 0 : index
    %c0_312 = arith.constant 0 : index
    %c0_313 = arith.constant 0 : index
    %283 = vector.load %arg2[%c0_309, %c13_310, %c0_311, %c0_312, %c0_313] : memref<1x16x4x8x128xf32, #tpu.memory_space<vmem>>, vector<1x1x4x8x128xf32>
    %284 = vector.shape_cast %283 : vector<1x1x4x8x128xf32> to vector<4x8x128xf32>
    %285 = vector.broadcast %282 : f32 to vector<4x8x128xf32>
    %286 = arith.mulf %285, %284 : vector<4x8x128xf32>
    %287 = arith.addf %281, %286 : vector<4x8x128xf32>
    %c1_314 = arith.constant 1 : index
    %c14_315 = arith.constant 14 : index
    %288 = memref.load %arg4[%c1_314, %c14_315] : memref<4x16xf32, #tpu.memory_space<smem>>
    %c0_316 = arith.constant 0 : index
    %c14_317 = arith.constant 14 : index
    %c0_318 = arith.constant 0 : index
    %c0_319 = arith.constant 0 : index
    %c0_320 = arith.constant 0 : index
    %289 = vector.load %arg2[%c0_316, %c14_317, %c0_318, %c0_319, %c0_320] : memref<1x16x4x8x128xf32, #tpu.memory_space<vmem>>, vector<1x1x4x8x128xf32>
    %290 = vector.shape_cast %289 : vector<1x1x4x8x128xf32> to vector<4x8x128xf32>
    %291 = vector.broadcast %288 : f32 to vector<4x8x128xf32>
    %292 = arith.mulf %291, %290 : vector<4x8x128xf32>
    %293 = arith.addf %287, %292 : vector<4x8x128xf32>
    %c1_321 = arith.constant 1 : index
    %c15_322 = arith.constant 15 : index
    %294 = memref.load %arg4[%c1_321, %c15_322] : memref<4x16xf32, #tpu.memory_space<smem>>
    %c0_323 = arith.constant 0 : index
    %c15_324 = arith.constant 15 : index
    %c0_325 = arith.constant 0 : index
    %c0_326 = arith.constant 0 : index
    %c0_327 = arith.constant 0 : index
    %295 = vector.load %arg2[%c0_323, %c15_324, %c0_325, %c0_326, %c0_327] : memref<1x16x4x8x128xf32, #tpu.memory_space<vmem>>, vector<1x1x4x8x128xf32>
    %296 = vector.shape_cast %295 : vector<1x1x4x8x128xf32> to vector<4x8x128xf32>
    %297 = vector.broadcast %294 : f32 to vector<4x8x128xf32>
    %298 = arith.mulf %297, %296 : vector<4x8x128xf32>
    %299 = arith.addf %293, %298 : vector<4x8x128xf32>
    %c1_328 = arith.constant 1 : index
    %c0_329 = arith.constant 0 : index
    %300 = memref.load %arg5[%c1_328, %c0_329] : memref<4x16xf32, #tpu.memory_space<smem>>
    %c0_330 = arith.constant 0 : index
    %c0_331 = arith.constant 0 : index
    %c0_332 = arith.constant 0 : index
    %c0_333 = arith.constant 0 : index
    %c0_334 = arith.constant 0 : index
    %301 = vector.load %arg3[%c0_330, %c0_331, %c0_332, %c0_333, %c0_334] : memref<1x16x4x1x128xf32, #tpu.memory_space<vmem>>, vector<1x1x4x1x128xf32>
    %302 = vector.shape_cast %301 : vector<1x1x4x1x128xf32> to vector<4x1x128xf32>
    %303 = vector.broadcast %300 : f32 to vector<4x1x128xf32>
    %304 = arith.mulf %303, %302 : vector<4x1x128xf32>
    %c1_335 = arith.constant 1 : index
    %c1_336 = arith.constant 1 : index
    %305 = memref.load %arg5[%c1_335, %c1_336] : memref<4x16xf32, #tpu.memory_space<smem>>
    %c0_337 = arith.constant 0 : index
    %c1_338 = arith.constant 1 : index
    %c0_339 = arith.constant 0 : index
    %c0_340 = arith.constant 0 : index
    %c0_341 = arith.constant 0 : index
    %306 = vector.load %arg3[%c0_337, %c1_338, %c0_339, %c0_340, %c0_341] : memref<1x16x4x1x128xf32, #tpu.memory_space<vmem>>, vector<1x1x4x1x128xf32>
    %307 = vector.shape_cast %306 : vector<1x1x4x1x128xf32> to vector<4x1x128xf32>
    %308 = vector.broadcast %305 : f32 to vector<4x1x128xf32>
    %309 = arith.mulf %308, %307 : vector<4x1x128xf32>
    %310 = arith.addf %304, %309 : vector<4x1x128xf32>
    %c1_342 = arith.constant 1 : index
    %c2_343 = arith.constant 2 : index
    %311 = memref.load %arg5[%c1_342, %c2_343] : memref<4x16xf32, #tpu.memory_space<smem>>
    %c0_344 = arith.constant 0 : index
    %c2_345 = arith.constant 2 : index
    %c0_346 = arith.constant 0 : index
    %c0_347 = arith.constant 0 : index
    %c0_348 = arith.constant 0 : index
    %312 = vector.load %arg3[%c0_344, %c2_345, %c0_346, %c0_347, %c0_348] : memref<1x16x4x1x128xf32, #tpu.memory_space<vmem>>, vector<1x1x4x1x128xf32>
    %313 = vector.shape_cast %312 : vector<1x1x4x1x128xf32> to vector<4x1x128xf32>
    %314 = vector.broadcast %311 : f32 to vector<4x1x128xf32>
    %315 = arith.mulf %314, %313 : vector<4x1x128xf32>
    %316 = arith.addf %310, %315 : vector<4x1x128xf32>
    %c1_349 = arith.constant 1 : index
    %c3_350 = arith.constant 3 : index
    %317 = memref.load %arg5[%c1_349, %c3_350] : memref<4x16xf32, #tpu.memory_space<smem>>
    %c0_351 = arith.constant 0 : index
    %c3_352 = arith.constant 3 : index
    %c0_353 = arith.constant 0 : index
    %c0_354 = arith.constant 0 : index
    %c0_355 = arith.constant 0 : index
    %318 = vector.load %arg3[%c0_351, %c3_352, %c0_353, %c0_354, %c0_355] : memref<1x16x4x1x128xf32, #tpu.memory_space<vmem>>, vector<1x1x4x1x128xf32>
    %319 = vector.shape_cast %318 : vector<1x1x4x1x128xf32> to vector<4x1x128xf32>
    %320 = vector.broadcast %317 : f32 to vector<4x1x128xf32>
    %321 = arith.mulf %320, %319 : vector<4x1x128xf32>
    %322 = arith.addf %316, %321 : vector<4x1x128xf32>
    %c1_356 = arith.constant 1 : index
    %c4_357 = arith.constant 4 : index
    %323 = memref.load %arg5[%c1_356, %c4_357] : memref<4x16xf32, #tpu.memory_space<smem>>
    %c0_358 = arith.constant 0 : index
    %c4_359 = arith.constant 4 : index
    %c0_360 = arith.constant 0 : index
    %c0_361 = arith.constant 0 : index
    %c0_362 = arith.constant 0 : index
    %324 = vector.load %arg3[%c0_358, %c4_359, %c0_360, %c0_361, %c0_362] : memref<1x16x4x1x128xf32, #tpu.memory_space<vmem>>, vector<1x1x4x1x128xf32>
    %325 = vector.shape_cast %324 : vector<1x1x4x1x128xf32> to vector<4x1x128xf32>
    %326 = vector.broadcast %323 : f32 to vector<4x1x128xf32>
    %327 = arith.mulf %326, %325 : vector<4x1x128xf32>
    %328 = arith.addf %322, %327 : vector<4x1x128xf32>
    %c1_363 = arith.constant 1 : index
    %c5_364 = arith.constant 5 : index
    %329 = memref.load %arg5[%c1_363, %c5_364] : memref<4x16xf32, #tpu.memory_space<smem>>
    %c0_365 = arith.constant 0 : index
    %c5_366 = arith.constant 5 : index
    %c0_367 = arith.constant 0 : index
    %c0_368 = arith.constant 0 : index
    %c0_369 = arith.constant 0 : index
    %330 = vector.load %arg3[%c0_365, %c5_366, %c0_367, %c0_368, %c0_369] : memref<1x16x4x1x128xf32, #tpu.memory_space<vmem>>, vector<1x1x4x1x128xf32>
    %331 = vector.shape_cast %330 : vector<1x1x4x1x128xf32> to vector<4x1x128xf32>
    %332 = vector.broadcast %329 : f32 to vector<4x1x128xf32>
    %333 = arith.mulf %332, %331 : vector<4x1x128xf32>
    %334 = arith.addf %328, %333 : vector<4x1x128xf32>
    %c1_370 = arith.constant 1 : index
    %c6_371 = arith.constant 6 : index
    %335 = memref.load %arg5[%c1_370, %c6_371] : memref<4x16xf32, #tpu.memory_space<smem>>
    %c0_372 = arith.constant 0 : index
    %c6_373 = arith.constant 6 : index
    %c0_374 = arith.constant 0 : index
    %c0_375 = arith.constant 0 : index
    %c0_376 = arith.constant 0 : index
    %336 = vector.load %arg3[%c0_372, %c6_373, %c0_374, %c0_375, %c0_376] : memref<1x16x4x1x128xf32, #tpu.memory_space<vmem>>, vector<1x1x4x1x128xf32>
    %337 = vector.shape_cast %336 : vector<1x1x4x1x128xf32> to vector<4x1x128xf32>
    %338 = vector.broadcast %335 : f32 to vector<4x1x128xf32>
    %339 = arith.mulf %338, %337 : vector<4x1x128xf32>
    %340 = arith.addf %334, %339 : vector<4x1x128xf32>
    %c1_377 = arith.constant 1 : index
    %c7_378 = arith.constant 7 : index
    %341 = memref.load %arg5[%c1_377, %c7_378] : memref<4x16xf32, #tpu.memory_space<smem>>
    %c0_379 = arith.constant 0 : index
    %c7_380 = arith.constant 7 : index
    %c0_381 = arith.constant 0 : index
    %c0_382 = arith.constant 0 : index
    %c0_383 = arith.constant 0 : index
    %342 = vector.load %arg3[%c0_379, %c7_380, %c0_381, %c0_382, %c0_383] : memref<1x16x4x1x128xf32, #tpu.memory_space<vmem>>, vector<1x1x4x1x128xf32>
    %343 = vector.shape_cast %342 : vector<1x1x4x1x128xf32> to vector<4x1x128xf32>
    %344 = vector.broadcast %341 : f32 to vector<4x1x128xf32>
    %345 = arith.mulf %344, %343 : vector<4x1x128xf32>
    %346 = arith.addf %340, %345 : vector<4x1x128xf32>
    %c1_384 = arith.constant 1 : index
    %c8_385 = arith.constant 8 : index
    %347 = memref.load %arg5[%c1_384, %c8_385] : memref<4x16xf32, #tpu.memory_space<smem>>
    %c0_386 = arith.constant 0 : index
    %c8_387 = arith.constant 8 : index
    %c0_388 = arith.constant 0 : index
    %c0_389 = arith.constant 0 : index
    %c0_390 = arith.constant 0 : index
    %348 = vector.load %arg3[%c0_386, %c8_387, %c0_388, %c0_389, %c0_390] : memref<1x16x4x1x128xf32, #tpu.memory_space<vmem>>, vector<1x1x4x1x128xf32>
    %349 = vector.shape_cast %348 : vector<1x1x4x1x128xf32> to vector<4x1x128xf32>
    %350 = vector.broadcast %347 : f32 to vector<4x1x128xf32>
    %351 = arith.mulf %350, %349 : vector<4x1x128xf32>
    %352 = arith.addf %346, %351 : vector<4x1x128xf32>
    %c1_391 = arith.constant 1 : index
    %c9_392 = arith.constant 9 : index
    %353 = memref.load %arg5[%c1_391, %c9_392] : memref<4x16xf32, #tpu.memory_space<smem>>
    %c0_393 = arith.constant 0 : index
    %c9_394 = arith.constant 9 : index
    %c0_395 = arith.constant 0 : index
    %c0_396 = arith.constant 0 : index
    %c0_397 = arith.constant 0 : index
    %354 = vector.load %arg3[%c0_393, %c9_394, %c0_395, %c0_396, %c0_397] : memref<1x16x4x1x128xf32, #tpu.memory_space<vmem>>, vector<1x1x4x1x128xf32>
    %355 = vector.shape_cast %354 : vector<1x1x4x1x128xf32> to vector<4x1x128xf32>
    %356 = vector.broadcast %353 : f32 to vector<4x1x128xf32>
    %357 = arith.mulf %356, %355 : vector<4x1x128xf32>
    %358 = arith.addf %352, %357 : vector<4x1x128xf32>
    %c1_398 = arith.constant 1 : index
    %c10_399 = arith.constant 10 : index
    %359 = memref.load %arg5[%c1_398, %c10_399] : memref<4x16xf32, #tpu.memory_space<smem>>
    %c0_400 = arith.constant 0 : index
    %c10_401 = arith.constant 10 : index
    %c0_402 = arith.constant 0 : index
    %c0_403 = arith.constant 0 : index
    %c0_404 = arith.constant 0 : index
    %360 = vector.load %arg3[%c0_400, %c10_401, %c0_402, %c0_403, %c0_404] : memref<1x16x4x1x128xf32, #tpu.memory_space<vmem>>, vector<1x1x4x1x128xf32>
    %361 = vector.shape_cast %360 : vector<1x1x4x1x128xf32> to vector<4x1x128xf32>
    %362 = vector.broadcast %359 : f32 to vector<4x1x128xf32>
    %363 = arith.mulf %362, %361 : vector<4x1x128xf32>
    %364 = arith.addf %358, %363 : vector<4x1x128xf32>
    %c1_405 = arith.constant 1 : index
    %c11_406 = arith.constant 11 : index
    %365 = memref.load %arg5[%c1_405, %c11_406] : memref<4x16xf32, #tpu.memory_space<smem>>
    %c0_407 = arith.constant 0 : index
    %c11_408 = arith.constant 11 : index
    %c0_409 = arith.constant 0 : index
    %c0_410 = arith.constant 0 : index
    %c0_411 = arith.constant 0 : index
    %366 = vector.load %arg3[%c0_407, %c11_408, %c0_409, %c0_410, %c0_411] : memref<1x16x4x1x128xf32, #tpu.memory_space<vmem>>, vector<1x1x4x1x128xf32>
    %367 = vector.shape_cast %366 : vector<1x1x4x1x128xf32> to vector<4x1x128xf32>
    %368 = vector.broadcast %365 : f32 to vector<4x1x128xf32>
    %369 = arith.mulf %368, %367 : vector<4x1x128xf32>
    %370 = arith.addf %364, %369 : vector<4x1x128xf32>
    %c1_412 = arith.constant 1 : index
    %c12_413 = arith.constant 12 : index
    %371 = memref.load %arg5[%c1_412, %c12_413] : memref<4x16xf32, #tpu.memory_space<smem>>
    %c0_414 = arith.constant 0 : index
    %c12_415 = arith.constant 12 : index
    %c0_416 = arith.constant 0 : index
    %c0_417 = arith.constant 0 : index
    %c0_418 = arith.constant 0 : index
    %372 = vector.load %arg3[%c0_414, %c12_415, %c0_416, %c0_417, %c0_418] : memref<1x16x4x1x128xf32, #tpu.memory_space<vmem>>, vector<1x1x4x1x128xf32>
    %373 = vector.shape_cast %372 : vector<1x1x4x1x128xf32> to vector<4x1x128xf32>
    %374 = vector.broadcast %371 : f32 to vector<4x1x128xf32>
    %375 = arith.mulf %374, %373 : vector<4x1x128xf32>
    %376 = arith.addf %370, %375 : vector<4x1x128xf32>
    %c1_419 = arith.constant 1 : index
    %c13_420 = arith.constant 13 : index
    %377 = memref.load %arg5[%c1_419, %c13_420] : memref<4x16xf32, #tpu.memory_space<smem>>
    %c0_421 = arith.constant 0 : index
    %c13_422 = arith.constant 13 : index
    %c0_423 = arith.constant 0 : index
    %c0_424 = arith.constant 0 : index
    %c0_425 = arith.constant 0 : index
    %378 = vector.load %arg3[%c0_421, %c13_422, %c0_423, %c0_424, %c0_425] : memref<1x16x4x1x128xf32, #tpu.memory_space<vmem>>, vector<1x1x4x1x128xf32>
    %379 = vector.shape_cast %378 : vector<1x1x4x1x128xf32> to vector<4x1x128xf32>
    %380 = vector.broadcast %377 : f32 to vector<4x1x128xf32>
    %381 = arith.mulf %380, %379 : vector<4x1x128xf32>
    %382 = arith.addf %376, %381 : vector<4x1x128xf32>
    %c1_426 = arith.constant 1 : index
    %c14_427 = arith.constant 14 : index
    %383 = memref.load %arg5[%c1_426, %c14_427] : memref<4x16xf32, #tpu.memory_space<smem>>
    %c0_428 = arith.constant 0 : index
    %c14_429 = arith.constant 14 : index
    %c0_430 = arith.constant 0 : index
    %c0_431 = arith.constant 0 : index
    %c0_432 = arith.constant 0 : index
    %384 = vector.load %arg3[%c0_428, %c14_429, %c0_430, %c0_431, %c0_432] : memref<1x16x4x1x128xf32, #tpu.memory_space<vmem>>, vector<1x1x4x1x128xf32>
    %385 = vector.shape_cast %384 : vector<1x1x4x1x128xf32> to vector<4x1x128xf32>
    %386 = vector.broadcast %383 : f32 to vector<4x1x128xf32>
    %387 = arith.mulf %386, %385 : vector<4x1x128xf32>
    %388 = arith.addf %382, %387 : vector<4x1x128xf32>
    %c1_433 = arith.constant 1 : index
    %c15_434 = arith.constant 15 : index
    %389 = memref.load %arg5[%c1_433, %c15_434] : memref<4x16xf32, #tpu.memory_space<smem>>
    %c0_435 = arith.constant 0 : index
    %c15_436 = arith.constant 15 : index
    %c0_437 = arith.constant 0 : index
    %c0_438 = arith.constant 0 : index
    %c0_439 = arith.constant 0 : index
    %390 = vector.load %arg3[%c0_435, %c15_436, %c0_437, %c0_438, %c0_439] : memref<1x16x4x1x128xf32, #tpu.memory_space<vmem>>, vector<1x1x4x1x128xf32>
    %391 = vector.shape_cast %390 : vector<1x1x4x1x128xf32> to vector<4x1x128xf32>
    %392 = vector.broadcast %389 : f32 to vector<4x1x128xf32>
    %393 = arith.mulf %392, %391 : vector<4x1x128xf32>
    %394 = arith.addf %388, %393 : vector<4x1x128xf32>
    %395 = vector.broadcast %394 : vector<4x1x128xf32> to vector<4x8x128xf32>
    %396 = arith.addf %299, %395 : vector<4x8x128xf32>
    %c1_440 = arith.constant 1 : index
    %397 = memref.load %arg6[%c1_440] : memref<4xf32, #tpu.memory_space<smem>>
    %398 = vector.broadcast %397 : f32 to vector<4x8x128xf32>
    %399 = arith.addf %396, %398 : vector<4x8x128xf32>
    %cst_441 = arith.constant 5.000000e-01 : f32
    %400 = vector.broadcast %cst_441 : f32 to vector<4x8x128xf32>
    %401 = arith.mulf %400, %399 : vector<4x8x128xf32>
    %402 = math.tanh %401 : vector<4x8x128xf32>
    %cst_442 = arith.constant 5.000000e-01 : f32
    %403 = vector.broadcast %cst_442 : f32 to vector<4x8x128xf32>
    %404 = arith.mulf %403, %402 : vector<4x8x128xf32>
    %cst_443 = arith.constant 5.000000e-01 : f32
    %405 = vector.broadcast %cst_443 : f32 to vector<4x8x128xf32>
    %406 = arith.addf %404, %405 : vector<4x8x128xf32>
    %c0_444 = arith.constant 0 : index
    %c1_445 = arith.constant 1 : index
    %c0_446 = arith.constant 0 : index
    %c0_447 = arith.constant 0 : index
    %c0_448 = arith.constant 0 : index
    %407 = vector.load %arg7[%c0_444, %c1_445, %c0_446, %c0_447, %c0_448] : memref<1x4x4x8x128xf32, #tpu.memory_space<vmem>>, vector<1x1x4x8x128xf32>
    %408 = vector.shape_cast %407 : vector<1x1x4x8x128xf32> to vector<4x8x128xf32>
    %409 = vector.shape_cast %406 : vector<4x8x128xf32> to vector<1x1x4x8x128xf32>
    tpu.vector_store %arg7[%c0_444, %c1_445, %c0_446, %c0_447, %c0_448], %409 {strides = array<i32>} : memref<1x4x4x8x128xf32, #tpu.memory_space<vmem>>, vector<1x1x4x8x128xf32>,
    %c2_449 = arith.constant 2 : index
    %c0_450 = arith.constant 0 : index
    %410 = memref.load %arg4[%c2_449, %c0_450] : memref<4x16xf32, #tpu.memory_space<smem>>
    %c0_451 = arith.constant 0 : index
    %c0_452 = arith.constant 0 : index
    %c0_453 = arith.constant 0 : index
    %c0_454 = arith.constant 0 : index
    %c0_455 = arith.constant 0 : index
    %411 = vector.load %arg2[%c0_451, %c0_452, %c0_453, %c0_454, %c0_455] : memref<1x16x4x8x128xf32, #tpu.memory_space<vmem>>, vector<1x1x4x8x128xf32>
    %412 = vector.shape_cast %411 : vector<1x1x4x8x128xf32> to vector<4x8x128xf32>
    %413 = vector.broadcast %410 : f32 to vector<4x8x128xf32>
    %414 = arith.mulf %413, %412 : vector<4x8x128xf32>
    %c2_456 = arith.constant 2 : index
    %c1_457 = arith.constant 1 : index
    %415 = memref.load %arg4[%c2_456, %c1_457] : memref<4x16xf32, #tpu.memory_space<smem>>
    %c0_458 = arith.constant 0 : index
    %c1_459 = arith.constant 1 : index
    %c0_460 = arith.constant 0 : index
    %c0_461 = arith.constant 0 : index
    %c0_462 = arith.constant 0 : index
    %416 = vector.load %arg2[%c0_458, %c1_459, %c0_460, %c0_461, %c0_462] : memref<1x16x4x8x128xf32, #tpu.memory_space<vmem>>, vector<1x1x4x8x128xf32>
    %417 = vector.shape_cast %416 : vector<1x1x4x8x128xf32> to vector<4x8x128xf32>
    %418 = vector.broadcast %415 : f32 to vector<4x8x128xf32>
    %419 = arith.mulf %418, %417 : vector<4x8x128xf32>
    %420 = arith.addf %414, %419 : vector<4x8x128xf32>
    %c2_463 = arith.constant 2 : index
    %c2_464 = arith.constant 2 : index
    %421 = memref.load %arg4[%c2_463, %c2_464] : memref<4x16xf32, #tpu.memory_space<smem>>
    %c0_465 = arith.constant 0 : index
    %c2_466 = arith.constant 2 : index
    %c0_467 = arith.constant 0 : index
    %c0_468 = arith.constant 0 : index
    %c0_469 = arith.constant 0 : index
    %422 = vector.load %arg2[%c0_465, %c2_466, %c0_467, %c0_468, %c0_469] : memref<1x16x4x8x128xf32, #tpu.memory_space<vmem>>, vector<1x1x4x8x128xf32>
    %423 = vector.shape_cast %422 : vector<1x1x4x8x128xf32> to vector<4x8x128xf32>
    %424 = vector.broadcast %421 : f32 to vector<4x8x128xf32>
    %425 = arith.mulf %424, %423 : vector<4x8x128xf32>
    %426 = arith.addf %420, %425 : vector<4x8x128xf32>
    %c2_470 = arith.constant 2 : index
    %c3_471 = arith.constant 3 : index
    %427 = memref.load %arg4[%c2_470, %c3_471] : memref<4x16xf32, #tpu.memory_space<smem>>
    %c0_472 = arith.constant 0 : index
    %c3_473 = arith.constant 3 : index
    %c0_474 = arith.constant 0 : index
    %c0_475 = arith.constant 0 : index
    %c0_476 = arith.constant 0 : index
    %428 = vector.load %arg2[%c0_472, %c3_473, %c0_474, %c0_475, %c0_476] : memref<1x16x4x8x128xf32, #tpu.memory_space<vmem>>, vector<1x1x4x8x128xf32>
    %429 = vector.shape_cast %428 : vector<1x1x4x8x128xf32> to vector<4x8x128xf32>
    %430 = vector.broadcast %427 : f32 to vector<4x8x128xf32>
    %431 = arith.mulf %430, %429 : vector<4x8x128xf32>
    %432 = arith.addf %426, %431 : vector<4x8x128xf32>
    %c2_477 = arith.constant 2 : index
    %c4_478 = arith.constant 4 : index
    %433 = memref.load %arg4[%c2_477, %c4_478] : memref<4x16xf32, #tpu.memory_space<smem>>
    %c0_479 = arith.constant 0 : index
    %c4_480 = arith.constant 4 : index
    %c0_481 = arith.constant 0 : index
    %c0_482 = arith.constant 0 : index
    %c0_483 = arith.constant 0 : index
    %434 = vector.load %arg2[%c0_479, %c4_480, %c0_481, %c0_482, %c0_483] : memref<1x16x4x8x128xf32, #tpu.memory_space<vmem>>, vector<1x1x4x8x128xf32>
    %435 = vector.shape_cast %434 : vector<1x1x4x8x128xf32> to vector<4x8x128xf32>
    %436 = vector.broadcast %433 : f32 to vector<4x8x128xf32>
    %437 = arith.mulf %436, %435 : vector<4x8x128xf32>
    %438 = arith.addf %432, %437 : vector<4x8x128xf32>
    %c2_484 = arith.constant 2 : index
    %c5_485 = arith.constant 5 : index
    %439 = memref.load %arg4[%c2_484, %c5_485] : memref<4x16xf32, #tpu.memory_space<smem>>
    %c0_486 = arith.constant 0 : index
    %c5_487 = arith.constant 5 : index
    %c0_488 = arith.constant 0 : index
    %c0_489 = arith.constant 0 : index
    %c0_490 = arith.constant 0 : index
    %440 = vector.load %arg2[%c0_486, %c5_487, %c0_488, %c0_489, %c0_490] : memref<1x16x4x8x128xf32, #tpu.memory_space<vmem>>, vector<1x1x4x8x128xf32>
    %441 = vector.shape_cast %440 : vector<1x1x4x8x128xf32> to vector<4x8x128xf32>
    %442 = vector.broadcast %439 : f32 to vector<4x8x128xf32>
    %443 = arith.mulf %442, %441 : vector<4x8x128xf32>
    %444 = arith.addf %438, %443 : vector<4x8x128xf32>
    %c2_491 = arith.constant 2 : index
    %c6_492 = arith.constant 6 : index
    %445 = memref.load %arg4[%c2_491, %c6_492] : memref<4x16xf32, #tpu.memory_space<smem>>
    %c0_493 = arith.constant 0 : index
    %c6_494 = arith.constant 6 : index
    %c0_495 = arith.constant 0 : index
    %c0_496 = arith.constant 0 : index
    %c0_497 = arith.constant 0 : index
    %446 = vector.load %arg2[%c0_493, %c6_494, %c0_495, %c0_496, %c0_497] : memref<1x16x4x8x128xf32, #tpu.memory_space<vmem>>, vector<1x1x4x8x128xf32>
    %447 = vector.shape_cast %446 : vector<1x1x4x8x128xf32> to vector<4x8x128xf32>
    %448 = vector.broadcast %445 : f32 to vector<4x8x128xf32>
    %449 = arith.mulf %448, %447 : vector<4x8x128xf32>
    %450 = arith.addf %444, %449 : vector<4x8x128xf32>
    %c2_498 = arith.constant 2 : index
    %c7_499 = arith.constant 7 : index
    %451 = memref.load %arg4[%c2_498, %c7_499] : memref<4x16xf32, #tpu.memory_space<smem>>
    %c0_500 = arith.constant 0 : index
    %c7_501 = arith.constant 7 : index
    %c0_502 = arith.constant 0 : index
    %c0_503 = arith.constant 0 : index
    %c0_504 = arith.constant 0 : index
    %452 = vector.load %arg2[%c0_500, %c7_501, %c0_502, %c0_503, %c0_504] : memref<1x16x4x8x128xf32, #tpu.memory_space<vmem>>, vector<1x1x4x8x128xf32>
    %453 = vector.shape_cast %452 : vector<1x1x4x8x128xf32> to vector<4x8x128xf32>
    %454 = vector.broadcast %451 : f32 to vector<4x8x128xf32>
    %455 = arith.mulf %454, %453 : vector<4x8x128xf32>
    %456 = arith.addf %450, %455 : vector<4x8x128xf32>
    %c2_505 = arith.constant 2 : index
    %c8_506 = arith.constant 8 : index
    %457 = memref.load %arg4[%c2_505, %c8_506] : memref<4x16xf32, #tpu.memory_space<smem>>
    %c0_507 = arith.constant 0 : index
    %c8_508 = arith.constant 8 : index
    %c0_509 = arith.constant 0 : index
    %c0_510 = arith.constant 0 : index
    %c0_511 = arith.constant 0 : index
    %458 = vector.load %arg2[%c0_507, %c8_508, %c0_509, %c0_510, %c0_511] : memref<1x16x4x8x128xf32, #tpu.memory_space<vmem>>, vector<1x1x4x8x128xf32>
    %459 = vector.shape_cast %458 : vector<1x1x4x8x128xf32> to vector<4x8x128xf32>
    %460 = vector.broadcast %457 : f32 to vector<4x8x128xf32>
    %461 = arith.mulf %460, %459 : vector<4x8x128xf32>
    %462 = arith.addf %456, %461 : vector<4x8x128xf32>
    %c2_512 = arith.constant 2 : index
    %c9_513 = arith.constant 9 : index
    %463 = memref.load %arg4[%c2_512, %c9_513] : memref<4x16xf32, #tpu.memory_space<smem>>
    %c0_514 = arith.constant 0 : index
    %c9_515 = arith.constant 9 : index
    %c0_516 = arith.constant 0 : index
    %c0_517 = arith.constant 0 : index
    %c0_518 = arith.constant 0 : index
    %464 = vector.load %arg2[%c0_514, %c9_515, %c0_516, %c0_517, %c0_518] : memref<1x16x4x8x128xf32, #tpu.memory_space<vmem>>, vector<1x1x4x8x128xf32>
    %465 = vector.shape_cast %464 : vector<1x1x4x8x128xf32> to vector<4x8x128xf32>
    %466 = vector.broadcast %463 : f32 to vector<4x8x128xf32>
    %467 = arith.mulf %466, %465 : vector<4x8x128xf32>
    %468 = arith.addf %462, %467 : vector<4x8x128xf32>
    %c2_519 = arith.constant 2 : index
    %c10_520 = arith.constant 10 : index
    %469 = memref.load %arg4[%c2_519, %c10_520] : memref<4x16xf32, #tpu.memory_space<smem>>
    %c0_521 = arith.constant 0 : index
    %c10_522 = arith.constant 10 : index
    %c0_523 = arith.constant 0 : index
    %c0_524 = arith.constant 0 : index
    %c0_525 = arith.constant 0 : index
    %470 = vector.load %arg2[%c0_521, %c10_522, %c0_523, %c0_524, %c0_525] : memref<1x16x4x8x128xf32, #tpu.memory_space<vmem>>, vector<1x1x4x8x128xf32>
    %471 = vector.shape_cast %470 : vector<1x1x4x8x128xf32> to vector<4x8x128xf32>
    %472 = vector.broadcast %469 : f32 to vector<4x8x128xf32>
    %473 = arith.mulf %472, %471 : vector<4x8x128xf32>
    %474 = arith.addf %468, %473 : vector<4x8x128xf32>
    %c2_526 = arith.constant 2 : index
    %c11_527 = arith.constant 11 : index
    %475 = memref.load %arg4[%c2_526, %c11_527] : memref<4x16xf32, #tpu.memory_space<smem>>
    %c0_528 = arith.constant 0 : index
    %c11_529 = arith.constant 11 : index
    %c0_530 = arith.constant 0 : index
    %c0_531 = arith.constant 0 : index
    %c0_532 = arith.constant 0 : index
    %476 = vector.load %arg2[%c0_528, %c11_529, %c0_530, %c0_531, %c0_532] : memref<1x16x4x8x128xf32, #tpu.memory_space<vmem>>, vector<1x1x4x8x128xf32>
    %477 = vector.shape_cast %476 : vector<1x1x4x8x128xf32> to vector<4x8x128xf32>
    %478 = vector.broadcast %475 : f32 to vector<4x8x128xf32>
    %479 = arith.mulf %478, %477 : vector<4x8x128xf32>
    %480 = arith.addf %474, %479 : vector<4x8x128xf32>
    %c2_533 = arith.constant 2 : index
    %c12_534 = arith.constant 12 : index
    %481 = memref.load %arg4[%c2_533, %c12_534] : memref<4x16xf32, #tpu.memory_space<smem>>
    %c0_535 = arith.constant 0 : index
    %c12_536 = arith.constant 12 : index
    %c0_537 = arith.constant 0 : index
    %c0_538 = arith.constant 0 : index
    %c0_539 = arith.constant 0 : index
    %482 = vector.load %arg2[%c0_535, %c12_536, %c0_537, %c0_538, %c0_539] : memref<1x16x4x8x128xf32, #tpu.memory_space<vmem>>, vector<1x1x4x8x128xf32>
    %483 = vector.shape_cast %482 : vector<1x1x4x8x128xf32> to vector<4x8x128xf32>
    %484 = vector.broadcast %481 : f32 to vector<4x8x128xf32>
    %485 = arith.mulf %484, %483 : vector<4x8x128xf32>
    %486 = arith.addf %480, %485 : vector<4x8x128xf32>
    %c2_540 = arith.constant 2 : index
    %c13_541 = arith.constant 13 : index
    %487 = memref.load %arg4[%c2_540, %c13_541] : memref<4x16xf32, #tpu.memory_space<smem>>
    %c0_542 = arith.constant 0 : index
    %c13_543 = arith.constant 13 : index
    %c0_544 = arith.constant 0 : index
    %c0_545 = arith.constant 0 : index
    %c0_546 = arith.constant 0 : index
    %488 = vector.load %arg2[%c0_542, %c13_543, %c0_544, %c0_545, %c0_546] : memref<1x16x4x8x128xf32, #tpu.memory_space<vmem>>, vector<1x1x4x8x128xf32>
    %489 = vector.shape_cast %488 : vector<1x1x4x8x128xf32> to vector<4x8x128xf32>
    %490 = vector.broadcast %487 : f32 to vector<4x8x128xf32>
    %491 = arith.mulf %490, %489 : vector<4x8x128xf32>
    %492 = arith.addf %486, %491 : vector<4x8x128xf32>
    %c2_547 = arith.constant 2 : index
    %c14_548 = arith.constant 14 : index
    %493 = memref.load %arg4[%c2_547, %c14_548] : memref<4x16xf32, #tpu.memory_space<smem>>
    %c0_549 = arith.constant 0 : index
    %c14_550 = arith.constant 14 : index
    %c0_551 = arith.constant 0 : index
    %c0_552 = arith.constant 0 : index
    %c0_553 = arith.constant 0 : index
    %494 = vector.load %arg2[%c0_549, %c14_550, %c0_551, %c0_552, %c0_553] : memref<1x16x4x8x128xf32, #tpu.memory_space<vmem>>, vector<1x1x4x8x128xf32>
    %495 = vector.shape_cast %494 : vector<1x1x4x8x128xf32> to vector<4x8x128xf32>
    %496 = vector.broadcast %493 : f32 to vector<4x8x128xf32>
    %497 = arith.mulf %496, %495 : vector<4x8x128xf32>
    %498 = arith.addf %492, %497 : vector<4x8x128xf32>
    %c2_554 = arith.constant 2 : index
    %c15_555 = arith.constant 15 : index
    %499 = memref.load %arg4[%c2_554, %c15_555] : memref<4x16xf32, #tpu.memory_space<smem>>
    %c0_556 = arith.constant 0 : index
    %c15_557 = arith.constant 15 : index
    %c0_558 = arith.constant 0 : index
    %c0_559 = arith.constant 0 : index
    %c0_560 = arith.constant 0 : index
    %500 = vector.load %arg2[%c0_556, %c15_557, %c0_558, %c0_559, %c0_560] : memref<1x16x4x8x128xf32, #tpu.memory_space<vmem>>, vector<1x1x4x8x128xf32>
    %501 = vector.shape_cast %500 : vector<1x1x4x8x128xf32> to vector<4x8x128xf32>
    %502 = vector.broadcast %499 : f32 to vector<4x8x128xf32>
    %503 = arith.mulf %502, %501 : vector<4x8x128xf32>
    %504 = arith.addf %498, %503 : vector<4x8x128xf32>
    %c2_561 = arith.constant 2 : index
    %c0_562 = arith.constant 0 : index
    %505 = memref.load %arg5[%c2_561, %c0_562] : memref<4x16xf32, #tpu.memory_space<smem>>
    %c0_563 = arith.constant 0 : index
    %c0_564 = arith.constant 0 : index
    %c0_565 = arith.constant 0 : index
    %c0_566 = arith.constant 0 : index
    %c0_567 = arith.constant 0 : index
    %506 = vector.load %arg3[%c0_563, %c0_564, %c0_565, %c0_566, %c0_567] : memref<1x16x4x1x128xf32, #tpu.memory_space<vmem>>, vector<1x1x4x1x128xf32>
    %507 = vector.shape_cast %506 : vector<1x1x4x1x128xf32> to vector<4x1x128xf32>
    %508 = vector.broadcast %505 : f32 to vector<4x1x128xf32>
    %509 = arith.mulf %508, %507 : vector<4x1x128xf32>
    %c2_568 = arith.constant 2 : index
    %c1_569 = arith.constant 1 : index
    %510 = memref.load %arg5[%c2_568, %c1_569] : memref<4x16xf32, #tpu.memory_space<smem>>
    %c0_570 = arith.constant 0 : index
    %c1_571 = arith.constant 1 : index
    %c0_572 = arith.constant 0 : index
    %c0_573 = arith.constant 0 : index
    %c0_574 = arith.constant 0 : index
    %511 = vector.load %arg3[%c0_570, %c1_571, %c0_572, %c0_573, %c0_574] : memref<1x16x4x1x128xf32, #tpu.memory_space<vmem>>, vector<1x1x4x1x128xf32>
    %512 = vector.shape_cast %511 : vector<1x1x4x1x128xf32> to vector<4x1x128xf32>
    %513 = vector.broadcast %510 : f32 to vector<4x1x128xf32>
    %514 = arith.mulf %513, %512 : vector<4x1x128xf32>
    %515 = arith.addf %509, %514 : vector<4x1x128xf32>
    %c2_575 = arith.constant 2 : index
    %c2_576 = arith.constant 2 : index
    %516 = memref.load %arg5[%c2_575, %c2_576] : memref<4x16xf32, #tpu.memory_space<smem>>
    %c0_577 = arith.constant 0 : index
    %c2_578 = arith.constant 2 : index
    %c0_579 = arith.constant 0 : index
    %c0_580 = arith.constant 0 : index
    %c0_581 = arith.constant 0 : index
    %517 = vector.load %arg3[%c0_577, %c2_578, %c0_579, %c0_580, %c0_581] : memref<1x16x4x1x128xf32, #tpu.memory_space<vmem>>, vector<1x1x4x1x128xf32>
    %518 = vector.shape_cast %517 : vector<1x1x4x1x128xf32> to vector<4x1x128xf32>
    %519 = vector.broadcast %516 : f32 to vector<4x1x128xf32>
    %520 = arith.mulf %519, %518 : vector<4x1x128xf32>
    %521 = arith.addf %515, %520 : vector<4x1x128xf32>
    %c2_582 = arith.constant 2 : index
    %c3_583 = arith.constant 3 : index
    %522 = memref.load %arg5[%c2_582, %c3_583] : memref<4x16xf32, #tpu.memory_space<smem>>
    %c0_584 = arith.constant 0 : index
    %c3_585 = arith.constant 3 : index
    %c0_586 = arith.constant 0 : index
    %c0_587 = arith.constant 0 : index
    %c0_588 = arith.constant 0 : index
    %523 = vector.load %arg3[%c0_584, %c3_585, %c0_586, %c0_587, %c0_588] : memref<1x16x4x1x128xf32, #tpu.memory_space<vmem>>, vector<1x1x4x1x128xf32>
    %524 = vector.shape_cast %523 : vector<1x1x4x1x128xf32> to vector<4x1x128xf32>
    %525 = vector.broadcast %522 : f32 to vector<4x1x128xf32>
    %526 = arith.mulf %525, %524 : vector<4x1x128xf32>
    %527 = arith.addf %521, %526 : vector<4x1x128xf32>
    %c2_589 = arith.constant 2 : index
    %c4_590 = arith.constant 4 : index
    %528 = memref.load %arg5[%c2_589, %c4_590] : memref<4x16xf32, #tpu.memory_space<smem>>
    %c0_591 = arith.constant 0 : index
    %c4_592 = arith.constant 4 : index
    %c0_593 = arith.constant 0 : index
    %c0_594 = arith.constant 0 : index
    %c0_595 = arith.constant 0 : index
    %529 = vector.load %arg3[%c0_591, %c4_592, %c0_593, %c0_594, %c0_595] : memref<1x16x4x1x128xf32, #tpu.memory_space<vmem>>, vector<1x1x4x1x128xf32>
    %530 = vector.shape_cast %529 : vector<1x1x4x1x128xf32> to vector<4x1x128xf32>
    %531 = vector.broadcast %528 : f32 to vector<4x1x128xf32>
    %532 = arith.mulf %531, %530 : vector<4x1x128xf32>
    %533 = arith.addf %527, %532 : vector<4x1x128xf32>
    %c2_596 = arith.constant 2 : index
    %c5_597 = arith.constant 5 : index
    %534 = memref.load %arg5[%c2_596, %c5_597] : memref<4x16xf32, #tpu.memory_space<smem>>
    %c0_598 = arith.constant 0 : index
    %c5_599 = arith.constant 5 : index
    %c0_600 = arith.constant 0 : index
    %c0_601 = arith.constant 0 : index
    %c0_602 = arith.constant 0 : index
    %535 = vector.load %arg3[%c0_598, %c5_599, %c0_600, %c0_601, %c0_602] : memref<1x16x4x1x128xf32, #tpu.memory_space<vmem>>, vector<1x1x4x1x128xf32>
    %536 = vector.shape_cast %535 : vector<1x1x4x1x128xf32> to vector<4x1x128xf32>
    %537 = vector.broadcast %534 : f32 to vector<4x1x128xf32>
    %538 = arith.mulf %537, %536 : vector<4x1x128xf32>
    %539 = arith.addf %533, %538 : vector<4x1x128xf32>
    %c2_603 = arith.constant 2 : index
    %c6_604 = arith.constant 6 : index
    %540 = memref.load %arg5[%c2_603, %c6_604] : memref<4x16xf32, #tpu.memory_space<smem>>
    %c0_605 = arith.constant 0 : index
    %c6_606 = arith.constant 6 : index
    %c0_607 = arith.constant 0 : index
    %c0_608 = arith.constant 0 : index
    %c0_609 = arith.constant 0 : index
    %541 = vector.load %arg3[%c0_605, %c6_606, %c0_607, %c0_608, %c0_609] : memref<1x16x4x1x128xf32, #tpu.memory_space<vmem>>, vector<1x1x4x1x128xf32>
    %542 = vector.shape_cast %541 : vector<1x1x4x1x128xf32> to vector<4x1x128xf32>
    %543 = vector.broadcast %540 : f32 to vector<4x1x128xf32>
    %544 = arith.mulf %543, %542 : vector<4x1x128xf32>
    %545 = arith.addf %539, %544 : vector<4x1x128xf32>
    %c2_610 = arith.constant 2 : index
    %c7_611 = arith.constant 7 : index
    %546 = memref.load %arg5[%c2_610, %c7_611] : memref<4x16xf32, #tpu.memory_space<smem>>
    %c0_612 = arith.constant 0 : index
    %c7_613 = arith.constant 7 : index
    %c0_614 = arith.constant 0 : index
    %c0_615 = arith.constant 0 : index
    %c0_616 = arith.constant 0 : index
    %547 = vector.load %arg3[%c0_612, %c7_613, %c0_614, %c0_615, %c0_616] : memref<1x16x4x1x128xf32, #tpu.memory_space<vmem>>, vector<1x1x4x1x128xf32>
    %548 = vector.shape_cast %547 : vector<1x1x4x1x128xf32> to vector<4x1x128xf32>
    %549 = vector.broadcast %546 : f32 to vector<4x1x128xf32>
    %550 = arith.mulf %549, %548 : vector<4x1x128xf32>
    %551 = arith.addf %545, %550 : vector<4x1x128xf32>
    %c2_617 = arith.constant 2 : index
    %c8_618 = arith.constant 8 : index
    %552 = memref.load %arg5[%c2_617, %c8_618] : memref<4x16xf32, #tpu.memory_space<smem>>
    %c0_619 = arith.constant 0 : index
    %c8_620 = arith.constant 8 : index
    %c0_621 = arith.constant 0 : index
    %c0_622 = arith.constant 0 : index
    %c0_623 = arith.constant 0 : index
    %553 = vector.load %arg3[%c0_619, %c8_620, %c0_621, %c0_622, %c0_623] : memref<1x16x4x1x128xf32, #tpu.memory_space<vmem>>, vector<1x1x4x1x128xf32>
    %554 = vector.shape_cast %553 : vector<1x1x4x1x128xf32> to vector<4x1x128xf32>
    %555 = vector.broadcast %552 : f32 to vector<4x1x128xf32>
    %556 = arith.mulf %555, %554 : vector<4x1x128xf32>
    %557 = arith.addf %551, %556 : vector<4x1x128xf32>
    %c2_624 = arith.constant 2 : index
    %c9_625 = arith.constant 9 : index
    %558 = memref.load %arg5[%c2_624, %c9_625] : memref<4x16xf32, #tpu.memory_space<smem>>
    %c0_626 = arith.constant 0 : index
    %c9_627 = arith.constant 9 : index
    %c0_628 = arith.constant 0 : index
    %c0_629 = arith.constant 0 : index
    %c0_630 = arith.constant 0 : index
    %559 = vector.load %arg3[%c0_626, %c9_627, %c0_628, %c0_629, %c0_630] : memref<1x16x4x1x128xf32, #tpu.memory_space<vmem>>, vector<1x1x4x1x128xf32>
    %560 = vector.shape_cast %559 : vector<1x1x4x1x128xf32> to vector<4x1x128xf32>
    %561 = vector.broadcast %558 : f32 to vector<4x1x128xf32>
    %562 = arith.mulf %561, %560 : vector<4x1x128xf32>
    %563 = arith.addf %557, %562 : vector<4x1x128xf32>
    %c2_631 = arith.constant 2 : index
    %c10_632 = arith.constant 10 : index
    %564 = memref.load %arg5[%c2_631, %c10_632] : memref<4x16xf32, #tpu.memory_space<smem>>
    %c0_633 = arith.constant 0 : index
    %c10_634 = arith.constant 10 : index
    %c0_635 = arith.constant 0 : index
    %c0_636 = arith.constant 0 : index
    %c0_637 = arith.constant 0 : index
    %565 = vector.load %arg3[%c0_633, %c10_634, %c0_635, %c0_636, %c0_637] : memref<1x16x4x1x128xf32, #tpu.memory_space<vmem>>, vector<1x1x4x1x128xf32>
    %566 = vector.shape_cast %565 : vector<1x1x4x1x128xf32> to vector<4x1x128xf32>
    %567 = vector.broadcast %564 : f32 to vector<4x1x128xf32>
    %568 = arith.mulf %567, %566 : vector<4x1x128xf32>
    %569 = arith.addf %563, %568 : vector<4x1x128xf32>
    %c2_638 = arith.constant 2 : index
    %c11_639 = arith.constant 11 : index
    %570 = memref.load %arg5[%c2_638, %c11_639] : memref<4x16xf32, #tpu.memory_space<smem>>
    %c0_640 = arith.constant 0 : index
    %c11_641 = arith.constant 11 : index
    %c0_642 = arith.constant 0 : index
    %c0_643 = arith.constant 0 : index
    %c0_644 = arith.constant 0 : index
    %571 = vector.load %arg3[%c0_640, %c11_641, %c0_642, %c0_643, %c0_644] : memref<1x16x4x1x128xf32, #tpu.memory_space<vmem>>, vector<1x1x4x1x128xf32>
    %572 = vector.shape_cast %571 : vector<1x1x4x1x128xf32> to vector<4x1x128xf32>
    %573 = vector.broadcast %570 : f32 to vector<4x1x128xf32>
    %574 = arith.mulf %573, %572 : vector<4x1x128xf32>
    %575 = arith.addf %569, %574 : vector<4x1x128xf32>
    %c2_645 = arith.constant 2 : index
    %c12_646 = arith.constant 12 : index
    %576 = memref.load %arg5[%c2_645, %c12_646] : memref<4x16xf32, #tpu.memory_space<smem>>
    %c0_647 = arith.constant 0 : index
    %c12_648 = arith.constant 12 : index
    %c0_649 = arith.constant 0 : index
    %c0_650 = arith.constant 0 : index
    %c0_651 = arith.constant 0 : index
    %577 = vector.load %arg3[%c0_647, %c12_648, %c0_649, %c0_650, %c0_651] : memref<1x16x4x1x128xf32, #tpu.memory_space<vmem>>, vector<1x1x4x1x128xf32>
    %578 = vector.shape_cast %577 : vector<1x1x4x1x128xf32> to vector<4x1x128xf32>
    %579 = vector.broadcast %576 : f32 to vector<4x1x128xf32>
    %580 = arith.mulf %579, %578 : vector<4x1x128xf32>
    %581 = arith.addf %575, %580 : vector<4x1x128xf32>
    %c2_652 = arith.constant 2 : index
    %c13_653 = arith.constant 13 : index
    %582 = memref.load %arg5[%c2_652, %c13_653] : memref<4x16xf32, #tpu.memory_space<smem>>
    %c0_654 = arith.constant 0 : index
    %c13_655 = arith.constant 13 : index
    %c0_656 = arith.constant 0 : index
    %c0_657 = arith.constant 0 : index
    %c0_658 = arith.constant 0 : index
    %583 = vector.load %arg3[%c0_654, %c13_655, %c0_656, %c0_657, %c0_658] : memref<1x16x4x1x128xf32, #tpu.memory_space<vmem>>, vector<1x1x4x1x128xf32>
    %584 = vector.shape_cast %583 : vector<1x1x4x1x128xf32> to vector<4x1x128xf32>
    %585 = vector.broadcast %582 : f32 to vector<4x1x128xf32>
    %586 = arith.mulf %585, %584 : vector<4x1x128xf32>
    %587 = arith.addf %581, %586 : vector<4x1x128xf32>
    %c2_659 = arith.constant 2 : index
    %c14_660 = arith.constant 14 : index
    %588 = memref.load %arg5[%c2_659, %c14_660] : memref<4x16xf32, #tpu.memory_space<smem>>
    %c0_661 = arith.constant 0 : index
    %c14_662 = arith.constant 14 : index
    %c0_663 = arith.constant 0 : index
    %c0_664 = arith.constant 0 : index
    %c0_665 = arith.constant 0 : index
    %589 = vector.load %arg3[%c0_661, %c14_662, %c0_663, %c0_664, %c0_665] : memref<1x16x4x1x128xf32, #tpu.memory_space<vmem>>, vector<1x1x4x1x128xf32>
    %590 = vector.shape_cast %589 : vector<1x1x4x1x128xf32> to vector<4x1x128xf32>
    %591 = vector.broadcast %588 : f32 to vector<4x1x128xf32>
    %592 = arith.mulf %591, %590 : vector<4x1x128xf32>
    %593 = arith.addf %587, %592 : vector<4x1x128xf32>
    %c2_666 = arith.constant 2 : index
    %c15_667 = arith.constant 15 : index
    %594 = memref.load %arg5[%c2_666, %c15_667] : memref<4x16xf32, #tpu.memory_space<smem>>
    %c0_668 = arith.constant 0 : index
    %c15_669 = arith.constant 15 : index
    %c0_670 = arith.constant 0 : index
    %c0_671 = arith.constant 0 : index
    %c0_672 = arith.constant 0 : index
    %595 = vector.load %arg3[%c0_668, %c15_669, %c0_670, %c0_671, %c0_672] : memref<1x16x4x1x128xf32, #tpu.memory_space<vmem>>, vector<1x1x4x1x128xf32>
    %596 = vector.shape_cast %595 : vector<1x1x4x1x128xf32> to vector<4x1x128xf32>
    %597 = vector.broadcast %594 : f32 to vector<4x1x128xf32>
    %598 = arith.mulf %597, %596 : vector<4x1x128xf32>
    %599 = arith.addf %593, %598 : vector<4x1x128xf32>
    %600 = vector.broadcast %599 : vector<4x1x128xf32> to vector<4x8x128xf32>
    %601 = arith.addf %504, %600 : vector<4x8x128xf32>
    %c2_673 = arith.constant 2 : index
    %602 = memref.load %arg6[%c2_673] : memref<4xf32, #tpu.memory_space<smem>>
    %603 = vector.broadcast %602 : f32 to vector<4x8x128xf32>
    %604 = arith.addf %601, %603 : vector<4x8x128xf32>
    %cst_674 = arith.constant 5.000000e-01 : f32
    %605 = vector.broadcast %cst_674 : f32 to vector<4x8x128xf32>
    %606 = arith.mulf %605, %604 : vector<4x8x128xf32>
    %607 = math.tanh %606 : vector<4x8x128xf32>
    %cst_675 = arith.constant 5.000000e-01 : f32
    %608 = vector.broadcast %cst_675 : f32 to vector<4x8x128xf32>
    %609 = arith.mulf %608, %607 : vector<4x8x128xf32>
    %cst_676 = arith.constant 5.000000e-01 : f32
    %610 = vector.broadcast %cst_676 : f32 to vector<4x8x128xf32>
    %611 = arith.addf %609, %610 : vector<4x8x128xf32>
    %c0_677 = arith.constant 0 : index
    %c2_678 = arith.constant 2 : index
    %c0_679 = arith.constant 0 : index
    %c0_680 = arith.constant 0 : index
    %c0_681 = arith.constant 0 : index
    %612 = vector.load %arg7[%c0_677, %c2_678, %c0_679, %c0_680, %c0_681] : memref<1x4x4x8x128xf32, #tpu.memory_space<vmem>>, vector<1x1x4x8x128xf32>
    %613 = vector.shape_cast %612 : vector<1x1x4x8x128xf32> to vector<4x8x128xf32>
    %614 = vector.shape_cast %611 : vector<4x8x128xf32> to vector<1x1x4x8x128xf32>
    tpu.vector_store %arg7[%c0_677, %c2_678, %c0_679, %c0_680, %c0_681], %614 {strides = array<i32>} : memref<1x4x4x8x128xf32, #tpu.memory_space<vmem>>, vector<1x1x4x8x128xf32>,
    %c3_682 = arith.constant 3 : index
    %c0_683 = arith.constant 0 : index
    %615 = memref.load %arg4[%c3_682, %c0_683] : memref<4x16xf32, #tpu.memory_space<smem>>
    %c0_684 = arith.constant 0 : index
    %c0_685 = arith.constant 0 : index
    %c0_686 = arith.constant 0 : index
    %c0_687 = arith.constant 0 : index
    %c0_688 = arith.constant 0 : index
    %616 = vector.load %arg2[%c0_684, %c0_685, %c0_686, %c0_687, %c0_688] : memref<1x16x4x8x128xf32, #tpu.memory_space<vmem>>, vector<1x1x4x8x128xf32>
    %617 = vector.shape_cast %616 : vector<1x1x4x8x128xf32> to vector<4x8x128xf32>
    %618 = vector.broadcast %615 : f32 to vector<4x8x128xf32>
    %619 = arith.mulf %618, %617 : vector<4x8x128xf32>
    %c3_689 = arith.constant 3 : index
    %c1_690 = arith.constant 1 : index
    %620 = memref.load %arg4[%c3_689, %c1_690] : memref<4x16xf32, #tpu.memory_space<smem>>
    %c0_691 = arith.constant 0 : index
    %c1_692 = arith.constant 1 : index
    %c0_693 = arith.constant 0 : index
    %c0_694 = arith.constant 0 : index
    %c0_695 = arith.constant 0 : index
    %621 = vector.load %arg2[%c0_691, %c1_692, %c0_693, %c0_694, %c0_695] : memref<1x16x4x8x128xf32, #tpu.memory_space<vmem>>, vector<1x1x4x8x128xf32>
    %622 = vector.shape_cast %621 : vector<1x1x4x8x128xf32> to vector<4x8x128xf32>
    %623 = vector.broadcast %620 : f32 to vector<4x8x128xf32>
    %624 = arith.mulf %623, %622 : vector<4x8x128xf32>
    %625 = arith.addf %619, %624 : vector<4x8x128xf32>
    %c3_696 = arith.constant 3 : index
    %c2_697 = arith.constant 2 : index
    %626 = memref.load %arg4[%c3_696, %c2_697] : memref<4x16xf32, #tpu.memory_space<smem>>
    %c0_698 = arith.constant 0 : index
    %c2_699 = arith.constant 2 : index
    %c0_700 = arith.constant 0 : index
    %c0_701 = arith.constant 0 : index
    %c0_702 = arith.constant 0 : index
    %627 = vector.load %arg2[%c0_698, %c2_699, %c0_700, %c0_701, %c0_702] : memref<1x16x4x8x128xf32, #tpu.memory_space<vmem>>, vector<1x1x4x8x128xf32>
    %628 = vector.shape_cast %627 : vector<1x1x4x8x128xf32> to vector<4x8x128xf32>
    %629 = vector.broadcast %626 : f32 to vector<4x8x128xf32>
    %630 = arith.mulf %629, %628 : vector<4x8x128xf32>
    %631 = arith.addf %625, %630 : vector<4x8x128xf32>
    %c3_703 = arith.constant 3 : index
    %c3_704 = arith.constant 3 : index
    %632 = memref.load %arg4[%c3_703, %c3_704] : memref<4x16xf32, #tpu.memory_space<smem>>
    %c0_705 = arith.constant 0 : index
    %c3_706 = arith.constant 3 : index
    %c0_707 = arith.constant 0 : index
    %c0_708 = arith.constant 0 : index
    %c0_709 = arith.constant 0 : index
    %633 = vector.load %arg2[%c0_705, %c3_706, %c0_707, %c0_708, %c0_709] : memref<1x16x4x8x128xf32, #tpu.memory_space<vmem>>, vector<1x1x4x8x128xf32>
    %634 = vector.shape_cast %633 : vector<1x1x4x8x128xf32> to vector<4x8x128xf32>
    %635 = vector.broadcast %632 : f32 to vector<4x8x128xf32>
    %636 = arith.mulf %635, %634 : vector<4x8x128xf32>
    %637 = arith.addf %631, %636 : vector<4x8x128xf32>
    %c3_710 = arith.constant 3 : index
    %c4_711 = arith.constant 4 : index
    %638 = memref.load %arg4[%c3_710, %c4_711] : memref<4x16xf32, #tpu.memory_space<smem>>
    %c0_712 = arith.constant 0 : index
    %c4_713 = arith.constant 4 : index
    %c0_714 = arith.constant 0 : index
    %c0_715 = arith.constant 0 : index
    %c0_716 = arith.constant 0 : index
    %639 = vector.load %arg2[%c0_712, %c4_713, %c0_714, %c0_715, %c0_716] : memref<1x16x4x8x128xf32, #tpu.memory_space<vmem>>, vector<1x1x4x8x128xf32>
    %640 = vector.shape_cast %639 : vector<1x1x4x8x128xf32> to vector<4x8x128xf32>
    %641 = vector.broadcast %638 : f32 to vector<4x8x128xf32>
    %642 = arith.mulf %641, %640 : vector<4x8x128xf32>
    %643 = arith.addf %637, %642 : vector<4x8x128xf32>
    %c3_717 = arith.constant 3 : index
    %c5_718 = arith.constant 5 : index
    %644 = memref.load %arg4[%c3_717, %c5_718] : memref<4x16xf32, #tpu.memory_space<smem>>
    %c0_719 = arith.constant 0 : index
    %c5_720 = arith.constant 5 : index
    %c0_721 = arith.constant 0 : index
    %c0_722 = arith.constant 0 : index
    %c0_723 = arith.constant 0 : index
    %645 = vector.load %arg2[%c0_719, %c5_720, %c0_721, %c0_722, %c0_723] : memref<1x16x4x8x128xf32, #tpu.memory_space<vmem>>, vector<1x1x4x8x128xf32>
    %646 = vector.shape_cast %645 : vector<1x1x4x8x128xf32> to vector<4x8x128xf32>
    %647 = vector.broadcast %644 : f32 to vector<4x8x128xf32>
    %648 = arith.mulf %647, %646 : vector<4x8x128xf32>
    %649 = arith.addf %643, %648 : vector<4x8x128xf32>
    %c3_724 = arith.constant 3 : index
    %c6_725 = arith.constant 6 : index
    %650 = memref.load %arg4[%c3_724, %c6_725] : memref<4x16xf32, #tpu.memory_space<smem>>
    %c0_726 = arith.constant 0 : index
    %c6_727 = arith.constant 6 : index
    %c0_728 = arith.constant 0 : index
    %c0_729 = arith.constant 0 : index
    %c0_730 = arith.constant 0 : index
    %651 = vector.load %arg2[%c0_726, %c6_727, %c0_728, %c0_729, %c0_730] : memref<1x16x4x8x128xf32, #tpu.memory_space<vmem>>, vector<1x1x4x8x128xf32>
    %652 = vector.shape_cast %651 : vector<1x1x4x8x128xf32> to vector<4x8x128xf32>
    %653 = vector.broadcast %650 : f32 to vector<4x8x128xf32>
    %654 = arith.mulf %653, %652 : vector<4x8x128xf32>
    %655 = arith.addf %649, %654 : vector<4x8x128xf32>
    %c3_731 = arith.constant 3 : index
    %c7_732 = arith.constant 7 : index
    %656 = memref.load %arg4[%c3_731, %c7_732] : memref<4x16xf32, #tpu.memory_space<smem>>
    %c0_733 = arith.constant 0 : index
    %c7_734 = arith.constant 7 : index
    %c0_735 = arith.constant 0 : index
    %c0_736 = arith.constant 0 : index
    %c0_737 = arith.constant 0 : index
    %657 = vector.load %arg2[%c0_733, %c7_734, %c0_735, %c0_736, %c0_737] : memref<1x16x4x8x128xf32, #tpu.memory_space<vmem>>, vector<1x1x4x8x128xf32>
    %658 = vector.shape_cast %657 : vector<1x1x4x8x128xf32> to vector<4x8x128xf32>
    %659 = vector.broadcast %656 : f32 to vector<4x8x128xf32>
    %660 = arith.mulf %659, %658 : vector<4x8x128xf32>
    %661 = arith.addf %655, %660 : vector<4x8x128xf32>
    %c3_738 = arith.constant 3 : index
    %c8_739 = arith.constant 8 : index
    %662 = memref.load %arg4[%c3_738, %c8_739] : memref<4x16xf32, #tpu.memory_space<smem>>
    %c0_740 = arith.constant 0 : index
    %c8_741 = arith.constant 8 : index
    %c0_742 = arith.constant 0 : index
    %c0_743 = arith.constant 0 : index
    %c0_744 = arith.constant 0 : index
    %663 = vector.load %arg2[%c0_740, %c8_741, %c0_742, %c0_743, %c0_744] : memref<1x16x4x8x128xf32, #tpu.memory_space<vmem>>, vector<1x1x4x8x128xf32>
    %664 = vector.shape_cast %663 : vector<1x1x4x8x128xf32> to vector<4x8x128xf32>
    %665 = vector.broadcast %662 : f32 to vector<4x8x128xf32>
    %666 = arith.mulf %665, %664 : vector<4x8x128xf32>
    %667 = arith.addf %661, %666 : vector<4x8x128xf32>
    %c3_745 = arith.constant 3 : index
    %c9_746 = arith.constant 9 : index
    %668 = memref.load %arg4[%c3_745, %c9_746] : memref<4x16xf32, #tpu.memory_space<smem>>
    %c0_747 = arith.constant 0 : index
    %c9_748 = arith.constant 9 : index
    %c0_749 = arith.constant 0 : index
    %c0_750 = arith.constant 0 : index
    %c0_751 = arith.constant 0 : index
    %669 = vector.load %arg2[%c0_747, %c9_748, %c0_749, %c0_750, %c0_751] : memref<1x16x4x8x128xf32, #tpu.memory_space<vmem>>, vector<1x1x4x8x128xf32>
    %670 = vector.shape_cast %669 : vector<1x1x4x8x128xf32> to vector<4x8x128xf32>
    %671 = vector.broadcast %668 : f32 to vector<4x8x128xf32>
    %672 = arith.mulf %671, %670 : vector<4x8x128xf32>
    %673 = arith.addf %667, %672 : vector<4x8x128xf32>
    %c3_752 = arith.constant 3 : index
    %c10_753 = arith.constant 10 : index
    %674 = memref.load %arg4[%c3_752, %c10_753] : memref<4x16xf32, #tpu.memory_space<smem>>
    %c0_754 = arith.constant 0 : index
    %c10_755 = arith.constant 10 : index
    %c0_756 = arith.constant 0 : index
    %c0_757 = arith.constant 0 : index
    %c0_758 = arith.constant 0 : index
    %675 = vector.load %arg2[%c0_754, %c10_755, %c0_756, %c0_757, %c0_758] : memref<1x16x4x8x128xf32, #tpu.memory_space<vmem>>, vector<1x1x4x8x128xf32>
    %676 = vector.shape_cast %675 : vector<1x1x4x8x128xf32> to vector<4x8x128xf32>
    %677 = vector.broadcast %674 : f32 to vector<4x8x128xf32>
    %678 = arith.mulf %677, %676 : vector<4x8x128xf32>
    %679 = arith.addf %673, %678 : vector<4x8x128xf32>
    %c3_759 = arith.constant 3 : index
    %c11_760 = arith.constant 11 : index
    %680 = memref.load %arg4[%c3_759, %c11_760] : memref<4x16xf32, #tpu.memory_space<smem>>
    %c0_761 = arith.constant 0 : index
    %c11_762 = arith.constant 11 : index
    %c0_763 = arith.constant 0 : index
    %c0_764 = arith.constant 0 : index
    %c0_765 = arith.constant 0 : index
    %681 = vector.load %arg2[%c0_761, %c11_762, %c0_763, %c0_764, %c0_765] : memref<1x16x4x8x128xf32, #tpu.memory_space<vmem>>, vector<1x1x4x8x128xf32>
    %682 = vector.shape_cast %681 : vector<1x1x4x8x128xf32> to vector<4x8x128xf32>
    %683 = vector.broadcast %680 : f32 to vector<4x8x128xf32>
    %684 = arith.mulf %683, %682 : vector<4x8x128xf32>
    %685 = arith.addf %679, %684 : vector<4x8x128xf32>
    %c3_766 = arith.constant 3 : index
    %c12_767 = arith.constant 12 : index
    %686 = memref.load %arg4[%c3_766, %c12_767] : memref<4x16xf32, #tpu.memory_space<smem>>
    %c0_768 = arith.constant 0 : index
    %c12_769 = arith.constant 12 : index
    %c0_770 = arith.constant 0 : index
    %c0_771 = arith.constant 0 : index
    %c0_772 = arith.constant 0 : index
    %687 = vector.load %arg2[%c0_768, %c12_769, %c0_770, %c0_771, %c0_772] : memref<1x16x4x8x128xf32, #tpu.memory_space<vmem>>, vector<1x1x4x8x128xf32>
    %688 = vector.shape_cast %687 : vector<1x1x4x8x128xf32> to vector<4x8x128xf32>
    %689 = vector.broadcast %686 : f32 to vector<4x8x128xf32>
    %690 = arith.mulf %689, %688 : vector<4x8x128xf32>
    %691 = arith.addf %685, %690 : vector<4x8x128xf32>
    %c3_773 = arith.constant 3 : index
    %c13_774 = arith.constant 13 : index
    %692 = memref.load %arg4[%c3_773, %c13_774] : memref<4x16xf32, #tpu.memory_space<smem>>
    %c0_775 = arith.constant 0 : index
    %c13_776 = arith.constant 13 : index
    %c0_777 = arith.constant 0 : index
    %c0_778 = arith.constant 0 : index
    %c0_779 = arith.constant 0 : index
    %693 = vector.load %arg2[%c0_775, %c13_776, %c0_777, %c0_778, %c0_779] : memref<1x16x4x8x128xf32, #tpu.memory_space<vmem>>, vector<1x1x4x8x128xf32>
    %694 = vector.shape_cast %693 : vector<1x1x4x8x128xf32> to vector<4x8x128xf32>
    %695 = vector.broadcast %692 : f32 to vector<4x8x128xf32>
    %696 = arith.mulf %695, %694 : vector<4x8x128xf32>
    %697 = arith.addf %691, %696 : vector<4x8x128xf32>
    %c3_780 = arith.constant 3 : index
    %c14_781 = arith.constant 14 : index
    %698 = memref.load %arg4[%c3_780, %c14_781] : memref<4x16xf32, #tpu.memory_space<smem>>
    %c0_782 = arith.constant 0 : index
    %c14_783 = arith.constant 14 : index
    %c0_784 = arith.constant 0 : index
    %c0_785 = arith.constant 0 : index
    %c0_786 = arith.constant 0 : index
    %699 = vector.load %arg2[%c0_782, %c14_783, %c0_784, %c0_785, %c0_786] : memref<1x16x4x8x128xf32, #tpu.memory_space<vmem>>, vector<1x1x4x8x128xf32>
    %700 = vector.shape_cast %699 : vector<1x1x4x8x128xf32> to vector<4x8x128xf32>
    %701 = vector.broadcast %698 : f32 to vector<4x8x128xf32>
    %702 = arith.mulf %701, %700 : vector<4x8x128xf32>
    %703 = arith.addf %697, %702 : vector<4x8x128xf32>
    %c3_787 = arith.constant 3 : index
    %c15_788 = arith.constant 15 : index
    %704 = memref.load %arg4[%c3_787, %c15_788] : memref<4x16xf32, #tpu.memory_space<smem>>
    %c0_789 = arith.constant 0 : index
    %c15_790 = arith.constant 15 : index
    %c0_791 = arith.constant 0 : index
    %c0_792 = arith.constant 0 : index
    %c0_793 = arith.constant 0 : index
    %705 = vector.load %arg2[%c0_789, %c15_790, %c0_791, %c0_792, %c0_793] : memref<1x16x4x8x128xf32, #tpu.memory_space<vmem>>, vector<1x1x4x8x128xf32>
    %706 = vector.shape_cast %705 : vector<1x1x4x8x128xf32> to vector<4x8x128xf32>
    %707 = vector.broadcast %704 : f32 to vector<4x8x128xf32>
    %708 = arith.mulf %707, %706 : vector<4x8x128xf32>
    %709 = arith.addf %703, %708 : vector<4x8x128xf32>
    %c3_794 = arith.constant 3 : index
    %c0_795 = arith.constant 0 : index
    %710 = memref.load %arg5[%c3_794, %c0_795] : memref<4x16xf32, #tpu.memory_space<smem>>
    %c0_796 = arith.constant 0 : index
    %c0_797 = arith.constant 0 : index
    %c0_798 = arith.constant 0 : index
    %c0_799 = arith.constant 0 : index
    %c0_800 = arith.constant 0 : index
    %711 = vector.load %arg3[%c0_796, %c0_797, %c0_798, %c0_799, %c0_800] : memref<1x16x4x1x128xf32, #tpu.memory_space<vmem>>, vector<1x1x4x1x128xf32>
    %712 = vector.shape_cast %711 : vector<1x1x4x1x128xf32> to vector<4x1x128xf32>
    %713 = vector.broadcast %710 : f32 to vector<4x1x128xf32>
    %714 = arith.mulf %713, %712 : vector<4x1x128xf32>
    %c3_801 = arith.constant 3 : index
    %c1_802 = arith.constant 1 : index
    %715 = memref.load %arg5[%c3_801, %c1_802] : memref<4x16xf32, #tpu.memory_space<smem>>
    %c0_803 = arith.constant 0 : index
    %c1_804 = arith.constant 1 : index
    %c0_805 = arith.constant 0 : index
    %c0_806 = arith.constant 0 : index
    %c0_807 = arith.constant 0 : index
    %716 = vector.load %arg3[%c0_803, %c1_804, %c0_805, %c0_806, %c0_807] : memref<1x16x4x1x128xf32, #tpu.memory_space<vmem>>, vector<1x1x4x1x128xf32>
    %717 = vector.shape_cast %716 : vector<1x1x4x1x128xf32> to vector<4x1x128xf32>
    %718 = vector.broadcast %715 : f32 to vector<4x1x128xf32>
    %719 = arith.mulf %718, %717 : vector<4x1x128xf32>
    %720 = arith.addf %714, %719 : vector<4x1x128xf32>
    %c3_808 = arith.constant 3 : index
    %c2_809 = arith.constant 2 : index
    %721 = memref.load %arg5[%c3_808, %c2_809] : memref<4x16xf32, #tpu.memory_space<smem>>
    %c0_810 = arith.constant 0 : index
    %c2_811 = arith.constant 2 : index
    %c0_812 = arith.constant 0 : index
    %c0_813 = arith.constant 0 : index
    %c0_814 = arith.constant 0 : index
    %722 = vector.load %arg3[%c0_810, %c2_811, %c0_812, %c0_813, %c0_814] : memref<1x16x4x1x128xf32, #tpu.memory_space<vmem>>, vector<1x1x4x1x128xf32>
    %723 = vector.shape_cast %722 : vector<1x1x4x1x128xf32> to vector<4x1x128xf32>
    %724 = vector.broadcast %721 : f32 to vector<4x1x128xf32>
    %725 = arith.mulf %724, %723 : vector<4x1x128xf32>
    %726 = arith.addf %720, %725 : vector<4x1x128xf32>
    %c3_815 = arith.constant 3 : index
    %c3_816 = arith.constant 3 : index
    %727 = memref.load %arg5[%c3_815, %c3_816] : memref<4x16xf32, #tpu.memory_space<smem>>
    %c0_817 = arith.constant 0 : index
    %c3_818 = arith.constant 3 : index
    %c0_819 = arith.constant 0 : index
    %c0_820 = arith.constant 0 : index
    %c0_821 = arith.constant 0 : index
    %728 = vector.load %arg3[%c0_817, %c3_818, %c0_819, %c0_820, %c0_821] : memref<1x16x4x1x128xf32, #tpu.memory_space<vmem>>, vector<1x1x4x1x128xf32>
    %729 = vector.shape_cast %728 : vector<1x1x4x1x128xf32> to vector<4x1x128xf32>
    %730 = vector.broadcast %727 : f32 to vector<4x1x128xf32>
    %731 = arith.mulf %730, %729 : vector<4x1x128xf32>
    %732 = arith.addf %726, %731 : vector<4x1x128xf32>
    %c3_822 = arith.constant 3 : index
    %c4_823 = arith.constant 4 : index
    %733 = memref.load %arg5[%c3_822, %c4_823] : memref<4x16xf32, #tpu.memory_space<smem>>
    %c0_824 = arith.constant 0 : index
    %c4_825 = arith.constant 4 : index
    %c0_826 = arith.constant 0 : index
    %c0_827 = arith.constant 0 : index
    %c0_828 = arith.constant 0 : index
    %734 = vector.load %arg3[%c0_824, %c4_825, %c0_826, %c0_827, %c0_828] : memref<1x16x4x1x128xf32, #tpu.memory_space<vmem>>, vector<1x1x4x1x128xf32>
    %735 = vector.shape_cast %734 : vector<1x1x4x1x128xf32> to vector<4x1x128xf32>
    %736 = vector.broadcast %733 : f32 to vector<4x1x128xf32>
    %737 = arith.mulf %736, %735 : vector<4x1x128xf32>
    %738 = arith.addf %732, %737 : vector<4x1x128xf32>
    %c3_829 = arith.constant 3 : index
    %c5_830 = arith.constant 5 : index
    %739 = memref.load %arg5[%c3_829, %c5_830] : memref<4x16xf32, #tpu.memory_space<smem>>
    %c0_831 = arith.constant 0 : index
    %c5_832 = arith.constant 5 : index
    %c0_833 = arith.constant 0 : index
    %c0_834 = arith.constant 0 : index
    %c0_835 = arith.constant 0 : index
    %740 = vector.load %arg3[%c0_831, %c5_832, %c0_833, %c0_834, %c0_835] : memref<1x16x4x1x128xf32, #tpu.memory_space<vmem>>, vector<1x1x4x1x128xf32>
    %741 = vector.shape_cast %740 : vector<1x1x4x1x128xf32> to vector<4x1x128xf32>
    %742 = vector.broadcast %739 : f32 to vector<4x1x128xf32>
    %743 = arith.mulf %742, %741 : vector<4x1x128xf32>
    %744 = arith.addf %738, %743 : vector<4x1x128xf32>
    %c3_836 = arith.constant 3 : index
    %c6_837 = arith.constant 6 : index
    %745 = memref.load %arg5[%c3_836, %c6_837] : memref<4x16xf32, #tpu.memory_space<smem>>
    %c0_838 = arith.constant 0 : index
    %c6_839 = arith.constant 6 : index
    %c0_840 = arith.constant 0 : index
    %c0_841 = arith.constant 0 : index
    %c0_842 = arith.constant 0 : index
    %746 = vector.load %arg3[%c0_838, %c6_839, %c0_840, %c0_841, %c0_842] : memref<1x16x4x1x128xf32, #tpu.memory_space<vmem>>, vector<1x1x4x1x128xf32>
    %747 = vector.shape_cast %746 : vector<1x1x4x1x128xf32> to vector<4x1x128xf32>
    %748 = vector.broadcast %745 : f32 to vector<4x1x128xf32>
    %749 = arith.mulf %748, %747 : vector<4x1x128xf32>
    %750 = arith.addf %744, %749 : vector<4x1x128xf32>
    %c3_843 = arith.constant 3 : index
    %c7_844 = arith.constant 7 : index
    %751 = memref.load %arg5[%c3_843, %c7_844] : memref<4x16xf32, #tpu.memory_space<smem>>
    %c0_845 = arith.constant 0 : index
    %c7_846 = arith.constant 7 : index
    %c0_847 = arith.constant 0 : index
    %c0_848 = arith.constant 0 : index
    %c0_849 = arith.constant 0 : index
    %752 = vector.load %arg3[%c0_845, %c7_846, %c0_847, %c0_848, %c0_849] : memref<1x16x4x1x128xf32, #tpu.memory_space<vmem>>, vector<1x1x4x1x128xf32>
    %753 = vector.shape_cast %752 : vector<1x1x4x1x128xf32> to vector<4x1x128xf32>
    %754 = vector.broadcast %751 : f32 to vector<4x1x128xf32>
    %755 = arith.mulf %754, %753 : vector<4x1x128xf32>
    %756 = arith.addf %750, %755 : vector<4x1x128xf32>
    %c3_850 = arith.constant 3 : index
    %c8_851 = arith.constant 8 : index
    %757 = memref.load %arg5[%c3_850, %c8_851] : memref<4x16xf32, #tpu.memory_space<smem>>
    %c0_852 = arith.constant 0 : index
    %c8_853 = arith.constant 8 : index
    %c0_854 = arith.constant 0 : index
    %c0_855 = arith.constant 0 : index
    %c0_856 = arith.constant 0 : index
    %758 = vector.load %arg3[%c0_852, %c8_853, %c0_854, %c0_855, %c0_856] : memref<1x16x4x1x128xf32, #tpu.memory_space<vmem>>, vector<1x1x4x1x128xf32>
    %759 = vector.shape_cast %758 : vector<1x1x4x1x128xf32> to vector<4x1x128xf32>
    %760 = vector.broadcast %757 : f32 to vector<4x1x128xf32>
    %761 = arith.mulf %760, %759 : vector<4x1x128xf32>
    %762 = arith.addf %756, %761 : vector<4x1x128xf32>
    %c3_857 = arith.constant 3 : index
    %c9_858 = arith.constant 9 : index
    %763 = memref.load %arg5[%c3_857, %c9_858] : memref<4x16xf32, #tpu.memory_space<smem>>
    %c0_859 = arith.constant 0 : index
    %c9_860 = arith.constant 9 : index
    %c0_861 = arith.constant 0 : index
    %c0_862 = arith.constant 0 : index
    %c0_863 = arith.constant 0 : index
    %764 = vector.load %arg3[%c0_859, %c9_860, %c0_861, %c0_862, %c0_863] : memref<1x16x4x1x128xf32, #tpu.memory_space<vmem>>, vector<1x1x4x1x128xf32>
    %765 = vector.shape_cast %764 : vector<1x1x4x1x128xf32> to vector<4x1x128xf32>
    %766 = vector.broadcast %763 : f32 to vector<4x1x128xf32>
    %767 = arith.mulf %766, %765 : vector<4x1x128xf32>
    %768 = arith.addf %762, %767 : vector<4x1x128xf32>
    %c3_864 = arith.constant 3 : index
    %c10_865 = arith.constant 10 : index
    %769 = memref.load %arg5[%c3_864, %c10_865] : memref<4x16xf32, #tpu.memory_space<smem>>
    %c0_866 = arith.constant 0 : index
    %c10_867 = arith.constant 10 : index
    %c0_868 = arith.constant 0 : index
    %c0_869 = arith.constant 0 : index
    %c0_870 = arith.constant 0 : index
    %770 = vector.load %arg3[%c0_866, %c10_867, %c0_868, %c0_869, %c0_870] : memref<1x16x4x1x128xf32, #tpu.memory_space<vmem>>, vector<1x1x4x1x128xf32>
    %771 = vector.shape_cast %770 : vector<1x1x4x1x128xf32> to vector<4x1x128xf32>
    %772 = vector.broadcast %769 : f32 to vector<4x1x128xf32>
    %773 = arith.mulf %772, %771 : vector<4x1x128xf32>
    %774 = arith.addf %768, %773 : vector<4x1x128xf32>
    %c3_871 = arith.constant 3 : index
    %c11_872 = arith.constant 11 : index
    %775 = memref.load %arg5[%c3_871, %c11_872] : memref<4x16xf32, #tpu.memory_space<smem>>
    %c0_873 = arith.constant 0 : index
    %c11_874 = arith.constant 11 : index
    %c0_875 = arith.constant 0 : index
    %c0_876 = arith.constant 0 : index
    %c0_877 = arith.constant 0 : index
    %776 = vector.load %arg3[%c0_873, %c11_874, %c0_875, %c0_876, %c0_877] : memref<1x16x4x1x128xf32, #tpu.memory_space<vmem>>, vector<1x1x4x1x128xf32>
    %777 = vector.shape_cast %776 : vector<1x1x4x1x128xf32> to vector<4x1x128xf32>
    %778 = vector.broadcast %775 : f32 to vector<4x1x128xf32>
    %779 = arith.mulf %778, %777 : vector<4x1x128xf32>
    %780 = arith.addf %774, %779 : vector<4x1x128xf32>
    %c3_878 = arith.constant 3 : index
    %c12_879 = arith.constant 12 : index
    %781 = memref.load %arg5[%c3_878, %c12_879] : memref<4x16xf32, #tpu.memory_space<smem>>
    %c0_880 = arith.constant 0 : index
    %c12_881 = arith.constant 12 : index
    %c0_882 = arith.constant 0 : index
    %c0_883 = arith.constant 0 : index
    %c0_884 = arith.constant 0 : index
    %782 = vector.load %arg3[%c0_880, %c12_881, %c0_882, %c0_883, %c0_884] : memref<1x16x4x1x128xf32, #tpu.memory_space<vmem>>, vector<1x1x4x1x128xf32>
    %783 = vector.shape_cast %782 : vector<1x1x4x1x128xf32> to vector<4x1x128xf32>
    %784 = vector.broadcast %781 : f32 to vector<4x1x128xf32>
    %785 = arith.mulf %784, %783 : vector<4x1x128xf32>
    %786 = arith.addf %780, %785 : vector<4x1x128xf32>
    %c3_885 = arith.constant 3 : index
    %c13_886 = arith.constant 13 : index
    %787 = memref.load %arg5[%c3_885, %c13_886] : memref<4x16xf32, #tpu.memory_space<smem>>
    %c0_887 = arith.constant 0 : index
    %c13_888 = arith.constant 13 : index
    %c0_889 = arith.constant 0 : index
    %c0_890 = arith.constant 0 : index
    %c0_891 = arith.constant 0 : index
    %788 = vector.load %arg3[%c0_887, %c13_888, %c0_889, %c0_890, %c0_891] : memref<1x16x4x1x128xf32, #tpu.memory_space<vmem>>, vector<1x1x4x1x128xf32>
    %789 = vector.shape_cast %788 : vector<1x1x4x1x128xf32> to vector<4x1x128xf32>
    %790 = vector.broadcast %787 : f32 to vector<4x1x128xf32>
    %791 = arith.mulf %790, %789 : vector<4x1x128xf32>
    %792 = arith.addf %786, %791 : vector<4x1x128xf32>
    %c3_892 = arith.constant 3 : index
    %c14_893 = arith.constant 14 : index
    %793 = memref.load %arg5[%c3_892, %c14_893] : memref<4x16xf32, #tpu.memory_space<smem>>
    %c0_894 = arith.constant 0 : index
    %c14_895 = arith.constant 14 : index
    %c0_896 = arith.constant 0 : index
    %c0_897 = arith.constant 0 : index
    %c0_898 = arith.constant 0 : index
    %794 = vector.load %arg3[%c0_894, %c14_895, %c0_896, %c0_897, %c0_898] : memref<1x16x4x1x128xf32, #tpu.memory_space<vmem>>, vector<1x1x4x1x128xf32>
    %795 = vector.shape_cast %794 : vector<1x1x4x1x128xf32> to vector<4x1x128xf32>
    %796 = vector.broadcast %793 : f32 to vector<4x1x128xf32>
    %797 = arith.mulf %796, %795 : vector<4x1x128xf32>
    %798 = arith.addf %792, %797 : vector<4x1x128xf32>
    %c3_899 = arith.constant 3 : index
    %c15_900 = arith.constant 15 : index
    %799 = memref.load %arg5[%c3_899, %c15_900] : memref<4x16xf32, #tpu.memory_space<smem>>
    %c0_901 = arith.constant 0 : index
    %c15_902 = arith.constant 15 : index
    %c0_903 = arith.constant 0 : index
    %c0_904 = arith.constant 0 : index
    %c0_905 = arith.constant 0 : index
    %800 = vector.load %arg3[%c0_901, %c15_902, %c0_903, %c0_904, %c0_905] : memref<1x16x4x1x128xf32, #tpu.memory_space<vmem>>, vector<1x1x4x1x128xf32>
    %801 = vector.shape_cast %800 : vector<1x1x4x1x128xf32> to vector<4x1x128xf32>
    %802 = vector.broadcast %799 : f32 to vector<4x1x128xf32>
    %803 = arith.mulf %802, %801 : vector<4x1x128xf32>
    %804 = arith.addf %798, %803 : vector<4x1x128xf32>
    %805 = vector.broadcast %804 : vector<4x1x128xf32> to vector<4x8x128xf32>
    %806 = arith.addf %709, %805 : vector<4x8x128xf32>
    %c3_906 = arith.constant 3 : index
    %807 = memref.load %arg6[%c3_906] : memref<4xf32, #tpu.memory_space<smem>>
    %808 = vector.broadcast %807 : f32 to vector<4x8x128xf32>
    %809 = arith.addf %806, %808 : vector<4x8x128xf32>
    %cst_907 = arith.constant 5.000000e-01 : f32
    %810 = vector.broadcast %cst_907 : f32 to vector<4x8x128xf32>
    %811 = arith.mulf %810, %809 : vector<4x8x128xf32>
    %812 = math.tanh %811 : vector<4x8x128xf32>
    %cst_908 = arith.constant 5.000000e-01 : f32
    %813 = vector.broadcast %cst_908 : f32 to vector<4x8x128xf32>
    %814 = arith.mulf %813, %812 : vector<4x8x128xf32>
    %cst_909 = arith.constant 5.000000e-01 : f32
    %815 = vector.broadcast %cst_909 : f32 to vector<4x8x128xf32>
    %816 = arith.addf %814, %815 : vector<4x8x128xf32>
    %c0_910 = arith.constant 0 : index
    %c3_911 = arith.constant 3 : index
    %c0_912 = arith.constant 0 : index
    %c0_913 = arith.constant 0 : index
    %c0_914 = arith.constant 0 : index
    %817 = vector.load %arg7[%c0_910, %c3_911, %c0_912, %c0_913, %c0_914] : memref<1x4x4x8x128xf32, #tpu.memory_space<vmem>>, vector<1x1x4x8x128xf32>
    %818 = vector.shape_cast %817 : vector<1x1x4x8x128xf32> to vector<4x8x128xf32>
    %819 = vector.shape_cast %816 : vector<4x8x128xf32> to vector<1x1x4x8x128xf32>
    tpu.vector_store %arg7[%c0_910, %c3_911, %c0_912, %c0_913, %c0_914], %819 {strides = array<i32>} : memref<1x4x4x8x128xf32, #tpu.memory_space<vmem>>, vector<1x1x4x8x128xf32>,
    return
  }
  func.func @transform_0(%arg0: i32, %arg1: i32) -> (i32, i32, i32, i32, i32) {
    %c0_i32 = arith.constant 0 : i32
    %c0_i32_0 = arith.constant 0 : i32
    %c0_i32_1 = arith.constant 0 : i32
    %c0_i32_2 = arith.constant 0 : i32
    return %arg0, %c0_i32, %arg1, %c0_i32_0, %c0_i32_1 : i32, i32, i32, i32, i32
  }
  func.func @transform_1(%arg0: i32, %arg1: i32) -> (i32, i32, i32, i32, i32) {
    %c0_i32 = arith.constant 0 : i32
    %c0_i32_0 = arith.constant 0 : i32
    %c0_i32_1 = arith.constant 0 : i32
    %c0_i32_2 = arith.constant 0 : i32
    return %arg0, %c0_i32, %arg1, %c0_i32_0, %c0_i32_1 : i32, i32, i32, i32, i32
  }
  func.func @transform_2(%arg0: i32, %arg1: i32) -> (i32, i32) {
    %c0_i32 = arith.constant 0 : i32
    %c0_i32_0 = arith.constant 0 : i32
    %c0_i32_1 = arith.constant 0 : i32
    return %c0_i32, %c0_i32_0 : i32, i32
  }
  func.func @transform_3(%arg0: i32, %arg1: i32) -> (i32, i32) {
    %c0_i32 = arith.constant 0 : i32
    %c0_i32_0 = arith.constant 0 : i32
    %c0_i32_1 = arith.constant 0 : i32
    return %c0_i32, %c0_i32_0 : i32, i32
  }
  func.func @transform_4(%arg0: i32, %arg1: i32) -> i32 {
    %c0_i32 = arith.constant 0 : i32
    %c0_i32_0 = arith.constant 0 : i32
    return %c0_i32 : i32
  }
  func.func @transform_5(%arg0: i32, %arg1: i32) -> (i32, i32, i32, i32, i32) {
    %c0_i32 = arith.constant 0 : i32
    %c0_i32_0 = arith.constant 0 : i32
    %c0_i32_1 = arith.constant 0 : i32
    %c0_i32_2 = arith.constant 0 : i32
    return %arg0, %c0_i32, %arg1, %c0_i32_0, %c0_i32_1 : i32, i32, i32, i32, i32
  }
}

</mosaic_0001>

<bundles_post_ra>
// kernel: tpu_custom_call.1
= control target key start
LH: loop header
LB: loop body
LE: loop exit
PB: predicated region body
PF: predicated region fallthrough
CT: control target
= control target key end

     0   :  { %s5063_s0 = inlined_call_operand.hbm [shape: f32[2,16,4,8,128], index: 0, kind: input, shape index: {}]   ;;  %s5064_s1 = inlined_call_operand.hbm [shape: f32[2,16,4,1,128], index: 1, kind: input, shape index: {}]   ;;  %s5065_s2 = inlined_call_operand.hbm [shape: f32[4,16], index: 2, kind: input, shape index: {}]   ;;  %s5066_s3 = inlined_call_operand.hbm [shape: f32[4,16], index: 3, kind: input, shape index: {}]   ;;  %s5067_s4 = inlined_call_operand.vmem [shape: f32[4], index: 4, kind: input, shape index: {}]   ;;  %s5068_s5 = inlined_call_operand.hbm [shape: f32[2,4,4,8,128], index: 5, kind: output, shape index: {}]  }
   0x1   :  { %5152 = sst [smem:[#allocation64_spill]] %s5063_s0 }
   0x2   :  { %5153 = sst [smem:[#allocation65_spill]] %s5065_s2 }
   0x3   :  { %5154 = sst [smem:[#allocation66_spill]] %s5066_s3 }
   0x4   :  { %5155 = sst [smem:[#allocation67_spill]] %s5067_s4 }
   0x5   :  { %10 = vsyncpa [#allocation3], 0 }
   0x6   :  { %12 = vsyncpa [#allocation3 + $0x1], 0 }
   0x7   :  { %13 = vsyncpa [#allocation8], 0 }
   0x8   :  { %15 = vsyncpa [#allocation8 + $0x1], 0 }
   0x9   :  { %16 = vsyncpa [#allocation5], 0 }
   0xa   :  { %17 = vsyncpa [#allocation11], 0 }
   0xb   :  { %18 = vsyncpa [#allocation6], 0 }
   0xc   :  { %19 = vsyncpa [#allocation4], 0 }
   0xd   :  { %21 = vsyncpa [#allocation4 + $0x1], 0  ;;  %s3503_s18 = smov 0   ;;  %s3505_s19 = smov 0  }
   0xe   :  { %s3507_s20 = smov 0   ;;  %s3509_s21 = smov 0  }
   0xf   :  { %s3511_s22 = smov 0   ;;  %s3513_s23 = smov 0  }
  0x10 LB: > { %s2476_s24 = sadd.s32 4294967295, %s3462_s23   ;;  %s2477_s25 = sadd.s32 4294967294, %s3462_s23   ;;  %s3462_s23 = sphi %s3513_s23, %s27_s23   ;;  %s3458_s22 = sphi %s3511_s22, %s5339_s22   ;;  %s3454_s21 = sphi %s3509_s21, %s5338_s21   ;;  %s3450_s20 = sphi %s3507_s20, %s5337_s20   ;;  %s3446_s19 = sphi %s3505_s19, %s5336_s19   ;;  %s3442_s18 = sphi %s3503_s18, %s5335_s18  }
  0x11   : > { %s48_s26 = sadd.s32 1, %s3450_s20  ;;  %p55_p0 = scmp.ne.s32.totalorder %s3450_s20, %s3446_s19 }
  0x12   : > { %p56_p1 = scmp.eq.s32.totalorder %s3462_s23, 0  ;;  %p61_p2 = scmp.ne.s32.totalorder %s3446_s19, %s3442_s18 }
  0x13   : > { %p3541_p3 = scmp.eq.s32.totalorder %s2476_s24, 0  ;;  %p178_p4 = scmp.eq.s32.totalorder %s2476_s24, 1 }
  0x14   : > { %p3545_p5 = por %p56_p1, %p55_p0  ;;  %p184_p6 = scmp.eq.s32.totalorder %s2477_s25, 1 }
  0x15   : > { %p3551_p7 = por %p3541_p3, %p61_p2  ;;  %p3555_p8 = por %p178_p4, %p55_p0 }
  0x16   : > { %p3559_p9 = por %p184_p6, %p61_p2  ;;  %p2478_p10 = scmp.ge.s32.totalorder %s3462_s23, 1 }
  0x17   : > { %p191_p11 = scmp.lt.s32.totalorder %s3462_s23, 3  ;;  %s5161_s2 = sld [smem:[#allocation65_spill]] }
  0x18   : > { %p2482_p13 = scmp.ge.s32.totalorder %s3462_s23, 2  ;;  %s5163_s3 = sld [smem:[#allocation66_spill]] }
  0x19   : > { %p3568_p12 = pnand %p2478_p10, %p191_p11  ;;  %s5164_s4 = sld [smem:[#allocation67_spill]] }
  0x1a   : > { %s3464_s17 = smov [#allocation9]   ;;  %s3465_s24 = smov [#allocation10]  }
  0x1b   : > { %p3141_p0 = pneg %p3568_p12  ;;  %s3466_s25 = smov [#allocation12]  }
  0x1c   : > { %s39_s7 = sadd.s32 1, %s3458_s22  ;;  %p3165_p2 = scmp.lt.s32.totalorder %s3462_s23, 2 }
  0x1d   : > { %s203_s9 = sshll.u32 %s5161_s2, 4  ;;  %p3142_p1 = pnand %p3141_p0, %p3541_p3  ;;  %s204_s9 = int_to_ptr.hbm [resolvable:$true] %s203_s9 }
  0x1e   : > { %s213_s13 = sshll.u32 %s5163_s3, 4  ;;  %p41_p4 = scmp.ge.s32.totalorder %s39_s7, 2  ;;  %s214_s13 = int_to_ptr.hbm [resolvable:$true] %s213_s13 }
  0x1f   : > { %s223_s16 = sshll.u32 %s5164_s4, 4  ;;  %s3586_s8 = sand.u32 1, %s3450_s20   ;;  %s224_s16 = int_to_ptr.vmem [resolvable:$true] %s223_s16 }
  0x20   : > { %3144 = dma.hbm_to_smem (!%p3142_p1), %s204_s9, 64, %s3464_s17, [#allocation5]  }
  0x21   : > { %3147 = dma.hbm_to_smem (!%p3142_p1), %s214_s13, 64, %s3465_s24, [#allocation11]  }
  0x22   : > { %3150 = dma.vmem_to_smem (!%p3142_p1), %s224_s16, 16, %s3466_s25, [#allocation6]  }
  0x23   : > { %s2483_s11 = sshll.u32 %s3586_s8, 9  ;;  %s5341_s7 = smov (%p41_p4, %s39_s7), 0 }
  0x24   : > { %5165 = sst [smem:[#allocation20_spill]] %s5341_s7  ;;  %s3121_s9 = sshll.u32 %s3458_s22, 9 }
  0x25   : > { %s43_s12 = ssub.s32 %s3458_s22, %s5341_s7  ;;  %s5166_s0 = sld [smem:[#allocation64_spill]] }
  0x26   : > { %p46_p6 = scmp.eq.s32.totalorder %s43_s12, 0  ;;  %s238_s17 = scalar_lea.vmem [#allocation2], %s2483_s11 }
  0x27   : > { %s248_s24 = sshll.u32 %s238_s17, 4  ;;  %p3606_p10 = pnand %p3165_p2, %p3545_p5  ;;  %s249_s24 = int_to_ptr.vmem [resolvable:$true] %s248_s24 }
  0x28   : > { %s3600_s25 = scalar_select %p46_p6, %s3450_s20, %s48_s26  }
  0x29   : > { %s235_s13 = scalar_lea.sflag [#allocation3], %s3586_s8  ;;  %s3468_s12 = smov 8  }
  0x2a   : > { %5167 = sst [smem:[#allocation21_spill]] %s3600_s25  ;;  %s2486_s11 = sshll.u32 %s3586_s8, 6 }
  0x2b   : > { %s245_s15 = scalar_lea.hbm %s5166_s0, %s3121_s9  ;;  %s3467_s9 = smov 128  }
  0x2c   : > { %s246_s16 = sshll.u32 %s245_s15, 4  ;;  %s2487_s14 = sshll.u32 %s3458_s22, 6  ;;  %s247_s16 = int_to_ptr.hbm [resolvable:$true] %s246_s16 }
  0x2d   : > { %3154 = dma.hbm_to_vmem [thread:$0]  (!%p3606_p10), %s247_s16, 8192, %s249_s24, %s235_s13, %s3467_s9, %s3467_s9, %s3468_s12  }
  0x2e   : > { %s268_s26 = scalar_lea.hbm %s5064_s1, %s2487_s14  ;;  %s262_s28 = scalar_lea.vmem [#allocation7], %s2486_s11 }
  0x2f   : > { %s269_s0 = sshll.u32 %s268_s26, 4  ;;  %s271_s3 = sshll.u32 %s262_s28, 4  ;;  %s270_s0 = int_to_ptr.hbm [resolvable:$true] %s269_s0  ;;  %s272_s3 = int_to_ptr.vmem [resolvable:$true] %s271_s3 }
  0x30   : > { %s259_s4 = scalar_lea.sflag [#allocation8], %s3586_s8  ;;  %s3469_s7 = smov 16  }
  0x31   : > { %s3470_s25 = smov 1   ;;  %283 = sbr.rel (%p3568_p12) target bundleno = 414 (0x19e), region = 40 }
  0x32   : > { %3157 = dma.hbm_to_vmem [thread:$0]  (!%p3606_p10), %s270_s0, 1024, %s272_s3, %s259_s4, %s3469_s7, %s3469_s7, %s3470_s25  }
  0x36   : > { %s3624_s16 = sand.u32 1, %s3446_s19  }
  0x37   : > { %s2489_s24 = sshll.u32 %s3624_s16, 9  ;;  %s286_s13 = scalar_lea.sflag [#allocation3], %s3624_s16 }
  0x38   : > { %s3628_s9 = scalar_lea.vmem [#allocation2], %s2489_s24 }
  0x39   : > { %3417 = dma.done.wait (%p3551_p7), %s286_s13, 8192  }
  0x3a   : > { %3419 = vsyncadd (%p3551_p7), %s286_s13, 4294959104  ;;  %s2490_s0 = sshll.u32 %s3624_s16, 6  ;;  %s296_s2 = scalar_lea.sflag [#allocation8], %s3624_s16 }
  0x3b   : > { %s3636_s3 = scalar_lea.vmem [#allocation7], %s2490_s0 }
  0x3c   : > { %3421 = dma.done.wait (%p3551_p7), %s296_s2, 1024  }
  0x3d   : > { %3423 = vsyncadd (%p3551_p7), %s296_s2, 4294966272 }
  0x3e   : > { %3425 = dma.done.wait (%p3541_p3), [#allocation5], 64  }
  0x3f   : > { %3427 = vsyncadd (%p3541_p3), [#allocation5], 4294967232 }
  0x40   : > { %3429 = dma.done.wait (%p3541_p3), [#allocation11], 64  }
  0x41   : > { %3431 = vsyncadd (%p3541_p3), [#allocation11], 4294967232 }
  0x42   : > { %3433 = dma.done.wait (%p3541_p3), [#allocation6], 16  }
  0x43   : > { %3435 = vsyncadd (%p3541_p3), [#allocation6], 4294967280 }
  0x44   : > { %320 = sfence }
  0x45   : > { %s351_s4 = sld [smem:[#allocation9]]  ;;  %v3655_v0 = vld [vmem:[%s3628_s9] sm:$0xff]  ;;  %v3660_v1 = vld [vmem:[%s3628_s9 + $0x8] sm:$0xff]  ;;  %v3663_v2 = vld [vmem:[%s3628_s9 + $0x10] sm:$0xff] }
  0x46   : > { %s2495_s29 = sld [smem:[#allocation9 + $0x1]]  ;;  %v3666_v3 = vld [vmem:[%s3628_s9 + $0x18] sm:$0xff]  ;;  %v3671_v4 = vld [vmem:[%s3628_s9 + $0x20] sm:$0xff]  ;;  %v3674_v5 = vld [vmem:[%s3628_s9 + $0x28] sm:$0xff] }
  0x47   : > { %s2500_s10 = sld [smem:[#allocation9 + $0x2]]  ;;  %v3679_v7 = vld [vmem:[%s3628_s9 + $0x30] sm:$0xff]  ;;  %v3682_v8 = vld [vmem:[%s3628_s9 + $0x38] sm:$0xff]  ;;  %v3685_v9 = vld [vmem:[%s3628_s9 + $0x40] sm:$0xff] }
  0x48   : > { %s3657_s7 = sld [smem:[#allocation9 + $0x3]]  ;;  %v3694_v14 = vld [vmem:[%s3628_s9 + $0x48] sm:$0xff]  ;;  %v3697_v15 = vld [vmem:[%s3628_s9 + $0x50] sm:$0xff]  ;;  %v3700_v16 = vld [vmem:[%s3628_s9 + $0x58] sm:$0xff] }
  0x49   : > { %s3668_s27 = sld [smem:[#allocation9 + $0x4]]  ;;  %v3707_v23 = vld [vmem:[%s3628_s9 + $0x60] sm:$0xff]  ;;  %v3710_v24 = vld [vmem:[%s3628_s9 + $0x68] sm:$0xff]  ;;  %v3717_v29 = vld [vmem:[%s3628_s9 + $0x70] sm:$0xff] }
  0x4a   : > { %s3676_s8 = sld [smem:[#allocation9 + $0x5]]  ;;  %v3720_v30 = vld [vmem:[%s3628_s9 + $0x78] sm:$0xff]  ;;  %v3723_v31 = vld [vmem:[%s3628_s9 + $0x80] sm:$0xff]  ;;  %v3728_v36 = vld [vmem:[%s3628_s9 + $0x88] sm:$0xff] }
  0x4b   : > { %v356_v6 = vstv %s351_s4  ;;  %s3687_s25 = sld [smem:[#allocation9 + $0x6]]  ;;  %v3731_v37 = vld [vmem:[%s3628_s9 + $0x90] sm:$0xff]  ;;  %v3734_v38 = vld [vmem:[%s3628_s9 + $0x98] sm:$0xff]  ;;  %v3745_v47 = vld [vmem:[%s3628_s9 + $0xa0] sm:$0xff] }
  0x4c   : > { %v357_v10 = vmul.f32 %v356_v6, %v3655_v0  ;;  %v358_v11 = vmul.f32 %v356_v6, %v3660_v1  ;;  %v359_v12 = vmul.f32 %v356_v6, %v3663_v2  ;;  %v360_v13 = vmul.f32 %v356_v6, %v3666_v3  ;;  %s3725_s12 = sld [smem:[#allocation9 + $0x7]]  ;;  %v3754_v52 = vld [vmem:[%s3628_s9 + $0xa8] sm:$0xff]  ;;  %v3757_v53 = vld [vmem:[%s3628_s9 + $0xb0] sm:$0xff]  ;;  %v3760_v54 = vld [vmem:[%s3628_s9 + $0xb8] sm:$0xff] }
  0x4d   : > { %v367_v17 = vstv %s2495_s29  ;;  %v382_v18 = vstv %s2500_s10  ;;  %s3736_s11 = sld [smem:[#allocation9 + $0x8]]  ;;  %v3767_v59 = vld [vmem:[%s3628_s9 + $0xc0] sm:$0xff]  ;;  %v3770_v6 = vld [vmem:[%s3628_s9 + $0xc8] sm:$0xff] }
  0x4e   : > { %v368_v19 = vmul.f32 %v3671_v4, %v367_v17  ;;  %v369_v20 = vmul.f32 %v3674_v5, %v367_v17  ;;  %v370_v21 = vmul.f32 %v3679_v7, %v367_v17  ;;  %v371_v22 = vmul.f32 %v3682_v8, %v367_v17  ;;  %s3742_s14 = sld [smem:[#allocation9 + $0x9]]  ;;  %5169 = vst [vmem:[#allocation22_spill] sm:$0xff] %v3767_v59 }
  0x4f   : > { %v383_v25 = vmul.f32 %v3685_v9, %v382_v18  ;;  %v384_v26 = vmul.f32 %v3694_v14, %v382_v18  ;;  %v385_v27 = vmul.f32 %v3697_v15, %v382_v18  ;;  %v386_v28 = vmul.f32 %v3700_v16, %v382_v18  ;;  %s3747_s15 = sld [smem:[#allocation9 + $0xa]]  ;;  %5170 = vst [vmem:[#allocation23_spill] sm:$0xff] %v3770_v6 }
  0x50   : > { %v372_v32 = vadd.f32 %v368_v19, %v357_v10  ;;  %v373_v33 = vadd.f32 %v369_v20, %v358_v11  ;;  %v374_v34 = vadd.f32 %v370_v21, %v359_v12  ;;  %v375_v35 = vadd.f32 %v371_v22, %v360_v13  ;;  %v3773_v10 = vld [vmem:[%s3628_s9 + $0xd0] sm:$0xff]  ;;  %v3776_v11 = vld [vmem:[%s3628_s9 + $0xd8] sm:$0xff]  ;;  %s3801_s17 = sld [smem:[#allocation9 + $0xb]] }
  0x51   : > { %v397_v39 = vstv %s3657_s7  ;;  %v412_v40 = vstv %s3668_s27  ;;  %v427_v41 = vstv %s3676_s8  ;;  %v442_v42 = vstv %s3687_s25  ;;  %5171 = vst [vmem:[#allocation24_spill] sm:$0xff] %v3773_v10  ;;  %s3812_s26 = sld [smem:[#allocation9 + $0xc]] }
  0x52   : > { %v387_v43 = vadd.f32 %v383_v25, %v372_v32  ;;  %v388_v44 = vadd.f32 %v384_v26, %v373_v33  ;;  %v389_v45 = vadd.f32 %v385_v27, %v374_v34  ;;  %v390_v46 = vadd.f32 %v386_v28, %v375_v35  ;;  %5172 = vst [vmem:[#allocation25_spill] sm:$0xff] %v3776_v11  ;;  %v3783_v25 = vld [vmem:[%s3628_s9 + $0xe0] sm:$0xff]  ;;  %v3786_v26 = vld [vmem:[%s3628_s9 + $0xe8] sm:$0xff]  ;;  %v3793_v34 = vld [vmem:[%s3628_s9 + $0xf0] sm:$0xff]  ;;  %s3818_s28 = sld [smem:[#allocation9 + $0xd]] }
  0x53   : > { %v398_v48 = vmul.f32 %v3707_v23, %v397_v39  ;;  %v399_v49 = vmul.f32 %v3710_v24, %v397_v39  ;;  %v400_v50 = vmul.f32 %v3717_v29, %v397_v39  ;;  %v401_v51 = vmul.f32 %v3720_v30, %v397_v39  ;;  %5173 = vst [vmem:[#allocation26_spill] sm:$0xff] %v3783_v25  ;;  %v3796_v35 = vld [vmem:[%s3628_s9 + $0xf8] sm:$0xff]  ;;  %v3799_v39 = vld [vmem:[%s3628_s9 + $0x100] sm:$0xff]  ;;  %s3823_s24 = sld [smem:[#allocation9 + $0xe]] }
  0x54   : > { %v413_v55 = vmul.f32 %v3723_v31, %v412_v40  ;;  %v414_v56 = vmul.f32 %v3728_v36, %v412_v40  ;;  %v415_v57 = vmul.f32 %v3731_v37, %v412_v40  ;;  %v416_v58 = vmul.f32 %v3734_v38, %v412_v40  ;;  %5174 = vst [vmem:[#allocation27_spill] sm:$0xff] %v3786_v26  ;;  %s3877_s13 = sld [smem:[#allocation9 + $0xf]] }
  0x55   : > { %v402_v60 = vadd.f32 %v398_v48, %v387_v43  ;;  %v403_v61 = vadd.f32 %v399_v49, %v388_v44  ;;  %v404_v62 = vadd.f32 %v400_v50, %v389_v45  ;;  %v405_v63 = vadd.f32 %v401_v51, %v390_v46  ;;  %5175 = vst [vmem:[#allocation28_spill] sm:$0xff] %v3793_v34  ;;  %v3804_v45 = vld [vmem:[%s3628_s9 + $0x108] sm:$0xff]  ;;  %v3807_v46 = vld [vmem:[%s3628_s9 + $0x110] sm:$0xff]  ;;  %v3810_v48 = vld [vmem:[%s3628_s9 + $0x118] sm:$0xff]  ;;  %s3888_s0 = sld [smem:[#allocation10]] }
  0x56   : > { %v428_v12 = vmul.f32 %v3745_v47, %v427_v41  ;;  %v429_v13 = vmul.f32 %v3754_v52, %v427_v41  ;;  %v430_v17 = vmul.f32 %v3757_v53, %v427_v41  ;;  %v431_v18 = vmul.f32 %v3760_v54, %v427_v41  ;;  %5176 = vst [vmem:[#allocation29_spill] sm:$0xff] %v3796_v35  ;;  %s3894_s2 = sld [smem:[#allocation10 + $0x1]] }
  0x57   : > { %v417_v19 = vadd.f32 %v413_v55, %v402_v60  ;;  %v418_v20 = vadd.f32 %v414_v56, %v403_v61  ;;  %v419_v21 = vadd.f32 %v415_v57, %v404_v62  ;;  %v420_v22 = vadd.f32 %v416_v58, %v405_v63  ;;  %5177 = vst [vmem:[#allocation30_spill] sm:$0xff] %v3799_v39  ;;  %v3821_v60 = vld [vmem:[%s3628_s9 + $0x120] sm:$0xff]  ;;  %s3899_s4 = sld [smem:[#allocation10 + $0x2]] }
  0x58   : > { %v443_v27 = vmul.f32 %v3767_v59, %v442_v42  ;;  %v444_v28 = vmul.f32 %v3770_v6, %v442_v42  ;;  %v445_v32 = vmul.f32 %v3773_v10, %v442_v42  ;;  %v446_v33 = vmul.f32 %v3776_v11, %v442_v42  ;;  %5178 = vst [vmem:[#allocation31_spill] sm:$0xff] %v3804_v45  ;;  %s3934_s29 = sld [smem:[#allocation10 + $0x3]] }
  0x59   : > { %v432_v40 = vadd.f32 %v428_v12, %v417_v19  ;;  %v433_v41 = vadd.f32 %v429_v13, %v418_v20  ;;  %v434_v43 = vadd.f32 %v430_v17, %v419_v21  ;;  %v435_v44 = vadd.f32 %v431_v18, %v420_v22  ;;  %5179 = vst [vmem:[#allocation32_spill] sm:$0xff] %v3807_v46  ;;  %v3830_v13 = vld [vmem:[%s3628_s9 + $0x128] sm:$0xff]  ;;  %v3833_v17 = vld [vmem:[%s3628_s9 + $0x130] sm:$0xff]  ;;  %v3836_v18 = vld [vmem:[%s3628_s9 + $0x138] sm:$0xff]  ;;  %s3942_s10 = sld [smem:[#allocation10 + $0x4]] }
  0x5a   : > { %5180 = vst [vmem:[#allocation33_spill] sm:$0xff] %v3810_v48  ;;  %v457_v42 = vstv %s3725_s12  ;;  %v472_v49 = vstv %s3736_s11  ;;  %v487_v50 = vstv %s3742_s14  ;;  %v502_v51 = vstv %s3747_s15  ;;  %s3955_s7 = sld [smem:[#allocation10 + $0x5]] }
  0x5b   : > { %v447_v55 = vadd.f32 %v443_v27, %v432_v40  ;;  %v448_v56 = vadd.f32 %v444_v28, %v433_v41  ;;  %v449_v57 = vadd.f32 %v445_v32, %v434_v43  ;;  %v450_v58 = vadd.f32 %v446_v33, %v435_v44  ;;  %5181 = vst [vmem:[#allocation34_spill] sm:$0xff] %v3821_v60  ;;  %v3843_v27 = vld [vmem:[%s3628_s9 + $0x140] sm:$0xff]  ;;  %v3846_v41 = vld [vmem:[%s3628_s9 + $0x148] sm:$0xff]  ;;  %v3849_v43 = vld [vmem:[%s3628_s9 + $0x150] sm:$0xff]  ;;  %s3964_s27 = sld [smem:[#allocation10 + $0x6]] }
  0x5c   : > { %v458_v61 = vmul.f32 %v3783_v25, %v457_v42  ;;  %v459_v62 = vmul.f32 %v3786_v26, %v457_v42  ;;  %v460_v63 = vmul.f32 %v3793_v34, %v457_v42  ;;  %v461_v12 = vmul.f32 %v3796_v35, %v457_v42  ;;  %5182 = vst [vmem:[#allocation35_spill] sm:$0xff] %v3830_v13  ;;  %v3852_v44 = vld [vmem:[%s3628_s9 + $0x158] sm:$0xff]  ;;  %v2576_v35 = vld [vmem:[%s3636_s3 + $0x8] sm:$0x1]  ;;  %s3986_s8 = sld [smem:[#allocation10 + $0x7]] }
  0x5d   : > { %5183 = vst [vmem:[#allocation36_spill] sm:$0xff] %v3833_v17  ;;  %v473_v19 = vmul.f32 %v3799_v39, %v472_v49  ;;  %v474_v20 = vmul.f32 %v3804_v45, %v472_v49  ;;  %v475_v21 = vmul.f32 %v3807_v46, %v472_v49  ;;  %v476_v22 = vmul.f32 %v3810_v48, %v472_v49  ;;  %v3925_v46 = vld [vmem:[%s3628_s9 + $0x1d0] sm:$0xff]  ;;  %v3928_v45 = vld [vmem:[%s3628_s9 + $0x1d8] sm:$0xff]  ;;  %v2574_v39 = vld [vmem:[%s3636_s3 + $0x7] sm:$0x1]  ;;  %s3996_s25 = sld [smem:[#allocation10 + $0x8]] }
  0x5e   : > { %5184 = vst [vmem:[#allocation37_spill] sm:$0xff] %v3836_v18  ;;  %v462_v28 = vadd.f32 %v458_v61, %v447_v55  ;;  %v463_v32 = vadd.f32 %v459_v62, %v448_v56  ;;  %v464_v33 = vadd.f32 %v460_v63, %v449_v57  ;;  %v465_v40 = vadd.f32 %v461_v12, %v450_v58  ;;  %v3859_v62 = vld [vmem:[%s3628_s9 + $0x160] sm:$0xff]  ;;  %v3862_v63 = vld [vmem:[%s3628_s9 + $0x168] sm:$0xff]  ;;  %s4002_s12 = sld [smem:[#allocation10 + $0x9]]  ;;  %v2593_v26 = vld [vmem:[%s3636_s3 + $0x16] sm:$0x1] }
  0x5f   : > { %5185 = vst [vmem:[#allocation38_spill] sm:$0xff] %v3843_v27  ;;  %v488_v42 = vmul.f32 %v3821_v60, %v487_v50  ;;  %v489_v49 = vmul.f32 %v3830_v13, %v487_v50  ;;  %v490_v48 = vmul.f32 %v3833_v17, %v487_v50  ;;  %v491_v55 = vmul.f32 %v3836_v18, %v487_v50  ;;  %s4005_s11 = sld [smem:[#allocation10 + $0xa]]  ;;  %v2594_v25 = vld [vmem:[%s3636_s3 + $0x17] sm:$0x1] }
  0x60   : > { %5186 = vst [vmem:[#allocation39_spill] sm:$0xff] %v3846_v41  ;;  %v477_v56 = vadd.f32 %v473_v19, %v462_v28  ;;  %v478_v57 = vadd.f32 %v474_v20, %v463_v32  ;;  %v479_v58 = vadd.f32 %v475_v21, %v464_v33  ;;  %v480_v61 = vadd.f32 %v476_v22, %v465_v40  ;;  %v3869_v19 = vld [vmem:[%s3628_s9 + $0x170] sm:$0xff]  ;;  %v3872_v20 = vld [vmem:[%s3628_s9 + $0x178] sm:$0xff]  ;;  %v3875_v21 = vld [vmem:[%s3628_s9 + $0x180] sm:$0xff]  ;;  %s4020_s14 = sld [smem:[#allocation10 + $0xb]] }
  0x61   : > { %5187 = vst [vmem:[#allocation40_spill] sm:$0xff] %v3849_v43  ;;  %v503_v12 = vmul.f32 %v3843_v27, %v502_v51  ;;  %v504_v13 = vmul.f32 %v3846_v41, %v502_v51  ;;  %v505_v17 = vmul.f32 %v3849_v43, %v502_v51  ;;  %v506_v50 = vmul.f32 %v3852_v44, %v502_v51  ;;  %v3880_v40 = vld [vmem:[%s3628_s9 + $0x188] sm:$0xff]  ;;  %v3883_v43 = vld [vmem:[%s3628_s9 + $0x190] sm:$0xff]  ;;  %v3886_v41 = vld [vmem:[%s3628_s9 + $0x198] sm:$0xff]  ;;  %s4024_s15 = sld [smem:[#allocation10 + $0xc]] }
  0x62   : > { %5188 = vst [vmem:[#allocation41_spill] sm:$0xff] %v3852_v44  ;;  %v492_v22 = vadd.f32 %v488_v42, %v477_v56  ;;  %v493_v28 = vadd.f32 %v489_v49, %v478_v57  ;;  %v494_v32 = vadd.f32 %v490_v48, %v479_v58  ;;  %v495_v33 = vadd.f32 %v491_v55, %v480_v61  ;;  %v3897_v56 = vld [vmem:[%s3628_s9 + $0x1a0] sm:$0xff] }
  0x63   : > { %5189 = vst [vmem:[#allocation42_spill] sm:$0xff] %v3859_v62  ;;  %v517_v51 = vstv %s3801_s17  ;;  %v532_v44 = vstv %s3812_s26  ;;  %v547_v27 = vstv %s3818_s28  ;;  %v562_v18 = vstv %s3823_s24  ;;  %s4030_s17 = sld [smem:[#allocation10 + $0xd]] }
  0x64   : > { %5190 = vst [vmem:[#allocation43_spill] sm:$0xff] %v3862_v63  ;;  %v507_v42 = vadd.f32 %v503_v12, %v492_v22  ;;  %v508_v48 = vadd.f32 %v504_v13, %v493_v28  ;;  %v509_v49 = vadd.f32 %v505_v17, %v494_v32  ;;  %v510_v55 = vadd.f32 %v506_v50, %v495_v33  ;;  %v3906_v12 = vld [vmem:[%s3628_s9 + $0x1a8] sm:$0xff]  ;;  %v3909_v13 = vld [vmem:[%s3628_s9 + $0x1b0] sm:$0xff]  ;;  %v3912_v17 = vld [vmem:[%s3628_s9 + $0x1b8] sm:$0xff]  ;;  %s4033_s26 = sld [smem:[#allocation10 + $0xe]] }
  0x65   : > { %5191 = vst [vmem:[#allocation44_spill] sm:$0xff] %v3869_v19  ;;  %v518_v57 = vmul.f32 %v3859_v62, %v517_v51  ;;  %v519_v58 = vmul.f32 %v3862_v63, %v517_v51  ;;  %v520_v61 = vmul.f32 %v3869_v19, %v517_v51  ;;  %v521_v60 = vmul.f32 %v3872_v20, %v517_v51  ;;  %v3919_v33 = vld [vmem:[%s3628_s9 + $0x1c0] sm:$0xff]  ;;  %v3922_v62 = vld [vmem:[%s3628_s9 + $0x1c8] sm:$0xff]  ;;  %s4048_s28 = sld [smem:[#allocation10 + $0xf]] }
  0x66   : > { %5192 = vst [vmem:[#allocation45_spill] sm:$0xff] %v3872_v20  ;;  %v533_v50 = vmul.f32 %v3875_v21, %v532_v44  ;;  %v534_v22 = vmul.f32 %v3880_v40, %v532_v44  ;;  %v535_v28 = vmul.f32 %v3883_v43, %v532_v44  ;;  %v536_v32 = vmul.f32 %v3886_v41, %v532_v44  ;;  %s4052_s24 = sld [smem:[#allocation12]] }
  0x67   : > { %5193 = vst [vmem:[#allocation46_spill] sm:$0xff] %v3875_v21  ;;  %v522_v19 = vadd.f32 %v518_v57, %v507_v42  ;;  %v523_v63 = vadd.f32 %v519_v58, %v508_v48  ;;  %v524_v51 = vadd.f32 %v520_v61, %v509_v49  ;;  %v525_v20 = vadd.f32 %v521_v60, %v510_v55  ;;  %v3937_v57 = vld [vmem:[%s3628_s9 + $0x1e0] sm:$0xff]  ;;  %v3940_v58 = vld [vmem:[%s3628_s9 + $0x1e8] sm:$0xff] }
  0x68   : > { %5194 = vst [vmem:[#allocation47_spill] sm:$0xff] %v3880_v40  ;;  %v548_v40 = vmul.f32 %v3897_v56, %v547_v27  ;;  %v550_v44 = vmul.f32 %v3909_v13, %v547_v27  ;;  %v551_v42 = vmul.f32 %v3912_v17, %v547_v27  ;;  %v563_v61 = vmul.f32 %v3919_v33, %v562_v18  ;;  %v2573_v21 = vld [vmem:[%s3636_s3 + $0x6] sm:$0x1] }
  0x69   : > { %5195 = vst [vmem:[#allocation48_spill] sm:$0xff] %v3883_v43  ;;  %v549_v43 = vmul.f32 %v3906_v12, %v547_v27  ;;  %v537_v60 = vadd.f32 %v533_v50, %v522_v19  ;;  %v538_v48 = vadd.f32 %v534_v22, %v523_v63  ;;  %v539_v49 = vadd.f32 %v535_v28, %v524_v51  ;;  %v3952_v50 = vld [vmem:[%s3628_s9 + $0x1f8] sm:$0xff]  ;;  %v587_v22 = vld [vmem:[%s3636_s3] sm:$0x1] }
  0x6a   : > { %5196 = vst [vmem:[#allocation49_spill] sm:$0xff] %v3886_v41  ;;  %v540_v55 = vadd.f32 %v536_v32, %v525_v20  ;;  %v564_v27 = vmul.f32 %v3922_v62, %v562_v18  ;;  %v565_v63 = vmul.f32 %v3925_v46, %v562_v18  ;;  %v566_v19 = vmul.f32 %v3928_v45, %v562_v18  ;;  %v3949_v20 = vld [vmem:[%s3628_s9 + $0x1f0] sm:$0xff] }
  0x6b   : > { %5197 = vst [vmem:[#allocation50_spill] sm:$0xff] %v3897_v56  ;;  %v552_v28 = vadd.f32 %v548_v40, %v537_v60  ;;  %v553_v32 = vadd.f32 %v549_v43, %v538_v48  ;;  %v554_v51 = vadd.f32 %v550_v44, %v539_v49  ;;  %v591_v18 = vstv %s3888_s0  ;;  %v2571_v44 = vld [vmem:[%s3636_s3 + $0x4] sm:$0x1]  ;;  %s4061_s0 = sld [smem:[#allocation9 + $0x81]] }
  0x6c   : > { %5198 = vst [vmem:[#allocation51_spill] sm:$0xff] %v3906_v12  ;;  %v617_v12 = vstv %s3899_s4  ;;  %v632_v34 = vstv %s3934_s29  ;;  %s4076_s4 = sld [smem:[#allocation9 + $0x83]] }
  0x6d   : > { %5199 = vst [vmem:[#allocation52_spill] sm:$0xff] %v3909_v13  ;;  %v590_v13 = vld [vmem:[%s3636_s3 + $0x3] sm:$0x1]  ;;  %v567_v56 = vadd.f32 %v563_v61, %v552_v28  ;;  %v568_v41 = vadd.f32 %v564_v27, %v553_v32  ;;  %v569_v40 = vadd.f32 %v565_v63, %v554_v51  ;;  %v592_v61 = vmul.f32 %v591_v18, %v587_v22  ;;  %v2578_v28 = vld [vmem:[%s3636_s3 + $0xa] sm:$0x1]  ;;  %s4082_s29 = sld [smem:[#allocation9 + $0x84]] }
  0x6e   : > { %5200 = vst [vmem:[#allocation53_spill] sm:$0xff] %v3912_v17  ;;  %v589_v17 = vld [vmem:[%s3636_s3 + $0x2] sm:$0x1]  ;;  %v2579_v32 = vld [vmem:[%s3636_s3 + $0xb] sm:$0x1] }
  0x6f   : > { %5201 = vst [vmem:[#allocation54_spill] sm:$0xff] %v3919_v33  ;;  %v555_v33 = vadd.f32 %v551_v42, %v540_v55  ;;  %v2572_v42 = vld [vmem:[%s3636_s3 + $0x5] sm:$0x1]  ;;  %v594_v63 = vmul.f32 %v591_v18, %v589_v17 }
  0x70   : > { %5202 = vst [vmem:[#allocation55_spill] sm:$0xff] %v3922_v62  ;;  %v588_v62 = vld [vmem:[%s3636_s3 + $0x1] sm:$0x1] }
  0x71   : > { %5203 = vst [vmem:[#allocation56_spill] sm:$0xff] %v3925_v46  ;;  %v577_v46 = vstv %s3877_s13  ;;  %v570_v43 = vadd.f32 %v566_v19, %v555_v33  ;;  %v593_v27 = vmul.f32 %v591_v18, %v588_v62  ;;  %v595_v33 = vmul.f32 %v591_v18, %v590_v13  ;;  %v2577_v19 = vld [vmem:[%s3636_s3 + $0x9] sm:$0x1]  ;;  %v2581_v18 = vld [vmem:[%s3636_s3 + $0xc] sm:$0x1]  ;;  %s4058_s13 = sld [smem:[#allocation9 + $0x80]] }
  0x72   : > { %5204 = vst [vmem:[#allocation57_spill] sm:$0xff] %v3928_v45  ;;  %v602_v45 = vstv %s3894_s2  ;;  %v578_v60 = vmul.f32 %v3937_v57, %v577_v46  ;;  %v579_v48 = vmul.f32 %v3940_v58, %v577_v46  ;;  %v580_v49 = vmul.f32 %v3949_v20, %v577_v46  ;;  %s4072_s2 = sld [smem:[#allocation9 + $0x82]] }
  0x73   : > { %5205 = vst [vmem:[#allocation58_spill] sm:$0xff] %v3937_v57  ;;  %v581_v55 = vmul.f32 %v3952_v50, %v577_v46  ;;  %v603_v62 = vmul.f32 %v2571_v44, %v602_v45  ;;  %v604_v17 = vmul.f32 %v2572_v42, %v602_v45  ;;  %v605_v22 = vmul.f32 %v2573_v21, %v602_v45  ;;  %v2589_v57 = vld [vmem:[%s3636_s3 + $0x13] sm:$0x1] }
  0x74   : > { %5206 = vst [vmem:[#allocation59_spill] sm:$0xff] %v3940_v58  ;;  %v3978_v51 = vadd.f32 %v578_v60, %v567_v56  ;;  %v3980_v58 = vadd.f32 %v579_v48, %v568_v41  ;;  %v3982_v46 = vadd.f32 %v580_v49, %v569_v40  ;;  %v606_v13 = vmul.f32 %v2574_v39, %v602_v45  ;;  %v2582_v56 = vld [vmem:[%s3636_s3 + $0xd] sm:$0x1]  ;;  %v2583_v60 = vld [vmem:[%s3636_s3 + $0xe] sm:$0x1] }
  0x75   : > { %5207 = vst [vmem:[#allocation60_spill] sm:$0xff] %v3949_v20  ;;  %v618_v41 = vmul.f32 %v2576_v35, %v617_v12  ;;  %v619_v40 = vmul.f32 %v2577_v19, %v617_v12  ;;  %v620_v48 = vmul.f32 %v2578_v28, %v617_v12  ;;  %v2584_v49 = vld [vmem:[%s3636_s3 + $0xf] sm:$0x1]  ;;  %v2587_v20 = vld [vmem:[%s3636_s3 + $0x11] sm:$0x1]  ;;  %v607_v44 = vadd.f32 %v603_v62, %v592_v61 }
  0x76   : > { %5208 = vst [vmem:[#allocation61_spill] sm:$0xff] %v3952_v50  ;;  %v3984_v50 = vadd.f32 %v581_v55, %v570_v43  ;;  %v621_v43 = vmul.f32 %v2579_v32, %v617_v12  ;;  %v2586_v55 = vld [vmem:[%s3636_s3 + $0x10] sm:$0x1]  ;;  %v608_v21 = vadd.f32 %v604_v17, %v593_v27  ;;  %v609_v42 = vadd.f32 %v605_v22, %v594_v63  ;;  %v2588_v45 = vld [vmem:[%s3636_s3 + $0x12] sm:$0x1] }
  0x77   : > { %v610_v39 = vadd.f32 %v606_v13, %v595_v33  ;;  %v647_v35 = vstv %s3942_s10  ;;  %v662_v19 = vstv %s3955_s7  ;;  %v677_v28 = vstv %s3964_s27  ;;  %v2591_v63 = vld [vmem:[%s3636_s3 + $0x14] sm:$0x1]  ;;  %s4084_s10 = sld [smem:[#allocation9 + $0x85]] }
  0x78   : > { %v622_v12 = vadd.f32 %v618_v41, %v607_v44  ;;  %v623_v32 = vadd.f32 %v619_v40, %v608_v21  ;;  %v624_v61 = vadd.f32 %v620_v48, %v609_v42  ;;  %v633_v33 = vmul.f32 %v2581_v18, %v632_v34  ;;  %v2592_v13 = vld [vmem:[%s3636_s3 + $0x15] sm:$0x1]  ;;  %v2596_v44 = vld [vmem:[%s3636_s3 + $0x18] sm:$0x1]  ;;  %v2597_v21 = vld [vmem:[%s3636_s3 + $0x19] sm:$0x1] }
  0x79   : > { %v625_v27 = vadd.f32 %v621_v43, %v610_v39  ;;  %v634_v62 = vmul.f32 %v2582_v56, %v632_v34  ;;  %v635_v17 = vmul.f32 %v2583_v60, %v632_v34  ;;  %v636_v22 = vmul.f32 %v2584_v49, %v632_v34  ;;  %v2598_v60 = vld [vmem:[%s3636_s3 + $0x1a] sm:$0x1]  ;;  %v2599_v42 = vld [vmem:[%s3636_s3 + $0x1b] sm:$0x1]  ;;  %s4106_s7 = sld [smem:[#allocation9 + $0x86]] }
  0x7a   : > { %v648_v11 = vmul.f32 %v2586_v55, %v647_v35  ;;  %v649_v10 = vmul.f32 %v2587_v20, %v647_v35  ;;  %v650_v41 = vmul.f32 %v2588_v45, %v647_v35  ;;  %v651_v40 = vmul.f32 %v2589_v57, %v647_v35  ;;  %s4108_s27 = sld [smem:[#allocation9 + $0x87]] }
  0x7b   : > { %v637_v48 = vadd.f32 %v633_v33, %v622_v12  ;;  %v638_v43 = vadd.f32 %v634_v62, %v623_v32  ;;  %v639_v18 = vadd.f32 %v635_v17, %v624_v61  ;;  %v640_v56 = vadd.f32 %v636_v22, %v625_v27  ;;  %v2601_v12 = vld [vmem:[%s3636_s3 + $0x1c] sm:$0x1]  ;;  %v2602_v32 = vld [vmem:[%s3636_s3 + $0x1d] sm:$0x1]  ;;  %v2603_v61 = vld [vmem:[%s3636_s3 + $0x1e] sm:$0x1] }
  0x7c   : > { %v663_v34 = vmul.f32 %v2591_v63, %v662_v19  ;;  %v664_v49 = vmul.f32 %v2592_v13, %v662_v19  ;;  %v665_v55 = vmul.f32 %v2593_v26, %v662_v19  ;;  %v666_v20 = vmul.f32 %v2594_v25, %v662_v19  ;;  %v2604_v27 = vld [vmem:[%s3636_s3 + $0x1f] sm:$0x1]  ;;  %v2606_v26 = vld [vmem:[%s3636_s3 + $0x20] sm:$0x1]  ;;  %v2607_v25 = vld [vmem:[%s3636_s3 + $0x21] sm:$0x1] }
  0x7d   : > { %v652_v39 = vadd.f32 %v648_v11, %v637_v48  ;;  %v653_v57 = vadd.f32 %v649_v10, %v638_v43  ;;  %v654_v45 = vadd.f32 %v650_v41, %v639_v18  ;;  %v655_v35 = vadd.f32 %v651_v40, %v640_v56  ;;  %v2608_v13 = vld [vmem:[%s3636_s3 + $0x22] sm:$0x1]  ;;  %v2609_v41 = vld [vmem:[%s3636_s3 + $0x23] sm:$0x1] }
  0x7e   : > { %v678_v33 = vmul.f32 %v2596_v44, %v677_v28  ;;  %v679_v63 = vmul.f32 %v2597_v21, %v677_v28  ;;  %v680_v62 = vmul.f32 %v2598_v60, %v677_v28  ;;  %v681_v17 = vmul.f32 %v2599_v42, %v677_v28  ;;  %v2611_v60 = vld [vmem:[%s3636_s3 + $0x24] sm:$0x1] }
  0x7f   : > { %v667_v10 = vadd.f32 %v663_v34, %v652_v39  ;;  %v668_v11 = vadd.f32 %v664_v49, %v653_v57  ;;  %v669_v19 = vadd.f32 %v665_v55, %v654_v45  ;;  %v670_v22 = vadd.f32 %v666_v20, %v655_v35  ;;  %v2612_v20 = vld [vmem:[%s3636_s3 + $0x25] sm:$0x1]  ;;  %v2613_v39 = vld [vmem:[%s3636_s3 + $0x26] sm:$0x1]  ;;  %v2614_v57 = vld [vmem:[%s3636_s3 + $0x27] sm:$0x1] }
  0x80   : > { %v692_v40 = vstv %s3986_s8  ;;  %v707_v44 = vstv %s3996_s25  ;;  %v722_v48 = vstv %s4002_s12  ;;  %v737_v28 = vstv %s4005_s11  ;;  %s4120_s8 = sld [smem:[#allocation9 + $0x88]]  ;;  %s2494_s25 = sshll.u32 %s3624_s16, 7 }
  0x81   : > { %v682_v43 = vadd.f32 %v678_v33, %v667_v10  ;;  %v683_v18 = vadd.f32 %v679_v63, %v668_v11  ;;  %v684_v56 = vadd.f32 %v680_v62, %v669_v19  ;;  %v685_v21 = vadd.f32 %v681_v17, %v670_v22  ;;  %v2616_v10 = vld [vmem:[%s3636_s3 + $0x28] sm:$0x1]  ;;  %v2617_v11 = vld [vmem:[%s3636_s3 + $0x29] sm:$0x1]  ;;  %v2619_v19 = vld [vmem:[%s3636_s3 + $0x2b] sm:$0x1] }
  0x82   : > { %v693_v42 = vmul.f32 %v2601_v12, %v692_v40  ;;  %v694_v34 = vmul.f32 %v2602_v32, %v692_v40  ;;  %v695_v49 = vmul.f32 %v2603_v61, %v692_v40  ;;  %v696_v55 = vmul.f32 %v2604_v27, %v692_v40  ;;  %v2618_v61 = vld [vmem:[%s3636_s3 + $0x2a] sm:$0x1]  ;;  %s4127_s12 = sld [smem:[#allocation9 + $0x89]] }
  0x83   : > { %v708_v45 = vmul.f32 %v2606_v26, %v707_v44  ;;  %v709_v35 = vmul.f32 %v2607_v25, %v707_v44  ;;  %v710_v33 = vmul.f32 %v2608_v13, %v707_v44  ;;  %v711_v63 = vmul.f32 %v2609_v41, %v707_v44  ;;  %s4133_s11 = sld [smem:[#allocation9 + $0x8a]] }
  0x84   : > { %v697_v62 = vadd.f32 %v693_v42, %v682_v43  ;;  %v698_v17 = vadd.f32 %v694_v34, %v683_v18  ;;  %v699_v12 = vadd.f32 %v695_v49, %v684_v56  ;;  %v700_v32 = vadd.f32 %v696_v55, %v685_v21  ;;  %v2621_v43 = vld [vmem:[%s3636_s3 + $0x2c] sm:$0x1]  ;;  %v2622_v18 = vld [vmem:[%s3636_s3 + $0x2d] sm:$0x1]  ;;  %v2623_v56 = vld [vmem:[%s3636_s3 + $0x2e] sm:$0x1] }
  0x85   : > { %v723_v27 = vmul.f32 %v2611_v60, %v722_v48  ;;  %v724_v22 = vmul.f32 %v2612_v20, %v722_v48  ;;  %v725_v26 = vmul.f32 %v2613_v39, %v722_v48  ;;  %v726_v25 = vmul.f32 %v2614_v57, %v722_v48  ;;  %v2624_v21 = vld [vmem:[%s3636_s3 + $0x2f] sm:$0x1]  ;;  %v2626_v55 = vld [vmem:[%s3636_s3 + $0x30] sm:$0x1]  ;;  %v2627_v48 = vld [vmem:[%s3636_s3 + $0x31] sm:$0x1] }
  0x86   : > { %v712_v13 = vadd.f32 %v708_v45, %v697_v62  ;;  %v713_v41 = vadd.f32 %v709_v35, %v698_v17  ;;  %v714_v40 = vadd.f32 %v710_v33, %v699_v12  ;;  %v715_v44 = vadd.f32 %v711_v63, %v700_v32  ;;  %v2628_v35 = vld [vmem:[%s3636_s3 + $0x32] sm:$0x1]  ;;  %v2629_v33 = vld [vmem:[%s3636_s3 + $0x33] sm:$0x1] }
  0x87   : > { %v738_v42 = vmul.f32 %v2616_v10, %v737_v28  ;;  %v739_v60 = vmul.f32 %v2617_v11, %v737_v28  ;;  %v740_v34 = vmul.f32 %v2618_v61, %v737_v28  ;;  %v741_v49 = vmul.f32 %v2619_v19, %v737_v28  ;;  %v2631_v61 = vld [vmem:[%s3636_s3 + $0x34] sm:$0x1] }
  0x88   : > { %v727_v20 = vadd.f32 %v723_v27, %v712_v13  ;;  %v728_v39 = vadd.f32 %v724_v22, %v713_v41  ;;  %v729_v57 = vadd.f32 %v725_v26, %v714_v40  ;;  %v730_v45 = vadd.f32 %v726_v25, %v715_v44  ;;  %v2632_v25 = vld [vmem:[%s3636_s3 + $0x35] sm:$0x1]  ;;  %v2633_v13 = vld [vmem:[%s3636_s3 + $0x36] sm:$0x1]  ;;  %v2634_v41 = vld [vmem:[%s3636_s3 + $0x37] sm:$0x1] }
  0x89   : > { %v752_v63 = vstv %s4020_s14  ;;  %v767_v10 = vstv %s4024_s15  ;;  %v782_v62 = vstv %s4030_s17  ;;  %v797_v28 = vstv %s4033_s26  ;;  %s4136_s14 = sld [smem:[#allocation9 + $0x8b]]  ;;  %s4140_s15 = scalar_lea.vmem [#allocation13], %s2494_s25 }
  0x8a   : > { %v742_v17 = vadd.f32 %v738_v42, %v727_v20  ;;  %v743_v12 = vadd.f32 %v739_v60, %v728_v39  ;;  %v744_v32 = vadd.f32 %v740_v34, %v729_v57  ;;  %v745_v11 = vadd.f32 %v741_v49, %v730_v45  ;;  %v2636_v20 = vld [vmem:[%s3636_s3 + $0x38] sm:$0x1]  ;;  %v2639_v45 = vld [vmem:[%s3636_s3 + $0x3b] sm:$0x1]  ;;  %s4148_s17 = sld [smem:[#allocation9 + $0x8c]] }
  0x8b   : > { %v753_v19 = vmul.f32 %v2621_v43, %v752_v63  ;;  %v754_v27 = vmul.f32 %v2622_v18, %v752_v63  ;;  %v755_v22 = vmul.f32 %v2623_v56, %v752_v63  ;;  %v756_v26 = vmul.f32 %v2624_v21, %v752_v63  ;;  %v2637_v43 = vld [vmem:[%s3636_s3 + $0x39] sm:$0x1]  ;;  %v2638_v18 = vld [vmem:[%s3636_s3 + $0x3a] sm:$0x1]  ;;  %s4153_s26 = sld [smem:[#allocation9 + $0x8d]] }
  0x8c   : > { %v768_v40 = vmul.f32 %v2626_v55, %v767_v10  ;;  %v769_v44 = vmul.f32 %v2627_v48, %v767_v10  ;;  %v770_v42 = vmul.f32 %v2628_v35, %v767_v10  ;;  %v771_v60 = vmul.f32 %v2629_v33, %v767_v10  ;;  %s4246_s25 = sld [smem:[#allocation10 + $0x89]] }
  0x8d   : > { %v757_v34 = vadd.f32 %v753_v19, %v742_v17  ;;  %v758_v49 = vadd.f32 %v754_v27, %v743_v12  ;;  %v759_v39 = vadd.f32 %v755_v22, %v744_v32  ;;  %v760_v57 = vadd.f32 %v756_v26, %v745_v11  ;;  %v2641_v32 = vld [vmem:[%s3636_s3 + $0x3c] sm:$0x1]  ;;  %v2642_v11 = vld [vmem:[%s3636_s3 + $0x3d] sm:$0x1]  ;;  %v2643_v22 = vld [vmem:[%s3636_s3 + $0x3e] sm:$0x1] }
  0x8e   : > { %v783_v56 = vmul.f32 %v2631_v61, %v782_v62  ;;  %v784_v6 = vmul.f32 %v2632_v25, %v782_v62  ;;  %v785_v21 = vmul.f32 %v2633_v13, %v782_v62  ;;  %v786_v63 = vmul.f32 %v2634_v41, %v782_v62  ;;  %v2644_v26 = vld [vmem:[%s3636_s3 + $0x3f] sm:$0x1] }
  0x8f   : > { %v772_v59 = vadd.f32 %v768_v40, %v757_v34  ;;  %v773_v55 = vadd.f32 %v769_v44, %v758_v49  ;;  %v774_v48 = vadd.f32 %v770_v42, %v759_v39  ;;  %v775_v35 = vadd.f32 %v771_v60, %v760_v57 }
  0x90   : > { %v798_v33 = vmul.f32 %v2636_v20, %v797_v28  ;;  %v799_v10 = vmul.f32 %v2637_v43, %v797_v28  ;;  %v800_v17 = vmul.f32 %v2638_v18, %v797_v28  ;;  %v801_v12 = vmul.f32 %v2639_v45, %v797_v28 }
  0x91   : > { %v787_v61 = vadd.f32 %v783_v56, %v772_v59  ;;  %v788_v62 = vadd.f32 %v784_v6, %v773_v55  ;;  %v789_v19 = vadd.f32 %v785_v21, %v774_v48  ;;  %v790_v27 = vadd.f32 %v786_v63, %v775_v35 }
  0x92   : > { %v812_v25 = vstv %s4048_s28  ;;  %v838_v13 = vstv %s4052_s24  ;;  %v868_v41 = vstv %s4058_s13  ;;  %v878_v40 = vstv %s4061_s0  ;;  %s4165_s28 = sld [smem:[#allocation9 + $0x8e]] }
  0x93   : > { %v802_v44 = vadd.f32 %v798_v33, %v787_v61  ;;  %v803_v28 = vadd.f32 %v799_v10, %v788_v62  ;;  %v804_v42 = vadd.f32 %v800_v17, %v789_v19  ;;  %v805_v60 = vadd.f32 %v801_v12, %v790_v27  ;;  %s4169_s24 = sld [smem:[#allocation9 + $0x8f]] }
  0x94   : > { %v813_v59 = vmul.f32 %v2641_v32, %v812_v25  ;;  %v814_v6 = vmul.f32 %v2642_v11, %v812_v25  ;;  %v815_v20 = vmul.f32 %v2643_v22, %v812_v25  ;;  %v816_v34 = vmul.f32 %v2644_v26, %v812_v25  ;;  %s4179_s13 = sld [smem:[#allocation10 + $0x80]] }
  0x95   : > { %v869_v49 = vmul.f32 %v868_v41, %v3655_v0  ;;  %v870_v39 = vmul.f32 %v868_v41, %v3660_v1  ;;  %v871_v57 = vmul.f32 %v868_v41, %v3663_v2  ;;  %v872_v43 = vmul.f32 %v868_v41, %v3666_v3  ;;  %s4183_s0 = sld [smem:[#allocation10 + $0x81]] }
  0x96   : > { %v817_v18 = vadd.f32 %v813_v59, %v802_v44  ;;  %v818_v45 = vadd.f32 %v814_v6, %v803_v28  ;;  %v819_v56 = vadd.f32 %v815_v20, %v804_v42  ;;  %v820_v21 = vadd.f32 %v816_v34, %v805_v60 }
  0x97   : > { %v879_v63 = vmul.f32 %v3671_v4, %v878_v40  ;;  %v880_v55 = vmul.f32 %v3674_v5, %v878_v40  ;;  %v881_v48 = vmul.f32 %v3679_v7, %v878_v40  ;;  %v882_v0 = vmul.f32 %v3682_v8, %v878_v40 }
  0x98   : > { %v825_v1 = vperm.slane %v817_v18, 0  ;;  %v826_v2 = vperm.slane %v818_v45, 0  ;;  %v827_v35 = vperm.slane %v819_v56, 0  ;;  %v828_v3 = vperm.slane %v820_v21, 0 }
  0x99   : > { %v883_v33 = vadd.f32 %v879_v63, %v869_v49  ;;  %v884_v10 = vadd.f32 %v880_v55, %v870_v39  ;;  %v885_v17 = vadd.f32 %v881_v48, %v871_v57  ;;  %v886_v12 = vadd.f32 %v882_v0, %v872_v43  ;;  %v5209_v0 = vld [vmem:[#allocation22_spill] sm:$0xff] }
  0x9a   : > { %v833_v4 = vadd.f32 %v825_v1, %v3978_v51  ;;  %v834_v32 = vadd.f32 %v826_v2, %v3980_v58  ;;  %v835_v5 = vadd.f32 %v827_v35, %v3982_v46  ;;  %v836_v7 = vadd.f32 %v828_v3, %v3984_v50  ;;  %v5210_v3 = vld [vmem:[#allocation23_spill] sm:$0xff] }
  0x9b   : > { %v892_v11 = vstv %s4072_s2  ;;  %v906_v61 = vstv %s4076_s4  ;;  %v920_v8 = vstv %s4082_s29  ;;  %v934_v62 = vstv %s4084_s10  ;;  %s4187_s2 = sld [smem:[#allocation10 + $0x82]] }
  0x9c   : > { %v839_v19 = vadd.f32 %v838_v13, %v833_v4  ;;  %v840_v27 = vadd.f32 %v838_v13, %v834_v32  ;;  %v841_v22 = vadd.f32 %v838_v13, %v835_v5  ;;  %v842_v26 = vadd.f32 %v838_v13, %v836_v7  ;;  %v5213_v7 = vld [vmem:[#allocation26_spill] sm:$0xff]  ;;  %s4191_s4 = sld [smem:[#allocation10 + $0x83]] }
  0x9d   : > { %v893_v25 = vmul.f32 %v3685_v9, %v892_v11  ;;  %v894_v41 = vmul.f32 %v3694_v14, %v892_v11  ;;  %v895_v51 = vmul.f32 %v3697_v15, %v892_v11  ;;  %v896_v58 = vmul.f32 %v3700_v16, %v892_v11  ;;  %s4195_s29 = sld [smem:[#allocation10 + $0x84]] }
  0x9e   : > { %v843_v46 = vmul.f32 0.5, %v839_v19  ;;  %v844_v50 = vmul.f32 0.5, %v840_v27  ;;  %v845_v40 = vmul.f32 0.5, %v841_v22  ;;  %v846_v44 = vmul.f32 0.5, %v842_v26  ;;  %v5214_v26 = vld [vmem:[#allocation27_spill] sm:$0xff]  ;;  %s4199_s10 = sld [smem:[#allocation10 + $0x85]] }
  0x9f   : > { %v897_v28 = vadd.f32 %v893_v25, %v883_v33  ;;  %v898_v42 = vadd.f32 %v894_v41, %v884_v10  ;;  %v899_v60 = vadd.f32 %v895_v51, %v885_v17  ;;  %v900_v13 = vadd.f32 %v896_v58, %v886_v12  ;;  %v5211_v33 = vld [vmem:[#allocation24_spill] sm:$0xff]  ;;  %v5212_v10 = vld [vmem:[#allocation25_spill] sm:$0xff] }
  0xa0   : > { %3227 = vtanh.f32 %v843_v46  ;;  %v907_v9 = vmul.f32 %v3707_v23, %v906_v61  ;;  %v908_v14 = vmul.f32 %v3710_v24, %v906_v61  ;;  %v909_v15 = vmul.f32 %v3717_v29, %v906_v61  ;;  %v5215_v41 = vld [vmem:[#allocation28_spill] sm:$0xff]  ;;  %v5216_v46 = vld [vmem:[#allocation29_spill] sm:$0xff] }
  0xa1   : > { %3229 = vtanh.f32 %v844_v50  ;;  %v910_v16 = vmul.f32 %v3720_v30, %v906_v61  ;;  %v921_v59 = vmul.f32 %v3723_v31, %v920_v8  ;;  %v922_v6 = vmul.f32 %v3728_v36, %v920_v8 }
  0xa2   : > { %3231 = vtanh.f32 %v845_v40  ;;  %v911_v20 = vadd.f32 %v907_v9, %v897_v28  ;;  %v912_v34 = vadd.f32 %v908_v14, %v898_v42  ;;  %v913_v49 = vadd.f32 %v909_v15, %v899_v60  ;;  %v5217_v60 = vld [vmem:[#allocation30_spill] sm:$0xff]  ;;  %v5218_v9 = vld [vmem:[#allocation31_spill] sm:$0xff] }
  0xa3   : > { %3233 = vtanh.f32 %v846_v44  ;;  %v914_v39 = vadd.f32 %v910_v16, %v900_v13  ;;  %v923_v23 = vmul.f32 %v3731_v37, %v920_v8  ;;  %v924_v24 = vmul.f32 %v3734_v38, %v920_v8  ;;  %v5219_v16 = vld [vmem:[#allocation32_spill] sm:$0xff] }
  0xa4   : > { %v925_v29 = vadd.f32 %v921_v59, %v911_v20  ;;  %v926_v57 = vadd.f32 %v922_v6, %v912_v34  ;;  %v935_v30 = vmul.f32 %v3745_v47, %v934_v62  ;;  %v936_v31 = vmul.f32 %v3754_v52, %v934_v62  ;;  %v5220_v6 = vld [vmem:[#allocation33_spill] sm:$0xff] }
  0xa5   : > { %v927_v36 = vadd.f32 %v923_v23, %v913_v49  ;;  %v928_v43 = vadd.f32 %v924_v24, %v914_v39  ;;  %v937_v18 = vmul.f32 %v3757_v53, %v934_v62  ;;  %v938_v45 = vmul.f32 %v3760_v54, %v934_v62  ;;  %v5221_v23 = vld [vmem:[#allocation34_spill] sm:$0xff] }
  0xa6   : > { %v3228_v56 = vpop.eup %3227  ;;  %v939_v37 = vadd.f32 %v935_v30, %v925_v29  ;;  %v940_v21 = vadd.f32 %v936_v31, %v926_v57  ;;  %v948_v63 = vstv %s4106_s7  ;;  %v962_v38 = vstv %s4108_s27  ;;  %v5222_v29 = vld [vmem:[#allocation35_spill] sm:$0xff]  ;;  %s4219_s7 = sld [smem:[#allocation10 + $0x86]] }
  0xa7   : > { %v3230_v55 = vpop.eup %3229  ;;  %v851_v47 = vmul.f32 0.5, %v3228_v56  ;;  %v941_v48 = vadd.f32 %v937_v18, %v927_v36  ;;  %v942_v52 = vadd.f32 %v938_v45, %v928_v43  ;;  %v949_v1 = vmul.f32 %v5209_v0, %v948_v63  ;;  %v5223_v36 = vld [vmem:[#allocation36_spill] sm:$0xff]  ;;  %v5224_v18 = vld [vmem:[#allocation37_spill] sm:$0xff]  ;;  %s4227_s27 = sld [smem:[#allocation10 + $0x87]] }
  0xa8   : > { %v3232_v2 = vpop.eup %3231  ;;  %v852_v35 = vmul.f32 0.5, %v3230_v55  ;;  %v950_v53 = vmul.f32 %v5210_v3, %v948_v63  ;;  %v951_v54 = vmul.f32 %v5211_v33, %v948_v63  ;;  %v952_v17 = vmul.f32 %v5212_v10, %v948_v63 }
  0xa9   : > { %v3234_v12 = vpop.eup %3233  ;;  %v853_v4 = vmul.f32 0.5, %v3232_v2  ;;  %v855_v32 = vadd.f32 0.5, %v851_v47  ;;  %v953_v5 = vadd.f32 %v949_v1, %v939_v37  ;;  %v963_v11 = vmul.f32 %v5213_v7, %v962_v38  ;;  %v5225_v47 = vld [vmem:[#allocation38_spill] sm:$0xff]  ;;  %v5227_v1 = vld [vmem:[#allocation40_spill] sm:$0xff] }
  0xaa   : > { %v854_v61 = vmul.f32 0.5, %v3234_v12  ;;  %v856_v8 = vadd.f32 0.5, %v852_v35  ;;  %v954_v62 = vadd.f32 %v950_v53, %v940_v21  ;;  %v955_v19 = vadd.f32 %v951_v54, %v941_v48  ;;  %v5228_v35 = vld [vmem:[#allocation41_spill] sm:$0xff]  ;;  %v5229_v53 = vld [vmem:[#allocation42_spill] sm:$0xff]  ;;  %v5230_v54 = vld [vmem:[#allocation43_spill] sm:$0xff] }
  0xab   : > { %v857_v27 = vadd.f32 0.5, %v853_v4  ;;  %859 = vst [vmem:[%s4140_s15] sm:$0xff] %v855_v32  ;;  %v956_v22 = vadd.f32 %v952_v17, %v942_v52  ;;  %v964_v25 = vmul.f32 %v5214_v26, %v962_v38  ;;  %v965_v51 = vmul.f32 %v5215_v41, %v962_v38  ;;  %v5226_v52 = vld [vmem:[#allocation39_spill] sm:$0xff]  ;;  %v5231_v4 = vld [vmem:[#allocation44_spill] sm:$0xff] }
  0xac   : > { %v858_v58 = vadd.f32 0.5, %v854_v61  ;;  %860 = vst [vmem:[%s4140_s15 + $0x8] sm:$0xff] %v856_v8  ;;  %v966_v50 = vmul.f32 %v5216_v46, %v962_v38  ;;  %v967_v40 = vadd.f32 %v963_v11, %v953_v5  ;;  %v976_v44 = vstv %s4120_s8  ;;  %v5232_v5 = vld [vmem:[#allocation45_spill] sm:$0xff]  ;;  %v5235_v46 = vld [vmem:[#allocation48_spill] sm:$0xff]  ;;  %s4243_s8 = sld [smem:[#allocation10 + $0x88]] }
  0xad   : > { %861 = vst [vmem:[%s4140_s15 + $0x10] sm:$0xff] %v857_v27  ;;  %v968_v28 = vadd.f32 %v964_v25, %v954_v62  ;;  %v969_v42 = vadd.f32 %v965_v51, %v955_v19  ;;  %v977_v13 = vmul.f32 %v5217_v60, %v976_v44  ;;  %v978_v14 = vmul.f32 %v5218_v9, %v976_v44  ;;  %v5234_v25 = vld [vmem:[#allocation47_spill] sm:$0xff]  ;;  %v5237_v60 = vld [vmem:[#allocation50_spill] sm:$0xff] }
  0xae   : > { %862 = vst [vmem:[%s4140_s15 + $0x18] sm:$0xff] %v858_v58  ;;  %v970_v15 = vadd.f32 %v966_v50, %v956_v22  ;;  %v979_v59 = vmul.f32 %v5219_v16, %v976_v44  ;;  %v980_v20 = vmul.f32 %v5220_v6, %v976_v44  ;;  %v990_v34 = vstv %s4127_s12  ;;  %v5233_v22 = vld [vmem:[#allocation46_spill] sm:$0xff]  ;;  %v5238_v9 = vld [vmem:[#allocation51_spill] sm:$0xff]  ;;  %s4255_s12 = sld [smem:[#allocation10 + $0x8a]] }
  0xaf   : > { %v981_v49 = vadd.f32 %v977_v13, %v967_v40  ;;  %v982_v39 = vadd.f32 %v978_v14, %v968_v28  ;;  %v991_v24 = vmul.f32 %v5221_v23, %v990_v34  ;;  %v992_v57 = vmul.f32 %v5222_v29, %v990_v34  ;;  %v5236_v40 = vld [vmem:[#allocation49_spill] sm:$0xff] }
  0xb0   : > { %v983_v30 = vadd.f32 %v979_v59, %v969_v42  ;;  %v984_v31 = vadd.f32 %v980_v20, %v970_v15  ;;  %v993_v43 = vmul.f32 %v5223_v36, %v990_v34  ;;  %v994_v45 = vmul.f32 %v5224_v18, %v990_v34  ;;  %v5239_v59 = vld [vmem:[#allocation52_spill] sm:$0xff]  ;;  %v5240_v20 = vld [vmem:[#allocation53_spill] sm:$0xff]  ;;  %v5242_v36 = vld [vmem:[#allocation55_spill] sm:$0xff] }
  0xb1   : > { %v995_v56 = vadd.f32 %v991_v24, %v981_v49  ;;  %v996_v37 = vadd.f32 %v992_v57, %v982_v39  ;;  %v1004_v21 = vstv %s4133_s11  ;;  %v1018_v63 = vstv %s4136_s14  ;;  %v5243_v18 = vld [vmem:[#allocation56_spill] sm:$0xff]  ;;  %s4259_s11 = sld [smem:[#allocation10 + $0x8b]] }
  0xb2   : > { %v997_v38 = vadd.f32 %v993_v43, %v983_v30  ;;  %v998_v55 = vadd.f32 %v994_v45, %v984_v31  ;;  %v1005_v48 = vmul.f32 %v5225_v47, %v1004_v21  ;;  %v1006_v0 = vmul.f32 %v5226_v52, %v1004_v21  ;;  %v5241_v30 = vld [vmem:[#allocation54_spill] sm:$0xff]  ;;  %s4271_s14 = sld [smem:[#allocation10 + $0x8c]] }
  0xb3   : > { %v1007_v2 = vmul.f32 %v5227_v1, %v1004_v21  ;;  %v1008_v3 = vmul.f32 %v5228_v35, %v1004_v21  ;;  %v1019_v33 = vmul.f32 %v5229_v53, %v1018_v63  ;;  %v1020_v10 = vmul.f32 %v5230_v54, %v1018_v63  ;;  %v5245_v21 = vld [vmem:[#allocation58_spill] sm:$0xff] }
  0xb4   : > { %v1009_v17 = vadd.f32 %v1005_v48, %v995_v56  ;;  %v1010_v12 = vadd.f32 %v1006_v0, %v996_v37  ;;  %v1021_v32 = vmul.f32 %v5231_v4, %v1018_v63  ;;  %v1022_v7 = vmul.f32 %v5232_v5, %v1018_v63  ;;  %v5244_v56 = vld [vmem:[#allocation57_spill] sm:$0xff]  ;;  %v1084_v47 = vld [vmem:[%s3636_s3] sm:$0x1]  ;;  %v1085_v48 = vld [vmem:[%s3636_s3 + $0x1] sm:$0x1] }
  0xb5   : > { %v1011_v11 = vadd.f32 %v1007_v2, %v997_v38  ;;  %v1012_v61 = vadd.f32 %v1008_v3, %v998_v55  ;;  %v1032_v8 = vstv %s4148_s17  ;;  %v1046_v62 = vstv %s4153_s26  ;;  %v5246_v38 = vld [vmem:[#allocation59_spill] sm:$0xff]  ;;  %v1086_v52 = vld [vmem:[%s3636_s3 + $0x2] sm:$0x1]  ;;  %v5247_v2 = vld [vmem:[#allocation60_spill] sm:$0xff]  ;;  %s4274_s17 = sld [smem:[#allocation10 + $0x8d]] }
  0xb6   : > { %v1023_v19 = vadd.f32 %v1019_v33, %v1009_v17  ;;  %v1024_v27 = vadd.f32 %v1020_v10, %v1010_v12  ;;  %v1033_v26 = vmul.f32 %v5233_v22, %v1032_v8  ;;  %v1034_v41 = vmul.f32 %v5234_v25, %v1032_v8  ;;  %v5248_v3 = vld [vmem:[#allocation61_spill] sm:$0xff]  ;;  %v1087_v33 = vld [vmem:[%s3636_s3 + $0x3] sm:$0x1]  ;;  %v2723_v54 = vld [vmem:[%s3636_s3 + $0x4] sm:$0x1]  ;;  %s4280_s26 = sld [smem:[#allocation10 + $0x8e]] }
  0xb7   : > { %v1025_v51 = vadd.f32 %v1021_v32, %v1011_v11  ;;  %v1026_v58 = vadd.f32 %v1022_v7, %v1012_v61  ;;  %v1035_v50 = vmul.f32 %v5235_v46, %v1032_v8  ;;  %v1036_v44 = vmul.f32 %v5236_v40, %v1032_v8  ;;  %v2724_v10 = vld [vmem:[%s3636_s3 + $0x5] sm:$0x1]  ;;  %v2725_v32 = vld [vmem:[%s3636_s3 + $0x6] sm:$0x1]  ;;  %v2726_v5 = vld [vmem:[%s3636_s3 + $0x7] sm:$0x1] }
  0xb8   : > { %v1037_v28 = vadd.f32 %v1033_v26, %v1023_v19  ;;  %v1038_v42 = vadd.f32 %v1034_v41, %v1024_v27  ;;  %v1047_v13 = vmul.f32 %v5237_v60, %v1046_v62  ;;  %v1048_v14 = vmul.f32 %v5238_v9, %v1046_v62  ;;  %v2728_v19 = vld [vmem:[%s3636_s3 + $0x8] sm:$0x1]  ;;  %v2729_v27 = vld [vmem:[%s3636_s3 + $0x9] sm:$0x1]  ;;  %v2733_v46 = vld [vmem:[%s3636_s3 + $0xc] sm:$0x1] }
  0xb9   : > { %v1039_v15 = vadd.f32 %v1035_v50, %v1025_v51  ;;  %v1040_v16 = vadd.f32 %v1036_v44, %v1026_v58  ;;  %v1049_v6 = vmul.f32 %v5239_v59, %v1046_v62  ;;  %v1050_v34 = vmul.f32 %v5240_v20, %v1046_v62  ;;  %v2730_v51 = vld [vmem:[%s3636_s3 + $0xa] sm:$0x1]  ;;  %v2731_v58 = vld [vmem:[%s3636_s3 + $0xb] sm:$0x1]  ;;  %v2735_v60 = vld [vmem:[%s3636_s3 + $0xe] sm:$0x1] }
  0xba   : > { %v1051_v49 = vadd.f32 %v1047_v13, %v1037_v28  ;;  %v1052_v39 = vadd.f32 %v1048_v14, %v1038_v42  ;;  %v1060_v23 = vstv %s4165_s28  ;;  %v1074_v24 = vstv %s4169_s24  ;;  %v2734_v42 = vld [vmem:[%s3636_s3 + $0xd] sm:$0x1]  ;;  %v2736_v13 = vld [vmem:[%s3636_s3 + $0xf] sm:$0x1]  ;;  %s4285_s28 = sld [smem:[#allocation10 + $0x8f]] }
  0xbb   : > { %v1053_v29 = vadd.f32 %v1049_v6, %v1039_v15  ;;  %v1054_v57 = vadd.f32 %v1050_v34, %v1040_v16  ;;  %v1061_v31 = vmul.f32 %v5241_v30, %v1060_v23  ;;  %v1062_v43 = vmul.f32 %v5242_v36, %v1060_v23  ;;  %v2740_v30 = vld [vmem:[%s3636_s3 + $0x12] sm:$0x1]  ;;  %s4289_s24 = sld [smem:[#allocation12 + $0x1]] }
  0xbc   : > { %v1063_v45 = vmul.f32 %v5243_v18, %v1060_v23  ;;  %v1064_v37 = vmul.f32 %v5244_v56, %v1060_v23  ;;  %v1075_v63 = vmul.f32 %v5245_v21, %v1074_v24  ;;  %v1076_v55 = vmul.f32 %v5246_v38, %v1074_v24  ;;  %v2743_v56 = vld [vmem:[%s3636_s3 + $0x14] sm:$0x1] }
  0xbd   : > { %v1065_v0 = vadd.f32 %v1061_v31, %v1051_v49  ;;  %v1066_v1 = vadd.f32 %v1062_v43, %v1052_v39  ;;  %v1077_v35 = vmul.f32 %v5247_v2, %v1074_v24  ;;  %v1078_v53 = vmul.f32 %v5248_v3, %v1074_v24  ;;  %v2738_v49 = vld [vmem:[%s3636_s3 + $0x10] sm:$0x1]  ;;  %v2741_v31 = vld [vmem:[%s3636_s3 + $0x13] sm:$0x1] }
  0xbe   : > { %v1067_v17 = vadd.f32 %v1063_v45, %v1053_v29  ;;  %v1068_v12 = vadd.f32 %v1064_v37, %v1054_v57  ;;  %v1088_v4 = vstv %s4179_s13  ;;  %v1098_v7 = vstv %s4183_s0  ;;  %v2739_v57 = vld [vmem:[%s3636_s3 + $0x11] sm:$0x1]  ;;  %s4301_s13 = sld [smem:[#allocation9 + $0x100]] }
  0xbf   : > { %v4221_v11 = vadd.f32 %v1075_v63, %v1065_v0  ;;  %v4223_v61 = vadd.f32 %v1076_v55, %v1066_v1  ;;  %v1089_v8 = vmul.f32 %v1088_v4, %v1084_v47  ;;  %v1090_v62 = vmul.f32 %v1088_v4, %v1085_v48  ;;  %v2744_v55 = vld [vmem:[%s3636_s3 + $0x15] sm:$0x1]  ;;  %v2745_v47 = vld [vmem:[%s3636_s3 + $0x16] sm:$0x1]  ;;  %v2746_v48 = vld [vmem:[%s3636_s3 + $0x17] sm:$0x1] }
  0xc0   : > { %v4229_v22 = vadd.f32 %v1077_v35, %v1067_v17  ;;  %v4231_v26 = vadd.f32 %v1078_v53, %v1068_v12  ;;  %v1091_v25 = vmul.f32 %v1088_v4, %v1086_v52  ;;  %v1092_v41 = vmul.f32 %v1088_v4, %v1087_v33  ;;  %s4304_s0 = sld [smem:[#allocation9 + $0x101]] }
  0xc1   : > { %v1099_v50 = vmul.f32 %v2723_v54, %v1098_v7  ;;  %v1100_v40 = vmul.f32 %v2724_v10, %v1098_v7  ;;  %v1101_v44 = vmul.f32 %v2725_v32, %v1098_v7  ;;  %v1102_v28 = vmul.f32 %v2726_v5, %v1098_v7  ;;  %v2748_v54 = vld [vmem:[%s3636_s3 + $0x18] sm:$0x1]  ;;  %v2749_v10 = vld [vmem:[%s3636_s3 + $0x19] sm:$0x1]  ;;  %v2750_v5 = vld [vmem:[%s3636_s3 + $0x1a] sm:$0x1] }
  0xc2   : > { %v1112_v9 = vstv %s4187_s2  ;;  %v1126_v14 = vstv %s4191_s4  ;;  %v1140_v15 = vstv %s4195_s29  ;;  %v1154_v16 = vstv %s4199_s10  ;;  %s4310_s2 = sld [smem:[#allocation9 + $0x102]] }
  0xc3   : > { %v1103_v59 = vadd.f32 %v1099_v50, %v1089_v8  ;;  %v1104_v6 = vadd.f32 %v1100_v40, %v1090_v62  ;;  %v1105_v20 = vadd.f32 %v1101_v44, %v1091_v25  ;;  %v1106_v34 = vadd.f32 %v1102_v28, %v1092_v41  ;;  %v2751_v7 = vld [vmem:[%s3636_s3 + $0x1b] sm:$0x1]  ;;  %v2753_v8 = vld [vmem:[%s3636_s3 + $0x1c] sm:$0x1]  ;;  %v2754_v41 = vld [vmem:[%s3636_s3 + $0x1d] sm:$0x1] }
  0xc4   : > { %v1113_v39 = vmul.f32 %v2728_v19, %v1112_v9  ;;  %v1114_v23 = vmul.f32 %v2729_v27, %v1112_v9  ;;  %v1115_v24 = vmul.f32 %v2730_v51, %v1112_v9  ;;  %v1116_v29 = vmul.f32 %v2731_v58, %v1112_v9  ;;  %v2755_v51 = vld [vmem:[%s3636_s3 + $0x1e] sm:$0x1]  ;;  %v2756_v58 = vld [vmem:[%s3636_s3 + $0x1f] sm:$0x1]  ;;  %v2758_v9 = vld [vmem:[%s3636_s3 + $0x20] sm:$0x1] }
  0xc5   : > { %v1127_v36 = vmul.f32 %v2733_v46, %v1126_v14  ;;  %v1128_v43 = vmul.f32 %v2734_v42, %v1126_v14  ;;  %v1129_v18 = vmul.f32 %v2735_v60, %v1126_v14  ;;  %v1130_v45 = vmul.f32 %v2736_v13, %v1126_v14  ;;  %s4315_s4 = sld [smem:[#allocation9 + $0x103]] }
  0xc6   : > { %v1117_v37 = vadd.f32 %v1113_v39, %v1103_v59  ;;  %v1118_v21 = vadd.f32 %v1114_v23, %v1104_v6  ;;  %v1119_v63 = vadd.f32 %v1115_v24, %v1105_v20  ;;  %v1120_v38 = vadd.f32 %v1116_v29, %v1106_v34  ;;  %v2759_v6 = vld [vmem:[%s3636_s3 + $0x21] sm:$0x1]  ;;  %v2760_v20 = vld [vmem:[%s3636_s3 + $0x22] sm:$0x1]  ;;  %v2761_v34 = vld [vmem:[%s3636_s3 + $0x23] sm:$0x1] }
  0xc7   : > { %v1141_v52 = vmul.f32 %v2738_v49, %v1140_v15  ;;  %v1142_v0 = vmul.f32 %v2739_v57, %v1140_v15  ;;  %v1143_v1 = vmul.f32 %v2740_v30, %v1140_v15  ;;  %v1144_v2 = vmul.f32 %v2741_v31, %v1140_v15  ;;  %v2763_v29 = vld [vmem:[%s3636_s3 + $0x24] sm:$0x1]  ;;  %s4319_s29 = sld [smem:[#allocation9 + $0x104]] }
  0xc8   : > { %v1131_v35 = vadd.f32 %v1127_v36, %v1117_v37  ;;  %v1132_v3 = vadd.f32 %v1128_v43, %v1118_v21  ;;  %v1133_v53 = vadd.f32 %v1129_v18, %v1119_v63  ;;  %v1134_v33 = vadd.f32 %v1130_v45, %v1120_v38  ;;  %v2764_v43 = vld [vmem:[%s3636_s3 + $0x25] sm:$0x1]  ;;  %v2765_v18 = vld [vmem:[%s3636_s3 + $0x26] sm:$0x1]  ;;  %v2766_v45 = vld [vmem:[%s3636_s3 + $0x27] sm:$0x1] }
  0xc9   : > { %v1155_v17 = vmul.f32 %v2743_v56, %v1154_v16  ;;  %v1156_v12 = vmul.f32 %v2744_v55, %v1154_v16  ;;  %v1157_v4 = vmul.f32 %v2745_v47, %v1154_v16  ;;  %v1158_v32 = vmul.f32 %v2746_v48, %v1154_v16  ;;  %s4385_s10 = sld [smem:[#allocation9 + $0x105]] }
  0xca   : > { %v1145_v62 = vadd.f32 %v1141_v52, %v1131_v35  ;;  %v1146_v19 = vadd.f32 %v1142_v0, %v1132_v3  ;;  %v1147_v27 = vadd.f32 %v1143_v1, %v1133_v53  ;;  %v1148_v25 = vadd.f32 %v1144_v2, %v1134_v33  ;;  %v2768_v52 = vld [vmem:[%s3636_s3 + $0x28] sm:$0x1]  ;;  %v2769_v0 = vld [vmem:[%s3636_s3 + $0x29] sm:$0x1]  ;;  %v2770_v53 = vld [vmem:[%s3636_s3 + $0x2a] sm:$0x1] }
  0xcb   : > { %v1168_v46 = vstv %s4219_s7  ;;  %v1182_v50 = vstv %s4227_s27  ;;  %v1196_v40 = vstv %s4243_s8  ;;  %v1210_v44 = vstv %s4246_s25  ;;  %s4390_s7 = sld [smem:[#allocation9 + $0x106]] }
  0xcc   : > { %v1159_v28 = vadd.f32 %v1155_v17, %v1145_v62  ;;  %v1160_v42 = vadd.f32 %v1156_v12, %v1146_v19  ;;  %v1161_v60 = vadd.f32 %v1157_v4, %v1147_v27  ;;  %v1162_v13 = vadd.f32 %v1158_v32, %v1148_v25  ;;  %v2771_v33 = vld [vmem:[%s3636_s3 + $0x2b] sm:$0x1]  ;;  %v2774_v32 = vld [vmem:[%s3636_s3 + $0x2d] sm:$0x1]  ;;  %s4425_s27 = sld [smem:[#allocation9 + $0x107]] }
  0xcd   : > { %v1169_v14 = vmul.f32 %v2748_v54, %v1168_v46  ;;  %v1170_v15 = vmul.f32 %v2749_v10, %v1168_v46  ;;  %v1171_v16 = vmul.f32 %v2750_v5, %v1168_v46  ;;  %v1172_v59 = vmul.f32 %v2751_v7, %v1168_v46  ;;  %v2773_v54 = vld [vmem:[%s3636_s3 + $0x2c] sm:$0x1]  ;;  %v2775_v5 = vld [vmem:[%s3636_s3 + $0x2e] sm:$0x1]  ;;  %v2776_v7 = vld [vmem:[%s3636_s3 + $0x2f] sm:$0x1] }
  0xce   : > { %v1183_v49 = vmul.f32 %v2753_v8, %v1182_v50  ;;  %v1184_v39 = vmul.f32 %v2754_v41, %v1182_v50  ;;  %v1185_v23 = vmul.f32 %v2755_v51, %v1182_v50  ;;  %v1186_v24 = vmul.f32 %v2756_v58, %v1182_v50  ;;  %v2778_v46 = vld [vmem:[%s3636_s3 + $0x30] sm:$0x1]  ;;  %s4436_s8 = sld [smem:[#allocation9 + $0x108]] }
  0xcf   : > { %v1173_v57 = vadd.f32 %v1169_v14, %v1159_v28  ;;  %v1174_v30 = vadd.f32 %v1170_v15, %v1160_v42  ;;  %v1175_v31 = vadd.f32 %v1171_v16, %v1161_v60  ;;  %v1176_v36 = vadd.f32 %v1172_v59, %v1162_v13  ;;  %v2779_v42 = vld [vmem:[%s3636_s3 + $0x31] sm:$0x1]  ;;  %v2780_v60 = vld [vmem:[%s3636_s3 + $0x32] sm:$0x1]  ;;  %v2781_v13 = vld [vmem:[%s3636_s3 + $0x33] sm:$0x1] }
  0xd0   : > { %v1197_v56 = vmul.f32 %v2758_v9, %v1196_v40  ;;  %v1198_v37 = vmul.f32 %v2759_v6, %v1196_v40  ;;  %v1199_v21 = vmul.f32 %v2760_v20, %v1196_v40  ;;  %v1200_v63 = vmul.f32 %v2761_v34, %v1196_v40  ;;  %v2783_v59 = vld [vmem:[%s3636_s3 + $0x34] sm:$0x1]  ;;  %s4451_s25 = sld [smem:[#allocation9 + $0x109]] }
  0xd1   : > { %v1187_v38 = vadd.f32 %v1183_v49, %v1173_v57  ;;  %v1188_v55 = vadd.f32 %v1184_v39, %v1174_v30  ;;  %v1189_v47 = vadd.f32 %v1185_v23, %v1175_v31  ;;  %v1190_v48 = vadd.f32 %v1186_v24, %v1176_v36  ;;  %v2784_v39 = vld [vmem:[%s3636_s3 + $0x35] sm:$0x1]  ;;  %v2785_v23 = vld [vmem:[%s3636_s3 + $0x36] sm:$0x1]  ;;  %v2786_v24 = vld [vmem:[%s3636_s3 + $0x37] sm:$0x1] }
  0xd2   : > { %v1211_v1 = vmul.f32 %v2763_v29, %v1210_v44  ;;  %v1212_v2 = vmul.f32 %v2764_v43, %v1210_v44  ;;  %v1213_v35 = vmul.f32 %v2765_v18, %v1210_v44  ;;  %v1214_v3 = vmul.f32 %v2766_v45, %v1210_v44 }
  0xd3   : > { %v1201_v10 = vadd.f32 %v1197_v56, %v1187_v38  ;;  %v1202_v17 = vadd.f32 %v1198_v37, %v1188_v55  ;;  %v1203_v12 = vadd.f32 %v1199_v21, %v1189_v47  ;;  %v1204_v4 = vadd.f32 %v1200_v63, %v1190_v48  ;;  %v2788_v56 = vld [vmem:[%s3636_s3 + $0x38] sm:$0x1]  ;;  %v2789_v37 = vld [vmem:[%s3636_s3 + $0x39] sm:$0x1]  ;;  %v2790_v47 = vld [vmem:[%s3636_s3 + $0x3a] sm:$0x1] }
  0xd4   : > { %v1224_v8 = vstv %s4255_s12  ;;  %v1238_v62 = vstv %s4259_s11  ;;  %v1252_v19 = vstv %s4271_s14  ;;  %v1266_v27 = vstv %s4274_s17  ;;  %s4467_s12 = sld [smem:[#allocation9 + $0x10a]] }
  0xd5   : > { %v1215_v25 = vadd.f32 %v1211_v1, %v1201_v10  ;;  %v1216_v41 = vadd.f32 %v1212_v2, %v1202_v17  ;;  %v1217_v51 = vadd.f32 %v1213_v35, %v1203_v12  ;;  %v1218_v58 = vadd.f32 %v1214_v3, %v1204_v4  ;;  %v2791_v48 = vld [vmem:[%s3636_s3 + $0x3b] sm:$0x1]  ;;  %v2794_v3 = vld [vmem:[%s3636_s3 + $0x3d] sm:$0x1]  ;;  %s4470_s11 = sld [smem:[#allocation9 + $0x10b]] }
  0xd6   : > { %v1225_v50 = vmul.f32 %v2768_v52, %v1224_v8  ;;  %v1226_v40 = vmul.f32 %v2769_v0, %v1224_v8  ;;  %v1227_v44 = vmul.f32 %v2770_v53, %v1224_v8  ;;  %v1228_v28 = vmul.f32 %v2771_v33, %v1224_v8  ;;  %v2793_v52 = vld [vmem:[%s3636_s3 + $0x3c] sm:$0x1]  ;;  %v2795_v53 = vld [vmem:[%s3636_s3 + $0x3e] sm:$0x1]  ;;  %v2796_v33 = vld [vmem:[%s3636_s3 + $0x3f] sm:$0x1] }
  0xd7   : > { %v1239_v9 = vmul.f32 %v2773_v54, %v1238_v62  ;;  %v1240_v14 = vmul.f32 %v2774_v32, %v1238_v62  ;;  %v1241_v15 = vmul.f32 %v2775_v5, %v1238_v62  ;;  %v1242_v16 = vmul.f32 %v2776_v7, %v1238_v62  ;;  %v4332_v8 = vld [vmem:[%s3628_s9] sm:$0xff]  ;;  %s4479_s14 = sld [smem:[#allocation9 + $0x10c]] }
  0xd8   : > { %v1229_v6 = vadd.f32 %v1225_v50, %v1215_v25  ;;  %v1230_v20 = vadd.f32 %v1226_v40, %v1216_v41  ;;  %v1231_v34 = vadd.f32 %v1227_v44, %v1217_v51  ;;  %v1232_v49 = vadd.f32 %v1228_v28, %v1218_v58  ;;  %v4335_v41 = vld [vmem:[%s3628_s9 + $0x8] sm:$0xff]  ;;  %v4338_v51 = vld [vmem:[%s3628_s9 + $0x10] sm:$0xff]  ;;  %v4341_v58 = vld [vmem:[%s3628_s9 + $0x18] sm:$0xff]  ;;  %s4526_s17 = sld [smem:[#allocation9 + $0x10d]] }
  0xd9   : > { %v1253_v29 = vmul.f32 %v2778_v46, %v1252_v19  ;;  %v1254_v57 = vmul.f32 %v2779_v42, %v1252_v19  ;;  %v1255_v30 = vmul.f32 %v2780_v60, %v1252_v19  ;;  %v1256_v31 = vmul.f32 %v2781_v13, %v1252_v19 }
  0xda   : > { %v1243_v36 = vadd.f32 %v1239_v9, %v1229_v6  ;;  %v1244_v43 = vadd.f32 %v1240_v14, %v1230_v20  ;;  %v1245_v18 = vadd.f32 %v1241_v15, %v1231_v34  ;;  %v1246_v45 = vadd.f32 %v1242_v16, %v1232_v49 }
  0xdb   : > { %v1267_v21 = vmul.f32 %v2783_v59, %v1266_v27  ;;  %v1268_v63 = vmul.f32 %v2784_v39, %v1266_v27  ;;  %v1269_v38 = vmul.f32 %v2785_v23, %v1266_v27  ;;  %v1270_v55 = vmul.f32 %v2786_v24, %v1266_v27  ;;  %v4348_v59 = vld [vmem:[%s3628_s9 + $0x20] sm:$0xff]  ;;  %v4351_v39 = vld [vmem:[%s3628_s9 + $0x28] sm:$0xff]  ;;  %v4354_v23 = vld [vmem:[%s3628_s9 + $0x30] sm:$0xff] }
  0xdc   : > { %v1257_v0 = vadd.f32 %v1253_v29, %v1243_v36  ;;  %v1258_v1 = vadd.f32 %v1254_v57, %v1244_v43  ;;  %v1259_v2 = vadd.f32 %v1255_v30, %v1245_v18  ;;  %v1260_v35 = vadd.f32 %v1256_v31, %v1246_v45  ;;  %v4357_v24 = vld [vmem:[%s3628_s9 + $0x38] sm:$0xff] }
  0xdd   : > { %v1280_v54 = vstv %s4280_s26  ;;  %v1294_v10 = vstv %s4285_s28  ;;  %v1320_v17 = vstv %s4289_s24  ;;  %v1351_v12 = vstv %s4301_s13  ;;  %s4540_s26 = sld [smem:[#allocation9 + $0x10e]] }
  0xde   : > { %v1271_v4 = vadd.f32 %v1267_v21, %v1257_v0  ;;  %v1272_v32 = vadd.f32 %v1268_v63, %v1258_v1  ;;  %v1273_v5 = vadd.f32 %v1269_v38, %v1259_v2  ;;  %v1274_v7 = vadd.f32 %v1270_v55, %v1260_v35  ;;  %v4370_v38 = vld [vmem:[%s3628_s9 + $0x40] sm:$0xff]  ;;  %v4377_v0 = vld [vmem:[%s3628_s9 + $0x48] sm:$0xff]  ;;  %v4380_v1 = vld [vmem:[%s3628_s9 + $0x50] sm:$0xff]  ;;  %s4552_s28 = sld [smem:[#allocation9 + $0x10f]] }
  0xdf   : > { %v1281_v62 = vmul.f32 %v2788_v56, %v1280_v54  ;;  %v1282_v19 = vmul.f32 %v2789_v37, %v1280_v54  ;;  %v1283_v27 = vmul.f32 %v2790_v47, %v1280_v54  ;;  %v1284_v25 = vmul.f32 %v2791_v48, %v1280_v54  ;;  %v4383_v2 = vld [vmem:[%s3628_s9 + $0x58] sm:$0xff]  ;;  %v4388_v54 = vld [vmem:[%s3628_s9 + $0x60] sm:$0xff]  ;;  %s4586_s24 = sld [smem:[#allocation10 + $0x100]] }
  0xe0   : > { %v1295_v46 = vmul.f32 %v2793_v52, %v1294_v10  ;;  %v1296_v50 = vmul.f32 %v2794_v3, %v1294_v10  ;;  %v1297_v40 = vmul.f32 %v2795_v53, %v1294_v10  ;;  %v1298_v44 = vmul.f32 %v2796_v33, %v1294_v10  ;;  %s4600_s13 = sld [smem:[#allocation10 + $0x101]] }
  0xe1   : > { %v1285_v28 = vadd.f32 %v1281_v62, %v1271_v4  ;;  %v1286_v42 = vadd.f32 %v1282_v19, %v1272_v32  ;;  %v1287_v60 = vadd.f32 %v1283_v27, %v1273_v5  ;;  %v1288_v13 = vadd.f32 %v1284_v25, %v1274_v7  ;;  %v4397_v5 = vld [vmem:[%s3628_s9 + $0x68] sm:$0xff]  ;;  %v4400_v7 = vld [vmem:[%s3628_s9 + $0x70] sm:$0xff]  ;;  %v4403_v62 = vld [vmem:[%s3628_s9 + $0x78] sm:$0xff] }
  0xe2   : > { %v1352_v9 = vmul.f32 %v1351_v12, %v4332_v8  ;;  %v1353_v14 = vmul.f32 %v1351_v12, %v4335_v41  ;;  %v1354_v15 = vmul.f32 %v1351_v12, %v4338_v51  ;;  %v1355_v16 = vmul.f32 %v1351_v12, %v4341_v58 }
  0xe3   : > { %v1299_v6 = vadd.f32 %v1295_v46, %v1285_v28  ;;  %v1300_v20 = vadd.f32 %v1296_v50, %v1286_v42  ;;  %v1301_v34 = vadd.f32 %v1297_v40, %v1287_v60  ;;  %v1302_v49 = vadd.f32 %v1298_v44, %v1288_v13  ;;  %v4406_v46 = vld [vmem:[%s3628_s9 + $0x80] sm:$0xff]  ;;  %v4409_v50 = vld [vmem:[%s3628_s9 + $0x88] sm:$0xff] }
  0xe4   : > { %v1361_v29 = vstv %s4304_s0  ;;  %v1375_v57 = vstv %s4310_s2  ;;  %v1389_v30 = vstv %s4315_s4  ;;  %v4363_v31 = vstv %s4319_s29  ;;  %s4612_s0 = sld [smem:[#allocation10 + $0x102]] }
  0xe5   : > { %v1307_v36 = vperm.slane %v1299_v6, 0  ;;  %v1308_v43 = vperm.slane %v1300_v20, 0  ;;  %v1309_v18 = vperm.slane %v1301_v34, 0  ;;  %v1310_v45 = vperm.slane %v1302_v49, 0  ;;  %s4620_s2 = sld [smem:[#allocation10 + $0x103]] }
  0xe6   : > { %v1362_v56 = vmul.f32 %v4348_v59, %v1361_v29  ;;  %v1363_v37 = vmul.f32 %v4351_v39, %v1361_v29  ;;  %v1364_v21 = vmul.f32 %v4354_v23, %v1361_v29  ;;  %v1365_v63 = vmul.f32 %v4357_v24, %v1361_v29  ;;  %s4626_s4 = sld [smem:[#allocation10 + $0x104]] }
  0xe7   : > { %v1315_v55 = vadd.f32 %v1307_v36, %v4221_v11  ;;  %v1316_v47 = vadd.f32 %v1308_v43, %v4223_v61  ;;  %v1317_v48 = vadd.f32 %v1309_v18, %v4229_v22  ;;  %v1318_v52 = vadd.f32 %v1310_v45, %v4231_v26  ;;  %v4434_v36 = vld [vmem:[%s3628_s9 + $0xb0] sm:$0xff]  ;;  %s4641_s29 = sld [smem:[#allocation10 + $0x105]] }
  0xe8   : > { %v1366_v35 = vadd.f32 %v1362_v56, %v1352_v9  ;;  %v1367_v3 = vadd.f32 %v1363_v37, %v1353_v14  ;;  %v1368_v53 = vadd.f32 %v1364_v21, %v1354_v15  ;;  %v1369_v11 = vadd.f32 %v1365_v63, %v1355_v16  ;;  %v4415_v14 = vld [vmem:[%s3628_s9 + $0x90] sm:$0xff]  ;;  %v4418_v15 = vld [vmem:[%s3628_s9 + $0x98] sm:$0xff]  ;;  %5249 = vst [vmem:[#allocation22_spill] sm:$0xff] %v4434_v36  ;;  %v4446_v37 = vld [vmem:[%s3628_s9 + $0xc0] sm:$0xff] }
  0xe9   : > { %v1321_v61 = vadd.f32 %v1320_v17, %v1315_v55  ;;  %v1322_v33 = vadd.f32 %v1320_v17, %v1316_v47  ;;  %v1323_v22 = vadd.f32 %v1320_v17, %v1317_v48  ;;  %v1324_v26 = vadd.f32 %v1320_v17, %v1318_v52  ;;  %v4443_v56 = vld [vmem:[%s3628_s9 + $0xb8] sm:$0xff]  ;;  %5251 = vst [vmem:[#allocation24_spill] sm:$0xff] %v4446_v37  ;;  %v4449_v21 = vld [vmem:[%s3628_s9 + $0xc8] sm:$0xff]  ;;  %v4455_v48 = vld [vmem:[%s3628_s9 + $0xd0] sm:$0xff] }
  0xea   : > { %v1376_v10 = vmul.f32 %v4370_v38, %v1375_v57  ;;  %v1377_v12 = vmul.f32 %v4377_v0, %v1375_v57  ;;  %v1378_v4 = vmul.f32 %v4380_v1, %v1375_v57  ;;  %v1379_v32 = vmul.f32 %v4383_v2, %v1375_v57  ;;  %v4428_v57 = vld [vmem:[%s3628_s9 + $0xa0] sm:$0xff]  ;;  %5250 = vst [vmem:[#allocation23_spill] sm:$0xff] %v4443_v56 }
  0xeb   : > { %v1325_v17 = vmul.f32 0.5, %v1321_v61  ;;  %v1326_v19 = vmul.f32 0.5, %v1322_v33  ;;  %v1327_v27 = vmul.f32 0.5, %v1323_v22  ;;  %v1328_v25 = vmul.f32 0.5, %v1324_v26  ;;  %5252 = vst [vmem:[#allocation25_spill] sm:$0xff] %v4449_v21 }
  0xec   : > { %v1380_v40 = vadd.f32 %v1376_v10, %v1366_v35  ;;  %v1381_v44 = vadd.f32 %v1377_v12, %v1367_v3  ;;  %v1382_v28 = vadd.f32 %v1378_v4, %v1368_v53  ;;  %v1383_v42 = vadd.f32 %v1379_v32, %v1369_v11  ;;  %5253 = vst [vmem:[#allocation26_spill] sm:$0xff] %v4455_v48  ;;  %v4461_v11 = vld [vmem:[%s3628_s9 + $0xd8] sm:$0xff] }
  0xed   : > { %3235 = vtanh.f32 %v1325_v17  ;;  %v1390_v60 = vmul.f32 %v4388_v54, %v1389_v30  ;;  %v1391_v13 = vmul.f32 %v4397_v5, %v1389_v30  ;;  %v1392_v9 = vmul.f32 %v4400_v7, %v1389_v30  ;;  %5254 = vst [vmem:[#allocation27_spill] sm:$0xff] %v4461_v11 }
  0xee   : > { %3237 = vtanh.f32 %v1326_v19  ;;  %v1393_v16 = vmul.f32 %v4403_v62, %v1389_v30  ;;  %v1404_v6 = vmul.f32 %v4406_v46, %v4363_v31  ;;  %v1405_v20 = vmul.f32 %v4409_v50, %v4363_v31  ;;  %v4431_v30 = vld [vmem:[%s3628_s9 + $0xa8] sm:$0xff] }
  0xef   : > { %3239 = vtanh.f32 %v1327_v27  ;;  %v1394_v34 = vadd.f32 %v1390_v60, %v1380_v40  ;;  %v1395_v49 = vadd.f32 %v1391_v13, %v1381_v44  ;;  %v1396_v29 = vadd.f32 %v1392_v9, %v1382_v28  ;;  %v4477_v60 = vld [vmem:[%s3628_s9 + $0xe8] sm:$0xff] }
  0xf0   : > { %3241 = vtanh.f32 %v1328_v25  ;;  %v1397_v43 = vadd.f32 %v1393_v16, %v1383_v42  ;;  %v1406_v18 = vmul.f32 %v4415_v14, %v4363_v31  ;;  %v1407_v45 = vmul.f32 %v4418_v15, %v4363_v31  ;;  %v4474_v42 = vld [vmem:[%s3628_s9 + $0xe0] sm:$0xff]  ;;  %5256 = vst [vmem:[#allocation29_spill] sm:$0xff] %v4477_v60 }
  0xf1   : > { %v1408_v63 = vadd.f32 %v1404_v6, %v1394_v34  ;;  %v1409_v55 = vadd.f32 %v1405_v20, %v1395_v49  ;;  %v1417_v47 = vstv %s4385_s10  ;;  %v1431_v52 = vstv %s4390_s7  ;;  %5255 = vst [vmem:[#allocation28_spill] sm:$0xff] %v4474_v42  ;;  %v4482_v34 = vld [vmem:[%s3628_s9 + $0xf0] sm:$0xff]  ;;  %v4485_v49 = vld [vmem:[%s3628_s9 + $0xf8] sm:$0xff]  ;;  %s4646_s10 = sld [smem:[#allocation10 + $0x106]] }
  0xf2   : > { %v1410_v35 = vadd.f32 %v1406_v18, %v1396_v29  ;;  %v1411_v3 = vadd.f32 %v1407_v45, %v1397_v43  ;;  %v1418_v53 = vmul.f32 %v4428_v57, %v1417_v47  ;;  %v1419_v31 = vmul.f32 %v4431_v30, %v1417_v47  ;;  %5257 = vst [vmem:[#allocation30_spill] sm:$0xff] %v4482_v34  ;;  %v4488_v29 = vld [vmem:[%s3628_s9 + $0x100] sm:$0xff]  ;;  %s4680_s7 = sld [smem:[#allocation10 + $0x108]] }
  0xf3   : > { %v3236_v61 = vpop.eup %3235  ;;  %v1420_v33 = vmul.f32 %v4434_v36, %v1417_v47  ;;  %v1421_v22 = vmul.f32 %v4443_v56, %v1417_v47  ;;  %v1432_v26 = vmul.f32 %v4446_v37, %v1431_v52  ;;  %v1433_v10 = vmul.f32 %v4449_v21, %v1431_v52  ;;  %5258 = vst [vmem:[#allocation31_spill] sm:$0xff] %v4485_v49  ;;  %v4494_v47 = vld [vmem:[%s3628_s9 + $0x110] sm:$0xff] }
  0xf4   : > { %v3238_v12 = vpop.eup %3237  ;;  %v1333_v4 = vmul.f32 0.5, %v3236_v61  ;;  %v1422_v32 = vadd.f32 %v1418_v53, %v1408_v63  ;;  %v1423_v17 = vadd.f32 %v1419_v31, %v1409_v55  ;;  %v1434_v19 = vmul.f32 %v4455_v48, %v1431_v52  ;;  %5259 = vst [vmem:[#allocation32_spill] sm:$0xff] %v4488_v29  ;;  %v4491_v55 = vld [vmem:[%s3628_s9 + $0x108] sm:$0xff]  ;;  %v2898_v48 = vld [vmem:[%s3636_s3 + $0x13] sm:$0x1] }
  0xf5   : > { %v3240_v27 = vpop.eup %3239  ;;  %v1334_v25 = vmul.f32 0.5, %v3238_v12  ;;  %v1424_v40 = vadd.f32 %v1420_v33, %v1410_v35  ;;  %v1425_v44 = vadd.f32 %v1421_v22, %v1411_v3  ;;  %v1435_v28 = vmul.f32 %v4461_v11, %v1431_v52  ;;  %5260 = vst [vmem:[#allocation33_spill] sm:$0xff] %v4491_v55  ;;  %v4497_v52 = vld [vmem:[%s3628_s9 + $0x118] sm:$0xff]  ;;  %v4511_v12 = vld [vmem:[%s3628_s9 + $0x128] sm:$0xff]  ;;  %v2896_v11 = vld [vmem:[%s3636_s3 + $0x11] sm:$0x1] }
  0xf6   : > { %v3242_v13 = vpop.eup %3241  ;;  %v1335_v9 = vmul.f32 0.5, %v3240_v27  ;;  %v1337_v16 = vadd.f32 0.5, %v1333_v4  ;;  %v1436_v6 = vadd.f32 %v1432_v26, %v1422_v32  ;;  %v1437_v20 = vadd.f32 %v1433_v10, %v1423_v17  ;;  %5261 = vst [vmem:[#allocation34_spill] sm:$0xff] %v4494_v47  ;;  %v4508_v10 = vld [vmem:[%s3628_s9 + $0x120] sm:$0xff]  ;;  %v4514_v4 = vld [vmem:[%s3628_s9 + $0x130] sm:$0xff] }
  0xf7   : > { %v1336_v43 = vmul.f32 0.5, %v3242_v13  ;;  %v1338_v18 = vadd.f32 0.5, %v1334_v25  ;;  %v1438_v45 = vadd.f32 %v1434_v19, %v1424_v40  ;;  %v1439_v63 = vadd.f32 %v1435_v28, %v1425_v44  ;;  %5262 = vst [vmem:[#allocation35_spill] sm:$0xff] %v4497_v52  ;;  %v4522_v25 = vld [vmem:[%s3628_s9 + $0x138] sm:$0xff] }
  0xf8   : > { %v1339_v35 = vadd.f32 0.5, %v1335_v9  ;;  %2798 = vst [vmem:[%s4140_s15 + $0x20] sm:$0xff] %v1337_v16  ;;  %v1445_v3 = vstv %s4425_s27  ;;  %v1459_v53 = vstv %s4436_s8  ;;  %v1473_v31 = vstv %s4451_s25  ;;  %s4689_s27 = sld [smem:[#allocation10 + $0x109]] }
  0xf9   : > { %v1340_v61 = vadd.f32 0.5, %v1336_v43  ;;  %2799 = vst [vmem:[%s4140_s15 + $0x28] sm:$0xff] %v1338_v18  ;;  %v1446_v33 = vmul.f32 %v4474_v42, %v1445_v3  ;;  %v1447_v22 = vmul.f32 %v4477_v60, %v1445_v3  ;;  %v1448_v26 = vmul.f32 %v4482_v34, %v1445_v3  ;;  %s4693_s8 = sld [smem:[#allocation10 + $0x10a]] }
  0xfa   : > { %5263 = vst [vmem:[#allocation36_spill] sm:$0xff] %v4508_v10  ;;  %v1449_v32 = vmul.f32 %v4485_v49, %v1445_v3  ;;  %v1460_v17 = vmul.f32 %v4488_v29, %v1459_v53  ;;  %v1461_v19 = vmul.f32 %v4491_v55, %v1459_v53  ;;  %v1462_v27 = vmul.f32 %v4494_v47, %v1459_v53  ;;  %v2895_v49 = vld [vmem:[%s3636_s3 + $0x10] sm:$0x1]  ;;  %s4705_s25 = sld [smem:[#allocation10 + $0x10b]] }
  0xfb   : > { %5264 = vst [vmem:[#allocation37_spill] sm:$0xff] %v4511_v12  ;;  %v1450_v40 = vadd.f32 %v1446_v33, %v1436_v6  ;;  %v1451_v44 = vadd.f32 %v1447_v22, %v1437_v20  ;;  %v1452_v28 = vadd.f32 %v1448_v26, %v1438_v45  ;;  %v1463_v13 = vmul.f32 %v4497_v52, %v1459_v53  ;;  %v4532_v6 = vld [vmem:[%s3628_s9 + $0x140] sm:$0xff]  ;;  %v4535_v20 = vld [vmem:[%s3628_s9 + $0x148] sm:$0xff]  ;;  %v4538_v45 = vld [vmem:[%s3628_s9 + $0x150] sm:$0xff] }
  0xfc   : > { %5265 = vst [vmem:[#allocation38_spill] sm:$0xff] %v4514_v4  ;;  %v1453_v9 = vadd.f32 %v1449_v32, %v1439_v63  ;;  %v1474_v16 = vmul.f32 %v4508_v10, %v1473_v31  ;;  %v1475_v43 = vmul.f32 %v4511_v12, %v1473_v31  ;;  %v1476_v18 = vmul.f32 %v4514_v4, %v1473_v31  ;;  %v4547_v33 = vld [vmem:[%s3628_s9 + $0x160] sm:$0xff]  ;;  %v4550_v22 = vld [vmem:[%s3628_s9 + $0x168] sm:$0xff]  ;;  %v4556_v4 = vld [vmem:[%s3628_s9 + $0x170] sm:$0xff] }
  0xfd   : > { %2800 = vst [vmem:[%s4140_s15 + $0x30] sm:$0xff] %v1339_v35  ;;  %v1464_v35 = vadd.f32 %v1460_v17, %v1450_v40  ;;  %v1465_v63 = vadd.f32 %v1461_v19, %v1451_v44  ;;  %v1466_v3 = vadd.f32 %v1462_v27, %v1452_v28  ;;  %v1477_v53 = vmul.f32 %v4522_v25, %v1473_v31  ;;  %v4562_v28 = vld [vmem:[%s3628_s9 + $0x178] sm:$0xff]  ;;  %v4568_v10 = vld [vmem:[%s3628_s9 + $0x180] sm:$0xff]  ;;  %v4571_v52 = vld [vmem:[%s3628_s9 + $0x188] sm:$0xff] }
  0xfe   : > { %5266 = vst [vmem:[#allocation39_spill] sm:$0xff] %v4522_v25  ;;  %v1467_v26 = vadd.f32 %v1463_v13, %v1453_v9  ;;  %v1487_v32 = vstv %s4467_s12  ;;  %v1501_v17 = vstv %s4470_s11  ;;  %v1515_v19 = vstv %s4479_s14  ;;  %s4708_s12 = sld [smem:[#allocation10 + $0x10c]] }
  0xff   : > { %2801 = vst [vmem:[%s4140_s15 + $0x38] sm:$0xff] %v1340_v61  ;;  %v4544_v61 = vld [vmem:[%s3628_s9 + $0x158] sm:$0xff]  ;;  %v1478_v27 = vadd.f32 %v1474_v16, %v1464_v35  ;;  %v1479_v31 = vadd.f32 %v1475_v43, %v1465_v63  ;;  %v1480_v40 = vadd.f32 %v1476_v18, %v1466_v3  ;;  %v1488_v44 = vmul.f32 %v4532_v6, %v1487_v32  ;;  %v4574_v16 = vld [vmem:[%s3628_s9 + $0x190] sm:$0xff]  ;;  %s4714_s11 = sld [smem:[#allocation10 + $0x10d]] }
 0x100   : > { %5267 = vst [vmem:[#allocation40_spill] sm:$0xff] %v4532_v6  ;;  %v1481_v25 = vadd.f32 %v1477_v53, %v1467_v26  ;;  %v1489_v12 = vmul.f32 %v4535_v20, %v1487_v32  ;;  %v1490_v13 = vmul.f32 %v4538_v45, %v1487_v32  ;;  %v1491_v9 = vmul.f32 %v4544_v61, %v1487_v32  ;;  %v4580_v3 = vld [vmem:[%s3628_s9 + $0x198] sm:$0xff]  ;;  %s4719_s14 = sld [smem:[#allocation10 + $0x10e]] }
 0x101   : > { %5268 = vst [vmem:[#allocation41_spill] sm:$0xff] %v4535_v20  ;;  %v1492_v43 = vadd.f32 %v1488_v44, %v1478_v27  ;;  %v1502_v18 = vmul.f32 %v4547_v33, %v1501_v17  ;;  %v1503_v35 = vmul.f32 %v4550_v22, %v1501_v17  ;;  %v1504_v63 = vmul.f32 %v4556_v4, %v1501_v17 }
 0x102   : > { %5269 = vst [vmem:[#allocation42_spill] sm:$0xff] %v4538_v45  ;;  %v1493_v53 = vadd.f32 %v1489_v12, %v1479_v31  ;;  %v1494_v26 = vadd.f32 %v1490_v13, %v1480_v40  ;;  %v1495_v32 = vadd.f32 %v1491_v9, %v1481_v25  ;;  %v4584_v45 = vld [vmem:[%s3628_s9 + $0x1a0] sm:$0xff]  ;;  %v1516_v44 = vmul.f32 %v4568_v10, %v1515_v19  ;;  %v4592_v25 = vld [vmem:[%s3628_s9 + $0x1a8] sm:$0xff]  ;;  %v4598_v31 = vld [vmem:[%s3628_s9 + $0x1b8] sm:$0xff] }
 0x103   : > { %5270 = vst [vmem:[#allocation43_spill] sm:$0xff] %v4544_v61  ;;  %v1505_v61 = vmul.f32 %v4562_v28, %v1501_v17  ;;  %v1506_v27 = vadd.f32 %v1502_v18, %v1492_v43  ;;  %v1518_v12 = vmul.f32 %v4574_v16, %v1515_v19  ;;  %v4595_v17 = vld [vmem:[%s3628_s9 + $0x1b0] sm:$0xff]  ;;  %v1519_v43 = vmul.f32 %v4580_v3, %v1515_v19  ;;  %v4604_v18 = vld [vmem:[%s3628_s9 + $0x1c0] sm:$0xff] }
 0x104   : > { %5271 = vst [vmem:[#allocation44_spill] sm:$0xff] %v4547_v33  ;;  %v1507_v40 = vadd.f32 %v1503_v35, %v1493_v53  ;;  %v1508_v13 = vadd.f32 %v1504_v63, %v1494_v26  ;;  %v1543_v35 = vstv %s4540_s26  ;;  %v1623_v6 = vstv %s4626_s4  ;;  %s4735_s26 = sld [smem:[#allocation12 + $0x2]] }
 0x105   : > { %5272 = vst [vmem:[#allocation45_spill] sm:$0xff] %v4550_v22  ;;  %v1509_v9 = vadd.f32 %v1505_v61, %v1495_v32  ;;  %v4616_v22 = vld [vmem:[%s3628_s9 + $0x1d8] sm:$0xff]  ;;  %v1557_v61 = vstv %s4552_s28  ;;  %v4624_v32 = vld [vmem:[%s3628_s9 + $0x1e0] sm:$0xff]  ;;  %v1544_v33 = vmul.f32 %v4604_v18, %v1543_v35  ;;  %s4738_s28 = sld [smem:[#allocation9 + $0x180]] }
 0x106   : > { %5273 = vst [vmem:[#allocation46_spill] sm:$0xff] %v4556_v4  ;;  %v1517_v4 = vmul.f32 %v4571_v52, %v1515_v19  ;;  %v1522_v63 = vadd.f32 %v1518_v12, %v1508_v13  ;;  %v4636_v12 = vld [vmem:[%s3628_s9 + $0x1f0] sm:$0xff]  ;;  %s4783_s4 = sld [smem:[#allocation9 + $0x185]] }
 0x107   : > { %5274 = vst [vmem:[#allocation47_spill] sm:$0xff] %v4562_v28  ;;  %v1529_v28 = vstv %s4526_s17  ;;  %v1523_v53 = vadd.f32 %v1519_v43, %v1509_v9  ;;  %s4723_s17 = sld [smem:[#allocation10 + $0x10f]] }
 0x108   : > { %5275 = vst [vmem:[#allocation48_spill] sm:$0xff] %v4568_v10  ;;  %v1520_v10 = vadd.f32 %v1516_v44, %v1506_v27  ;;  %v1521_v19 = vadd.f32 %v1517_v4, %v1507_v40  ;;  %v1530_v26 = vmul.f32 %v4584_v45, %v1529_v28  ;;  %v1531_v27 = vmul.f32 %v4592_v25, %v1529_v28  ;;  %v4633_v4 = vld [vmem:[%s3628_s9 + $0x1e8] sm:$0xff]  ;;  %v4639_v40 = vld [vmem:[%s3628_s9 + $0x1f8] sm:$0xff] }
 0x109   : > { %5276 = vst [vmem:[#allocation49_spill] sm:$0xff] %v4571_v52  ;;  %v4607_v52 = vld [vmem:[%s3628_s9 + $0x1c8] sm:$0xff]  ;;  %v1532_v44 = vmul.f32 %v4595_v17, %v1529_v28 }
 0x10a   : > { %5277 = vst [vmem:[#allocation50_spill] sm:$0xff] %v4574_v16  ;;  %v4610_v16 = vld [vmem:[%s3628_s9 + $0x1d0] sm:$0xff]  ;;  %v1534_v13 = vadd.f32 %v1530_v26, %v1520_v10  ;;  %v1545_v9 = vmul.f32 %v4607_v52, %v1543_v35  ;;  %v1568_v10 = vld [vmem:[%s3636_s3 + $0x1] sm:$0x1]  ;;  %v1569_v26 = vld [vmem:[%s3636_s3 + $0x2] sm:$0x1] }
 0x10b   : > { %5278 = vst [vmem:[#allocation51_spill] sm:$0xff] %v4580_v3  ;;  %v1533_v3 = vmul.f32 %v4598_v31, %v1529_v28  ;;  %v1546_v43 = vmul.f32 %v4610_v16, %v1543_v35  ;;  %v1547_v28 = vmul.f32 %v4616_v22, %v1543_v35  ;;  %v1560_v35 = vmul.f32 %v4636_v12, %v1557_v61  ;;  %s4656_s9 = sld [smem:[#allocation10 + $0x107]] }
 0x10c   : > { %5279 = vst [vmem:[#allocation52_spill] sm:$0xff] %v4584_v45  ;;  %v1567_v45 = vld [vmem:[%s3636_s3] sm:$0x1]  ;;  %v1548_v20 = vadd.f32 %v1544_v33, %v1534_v13  ;;  %v2881_v33 = vld [vmem:[%s3636_s3 + $0x5] sm:$0x1] }
 0x10d   : > { %5280 = vst [vmem:[#allocation53_spill] sm:$0xff] %v4592_v25  ;;  %v1558_v25 = vmul.f32 %v4624_v32, %v1557_v61  ;;  %v2882_v13 = vld [vmem:[%s3636_s3 + $0x6] sm:$0x1] }
 0x10e   : > { %5281 = vst [vmem:[#allocation54_spill] sm:$0xff] %v4595_v17  ;;  %v1537_v17 = vadd.f32 %v1533_v3, %v1523_v53 }
 0x10f   : > { %5282 = vst [vmem:[#allocation55_spill] sm:$0xff] %v4598_v31  ;;  %v1536_v31 = vadd.f32 %v1532_v44, %v1522_v63  ;;  %v1570_v63 = vld [vmem:[%s3636_s3 + $0x3] sm:$0x1]  ;;  %v1571_v44 = vstv %s4586_s24  ;;  %s4744_s24 = sld [smem:[#allocation9 + $0x181]] }
 0x110   : > { %5283 = vst [vmem:[#allocation56_spill] sm:$0xff] %v4604_v18  ;;  %v1535_v18 = vadd.f32 %v1531_v27, %v1521_v19  ;;  %v1561_v19 = vmul.f32 %v4639_v40, %v1557_v61  ;;  %v1551_v27 = vadd.f32 %v1547_v28, %v1537_v17  ;;  %v1575_v28 = vmul.f32 %v1571_v44, %v1570_v63  ;;  %v2893_v63 = vld [vmem:[%s3636_s3 + $0xf] sm:$0x1] }
 0x111   : > { %5284 = vst [vmem:[#allocation57_spill] sm:$0xff] %v4607_v52  ;;  %v1559_v52 = vmul.f32 %v4633_v4, %v1557_v61  ;;  %v1550_v53 = vadd.f32 %v1546_v43, %v1536_v31  ;;  %v1572_v61 = vmul.f32 %v1571_v44, %v1567_v45  ;;  %v2886_v31 = vld [vmem:[%s3636_s3 + $0x9] sm:$0x1]  ;;  %v1581_v45 = vstv %s4600_s13  ;;  %s4749_s13 = sld [smem:[#allocation9 + $0x182]] }
 0x112   : > { %5285 = vst [vmem:[#allocation58_spill] sm:$0xff] %v4610_v16  ;;  %v1549_v3 = vadd.f32 %v1545_v9, %v1535_v18  ;;  %v2885_v18 = vld [vmem:[%s3636_s3 + $0x8] sm:$0x1]  ;;  %v4671_v43 = vadd.f32 %v1561_v19, %v1551_v27  ;;  %v2890_v16 = vld [vmem:[%s3636_s3 + $0xc] sm:$0x1] }
 0x113   : > { %5286 = vst [vmem:[#allocation59_spill] sm:$0xff] %v4616_v22  ;;  %v2883_v22 = vld [vmem:[%s3636_s3 + $0x7] sm:$0x1]  ;;  %v4669_v9 = vadd.f32 %v1560_v35, %v1550_v53  ;;  %v1584_v35 = vmul.f32 %v2882_v13, %v1581_v45  ;;  %v2891_v53 = vld [vmem:[%s3636_s3 + $0xd] sm:$0x1] }
 0x114   : > { %5287 = vst [vmem:[#allocation60_spill] sm:$0xff] %v4624_v32  ;;  %v2880_v32 = vld [vmem:[%s3636_s3 + $0x4] sm:$0x1]  ;;  %v4667_v17 = vadd.f32 %v1559_v52, %v1549_v3  ;;  %v1583_v3 = vmul.f32 %v2881_v33, %v1581_v45  ;;  %v1585_v19 = vmul.f32 %v2883_v22, %v1581_v45  ;;  %v2892_v27 = vld [vmem:[%s3636_s3 + $0xe] sm:$0x1] }
 0x115   : > { %5288 = vst [vmem:[#allocation61_spill] sm:$0xff] %v4633_v4  ;;  %v1574_v4 = vmul.f32 %v1571_v44, %v1569_v26  ;;  %v1609_v26 = vstv %s4620_s2  ;;  %v1582_v52 = vmul.f32 %v2880_v32, %v1581_v45  ;;  %v2897_v33 = vld [vmem:[%s3636_s3 + $0x12] sm:$0x1]  ;;  %s4777_s2 = sld [smem:[#allocation9 + $0x184]] }
 0x116   : > { %5289 = vst [vmem:[#allocation62_spill] sm:$0xff] %v4636_v12  ;;  %v4662_v12 = vadd.f32 %v1558_v25, %v1548_v20  ;;  %v2887_v20 = vld [vmem:[%s3636_s3 + $0xa] sm:$0x1]  ;;  %v2888_v25 = vld [vmem:[%s3636_s3 + $0xb] sm:$0x1]  ;;  %v1589_v32 = vadd.f32 %v1585_v19, %v1575_v28  ;;  %v1610_v13 = vmul.f32 %v2890_v16, %v1609_v26  ;;  %v1611_v22 = vmul.f32 %v2891_v53, %v1609_v26 }
 0x117   : > { %5290 = vst [vmem:[#allocation63_spill] sm:$0xff] %v4639_v40  ;;  %v1573_v40 = vmul.f32 %v1571_v44, %v1568_v10  ;;  %v1595_v10 = vstv %s4612_s0  ;;  %v1586_v34 = vadd.f32 %v1582_v52, %v1572_v61  ;;  %v1588_v42 = vadd.f32 %v1584_v35, %v1574_v4  ;;  %v2900_v4 = vld [vmem:[%s3636_s3 + $0x14] sm:$0x1]  ;;  %v2901_v28 = vld [vmem:[%s3636_s3 + $0x15] sm:$0x1]  ;;  %s4753_s0 = sld [smem:[#allocation9 + $0x183]] }
 0x118   : > { %v1596_v44 = vmul.f32 %v2885_v18, %v1595_v10  ;;  %v1597_v47 = vmul.f32 %v2886_v31, %v1595_v10  ;;  %v1598_v55 = vmul.f32 %v2887_v20, %v1595_v10  ;;  %v1599_v29 = vmul.f32 %v2888_v25, %v1595_v10  ;;  %v2902_v52 = vld [vmem:[%s3636_s3 + $0x16] sm:$0x1]  ;;  %v2907_v35 = vld [vmem:[%s3636_s3 + $0x1a] sm:$0x1]  ;;  %v2908_v19 = vld [vmem:[%s3636_s3 + $0x1b] sm:$0x1] }
 0x119   : > { %v1587_v60 = vadd.f32 %v1583_v3, %v1573_v40  ;;  %v1612_v45 = vmul.f32 %v2892_v27, %v1609_v26  ;;  %v1613_v18 = vmul.f32 %v2893_v63, %v1609_v26  ;;  %v1624_v16 = vmul.f32 %v2895_v49, %v1623_v6  ;;  %v2906_v3 = vld [vmem:[%s3636_s3 + $0x19] sm:$0x1] }
 0x11a   : > { %v1600_v31 = vadd.f32 %v1596_v44, %v1586_v34  ;;  %v1602_v61 = vadd.f32 %v1598_v55, %v1588_v42  ;;  %v1603_v40 = vadd.f32 %v1599_v29, %v1589_v32  ;;  %v1625_v25 = vmul.f32 %v2896_v11, %v1623_v6  ;;  %v2903_v34 = vld [vmem:[%s3636_s3 + $0x17] sm:$0x1]  ;;  %v2910_v32 = vld [vmem:[%s3636_s3 + $0x1c] sm:$0x1] }
 0x11b   : > { %v1601_v20 = vadd.f32 %v1597_v47, %v1587_v60  ;;  %v1626_v10 = vmul.f32 %v2897_v33, %v1623_v6  ;;  %v1627_v26 = vmul.f32 %v2898_v48, %v1623_v6  ;;  %v2905_v60 = vld [vmem:[%s3636_s3 + $0x18] sm:$0x1]  ;;  %v1637_v53 = vstv %s4641_s29  ;;  %s4793_s29 = sld [smem:[#allocation9 + $0x186]] }
 0x11c   : > { %v1614_v42 = vadd.f32 %v1610_v13, %v1600_v31  ;;  %v1616_v55 = vadd.f32 %v1612_v45, %v1602_v61  ;;  %v1617_v47 = vadd.f32 %v1613_v18, %v1603_v40  ;;  %v1651_v49 = vstv %s4646_s10  ;;  %v2911_v18 = vld [vmem:[%s3636_s3 + $0x1d] sm:$0x1]  ;;  %v2912_v31 = vld [vmem:[%s3636_s3 + $0x1e] sm:$0x1]  ;;  %s4795_s10 = sld [smem:[#allocation9 + $0x187]] }
 0x11d   : > { %v1615_v29 = vadd.f32 %v1611_v22, %v1601_v20  ;;  %v1665_v11 = vstv %s4656_s9  ;;  %v1679_v27 = vstv %s4680_s7  ;;  %v1638_v33 = vmul.f32 %v2900_v4, %v1637_v53  ;;  %v2913_v20 = vld [vmem:[%s3636_s3 + $0x1f] sm:$0x1]  ;;  %s4805_s9 = sld [smem:[#allocation9 + $0x188]] }
 0x11e   : > { %v1628_v48 = vadd.f32 %v1624_v16, %v1614_v42  ;;  %v1630_v63 = vadd.f32 %v1626_v10, %v1616_v55  ;;  %v1631_v44 = vadd.f32 %v1627_v26, %v1617_v47  ;;  %v1639_v13 = vmul.f32 %v2901_v28, %v1637_v53  ;;  %v2915_v42 = vld [vmem:[%s3636_s3 + $0x20] sm:$0x1]  ;;  %s4811_s7 = sld [smem:[#allocation9 + $0x189]] }
 0x11f   : > { %v1629_v6 = vadd.f32 %v1625_v25, %v1615_v29  ;;  %v1640_v22 = vmul.f32 %v2902_v52, %v1637_v53  ;;  %v1641_v45 = vmul.f32 %v2903_v34, %v1637_v53  ;;  %v1652_v61 = vmul.f32 %v2905_v60, %v1651_v49  ;;  %v2916_v52 = vld [vmem:[%s3636_s3 + $0x21] sm:$0x1]  ;;  %v2917_v29 = vld [vmem:[%s3636_s3 + $0x22] sm:$0x1]  ;;  %v2918_v34 = vld [vmem:[%s3636_s3 + $0x23] sm:$0x1] }
 0x120   : > { %v1653_v40 = vmul.f32 %v2906_v3, %v1651_v49  ;;  %v1654_v16 = vmul.f32 %v2907_v35, %v1651_v49  ;;  %v1655_v25 = vmul.f32 %v2908_v19, %v1651_v49  ;;  %v1642_v10 = vadd.f32 %v1638_v33, %v1628_v48  ;;  %v2920_v48 = vld [vmem:[%s3636_s3 + $0x24] sm:$0x1]  ;;  %v2922_v33 = vld [vmem:[%s3636_s3 + $0x26] sm:$0x1] }
 0x121   : > { %v1643_v26 = vadd.f32 %v1639_v13, %v1629_v6  ;;  %v1644_v4 = vadd.f32 %v1640_v22, %v1630_v63  ;;  %v1645_v28 = vadd.f32 %v1641_v45, %v1631_v44  ;;  %v1666_v55 = vmul.f32 %v2910_v32, %v1665_v11  ;;  %v2921_v6 = vld [vmem:[%s3636_s3 + $0x25] sm:$0x1]  ;;  %v2923_v13 = vld [vmem:[%s3636_s3 + $0x27] sm:$0x1]  ;;  %v2925_v22 = vld [vmem:[%s3636_s3 + $0x28] sm:$0x1] }
 0x122   : > { %v1667_v47 = vmul.f32 %v2911_v18, %v1665_v11  ;;  %v1668_v60 = vmul.f32 %v2912_v31, %v1665_v11  ;;  %v1669_v3 = vmul.f32 %v2913_v20, %v1665_v11  ;;  %v1656_v35 = vadd.f32 %v1652_v61, %v1642_v10  ;;  %v2926_v61 = vld [vmem:[%s3636_s3 + $0x29] sm:$0x1] }
 0x123   : > { %v1657_v19 = vadd.f32 %v1653_v40, %v1643_v26  ;;  %v1658_v53 = vadd.f32 %v1654_v16, %v1644_v4  ;;  %v1659_v49 = vadd.f32 %v1655_v25, %v1645_v28  ;;  %v1680_v63 = vmul.f32 %v2915_v42, %v1679_v27  ;;  %v2927_v40 = vld [vmem:[%s3636_s3 + $0x2a] sm:$0x1]  ;;  %v2928_v16 = vld [vmem:[%s3636_s3 + $0x2b] sm:$0x1] }
 0x124   : > { %v1681_v44 = vmul.f32 %v2916_v52, %v1679_v27  ;;  %v1682_v11 = vmul.f32 %v2917_v29, %v1679_v27  ;;  %v1683_v32 = vmul.f32 %v2918_v34, %v1679_v27  ;;  %v1670_v45 = vadd.f32 %v1666_v55, %v1656_v35  ;;  %v2930_v29 = vld [vmem:[%s3636_s3 + $0x2c] sm:$0x1]  ;;  %v2932_v35 = vld [vmem:[%s3636_s3 + $0x2e] sm:$0x1] }
 0x125   : > { %v1671_v18 = vadd.f32 %v1667_v47, %v1657_v19  ;;  %v1672_v31 = vadd.f32 %v1668_v60, %v1658_v53  ;;  %v1673_v20 = vadd.f32 %v1669_v3, %v1659_v49  ;;  %v1693_v25 = vstv %s4689_s27  ;;  %v2931_v3 = vld [vmem:[%s3636_s3 + $0x2d] sm:$0x1]  ;;  %v2933_v19 = vld [vmem:[%s3636_s3 + $0x2f] sm:$0x1]  ;;  %s4815_s27 = sld [smem:[#allocation9 + $0x18a]] }
 0x126   : > { %v1707_v42 = vstv %s4693_s8  ;;  %v1721_v10 = vstv %s4705_s25  ;;  %v1735_v26 = vstv %s4708_s12  ;;  %v1684_v27 = vadd.f32 %v1680_v63, %v1670_v45  ;;  %v2935_v45 = vld [vmem:[%s3636_s3 + $0x30] sm:$0x1]  ;;  %s4825_s8 = sld [smem:[#allocation9 + $0x18b]] }
 0x127   : > { %v1685_v4 = vadd.f32 %v1681_v44, %v1671_v18  ;;  %v1686_v28 = vadd.f32 %v1682_v11, %v1672_v31  ;;  %v1687_v52 = vadd.f32 %v1683_v32, %v1673_v20  ;;  %v1694_v34 = vmul.f32 %v2920_v48, %v1693_v25  ;;  %v2937_v18 = vld [vmem:[%s3636_s3 + $0x32] sm:$0x1]  ;;  %s4831_s25 = sld [smem:[#allocation9 + $0x18c]] }
 0x128   : > { %v1695_v55 = vmul.f32 %v2921_v6, %v1693_v25  ;;  %v1696_v47 = vmul.f32 %v2922_v33, %v1693_v25  ;;  %v1697_v60 = vmul.f32 %v2923_v13, %v1693_v25  ;;  %v1708_v53 = vmul.f32 %v2925_v22, %v1707_v42  ;;  %v2936_v33 = vld [vmem:[%s3636_s3 + $0x31] sm:$0x1]  ;;  %v2938_v13 = vld [vmem:[%s3636_s3 + $0x33] sm:$0x1]  ;;  %s4837_s12 = sld [smem:[#allocation9 + $0x18d]] }
 0x129   : > { %v1709_v49 = vmul.f32 %v2926_v61, %v1707_v42  ;;  %v1710_v63 = vmul.f32 %v2927_v40, %v1707_v42  ;;  %v1711_v44 = vmul.f32 %v2928_v16, %v1707_v42  ;;  %v1698_v11 = vadd.f32 %v1694_v34, %v1684_v27  ;;  %v2940_v27 = vld [vmem:[%s3636_s3 + $0x34] sm:$0x1]  ;;  %v2942_v34 = vld [vmem:[%s3636_s3 + $0x36] sm:$0x1] }
 0x12a   : > { %v1699_v32 = vadd.f32 %v1695_v55, %v1685_v4  ;;  %v1700_v48 = vadd.f32 %v1696_v47, %v1686_v28  ;;  %v1701_v6 = vadd.f32 %v1697_v60, %v1687_v52  ;;  %v1722_v31 = vmul.f32 %v2930_v29, %v1721_v10  ;;  %v2941_v4 = vld [vmem:[%s3636_s3 + $0x35] sm:$0x1]  ;;  %v2943_v55 = vld [vmem:[%s3636_s3 + $0x37] sm:$0x1]  ;;  %v2945_v47 = vld [vmem:[%s3636_s3 + $0x38] sm:$0x1] }
 0x12b   : > { %v1723_v20 = vmul.f32 %v2931_v3, %v1721_v10  ;;  %v1724_v22 = vmul.f32 %v2932_v35, %v1721_v10  ;;  %v1725_v61 = vmul.f32 %v2933_v19, %v1721_v10  ;;  %v1712_v40 = vadd.f32 %v1708_v53, %v1698_v11  ;;  %v2946_v53 = vld [vmem:[%s3636_s3 + $0x39] sm:$0x1] }
 0x12c   : > { %v1713_v16 = vadd.f32 %v1709_v49, %v1699_v32  ;;  %v1714_v25 = vadd.f32 %v1710_v63, %v1700_v48  ;;  %v1715_v42 = vadd.f32 %v1711_v44, %v1701_v6  ;;  %v1736_v28 = vmul.f32 %v2935_v45, %v1735_v26  ;;  %v2947_v49 = vld [vmem:[%s3636_s3 + $0x3a] sm:$0x1]  ;;  %v2948_v63 = vld [vmem:[%s3636_s3 + $0x3b] sm:$0x1] }
 0x12d   : > { %v1737_v52 = vmul.f32 %v2936_v33, %v1735_v26  ;;  %v1738_v10 = vmul.f32 %v2937_v18, %v1735_v26  ;;  %v1739_v29 = vmul.f32 %v2938_v13, %v1735_v26  ;;  %v1726_v60 = vadd.f32 %v1722_v31, %v1712_v40  ;;  %v2950_v18 = vld [vmem:[%s3636_s3 + $0x3c] sm:$0x1]  ;;  %v2952_v40 = vld [vmem:[%s3636_s3 + $0x3e] sm:$0x1] }
 0x12e   : > { %v1727_v3 = vadd.f32 %v1723_v20, %v1713_v16  ;;  %v1728_v35 = vadd.f32 %v1724_v22, %v1714_v25  ;;  %v1729_v19 = vadd.f32 %v1725_v61, %v1715_v42  ;;  %v1749_v44 = vstv %s4714_s11  ;;  %v2951_v61 = vld [vmem:[%s3636_s3 + $0x3d] sm:$0x1]  ;;  %v2953_v16 = vld [vmem:[%s3636_s3 + $0x3f] sm:$0x1]  ;;  %s4841_s11 = sld [smem:[#allocation9 + $0x18e]] }
 0x12f   : > { %v1763_v45 = vstv %s4719_s14  ;;  %v1777_v11 = vstv %s4723_s17  ;;  %v1803_v32 = vstv %s4735_s26  ;;  %v1740_v48 = vadd.f32 %v1736_v28, %v1726_v60  ;;  %s4858_s14 = sld [smem:[#allocation9 + $0x18f]] }
 0x130   : > { %v1741_v26 = vadd.f32 %v1737_v52, %v1727_v3  ;;  %v1742_v6 = vadd.f32 %v1738_v10, %v1728_v35  ;;  %v1743_v33 = vadd.f32 %v1739_v29, %v1729_v19  ;;  %v1750_v13 = vmul.f32 %v2940_v27, %v1749_v44  ;;  %s4861_s17 = sld [smem:[#allocation10 + $0x180]] }
 0x131   : > { %v1751_v31 = vmul.f32 %v2941_v4, %v1749_v44  ;;  %v1752_v20 = vmul.f32 %v2942_v34, %v1749_v44  ;;  %v1753_v22 = vmul.f32 %v2943_v55, %v1749_v44  ;;  %v1764_v25 = vmul.f32 %v2945_v47, %v1763_v45  ;;  %s4866_s26 = sld [smem:[#allocation10 + $0x181]] }
 0x132   : > { %v1765_v42 = vmul.f32 %v2946_v53, %v1763_v45  ;;  %v1766_v21 = vmul.f32 %v2947_v49, %v1763_v45  ;;  %v1767_v37 = vmul.f32 %v2948_v63, %v1763_v45  ;;  %v1754_v28 = vadd.f32 %v1750_v13, %v1740_v48 }
 0x133   : > { %v1755_v52 = vadd.f32 %v1751_v31, %v1741_v26  ;;  %v1756_v10 = vadd.f32 %v1752_v20, %v1742_v6  ;;  %v1757_v29 = vadd.f32 %v1753_v22, %v1743_v33  ;;  %v1778_v60 = vmul.f32 %v2950_v18, %v1777_v11 }
 0x134   : > { %v1779_v27 = vmul.f32 %v2951_v61, %v1777_v11  ;;  %v1780_v4 = vmul.f32 %v2952_v40, %v1777_v11  ;;  %v1781_v34 = vmul.f32 %v2953_v16, %v1777_v11  ;;  %v1768_v55 = vadd.f32 %v1764_v25, %v1754_v28 }
 0x135   : > { %v1769_v3 = vadd.f32 %v1765_v42, %v1755_v52  ;;  %v1770_v35 = vadd.f32 %v1766_v21, %v1756_v10  ;;  %v1771_v19 = vadd.f32 %v1767_v37, %v1757_v29  ;;  %v1834_v47 = vstv %s4738_s28  ;;  %s4869_s28 = sld [smem:[#allocation10 + $0x182]] }
 0x136   : > { %v1844_v44 = vstv %s4744_s24  ;;  %v1858_v53 = vstv %s4749_s13  ;;  %v1872_v56 = vstv %s4753_s0  ;;  %v1782_v49 = vadd.f32 %v1778_v60, %v1768_v55  ;;  %s4879_s24 = sld [smem:[#allocation10 + $0x183]] }
 0x137   : > { %v1783_v36 = vadd.f32 %v1779_v27, %v1769_v3  ;;  %v1784_v63 = vadd.f32 %v1780_v4, %v1770_v35  ;;  %v1785_v45 = vadd.f32 %v1781_v34, %v1771_v19  ;;  %v1835_v48 = vmul.f32 %v1834_v47, %v4332_v8  ;;  %s4884_s13 = sld [smem:[#allocation10 + $0x184]] }
 0x138   : > { %v1836_v26 = vmul.f32 %v1834_v47, %v4335_v41  ;;  %v1837_v6 = vmul.f32 %v1834_v47, %v4338_v51  ;;  %v1838_v11 = vmul.f32 %v1834_v47, %v4341_v58  ;;  %v1790_v33 = vperm.slane %v1782_v49, 0  ;;  %v5292_v49 = vld [vmem:[#allocation23_spill] sm:$0xff]  ;;  %s4889_s0 = sld [smem:[#allocation10 + $0x185]] }
 0x139   : > { %v1791_v18 = vperm.slane %v1783_v36, 0  ;;  %v1792_v21 = vperm.slane %v1784_v63, 0  ;;  %v1793_v37 = vperm.slane %v1785_v45, 0  ;;  %v1845_v13 = vmul.f32 %v4348_v59, %v1844_v44 }
 0x13a   : > { %v1846_v31 = vmul.f32 %v4351_v39, %v1844_v44  ;;  %v1847_v20 = vmul.f32 %v4354_v23, %v1844_v44  ;;  %v1848_v8 = vmul.f32 %v4357_v24, %v1844_v44  ;;  %v1798_v41 = vadd.f32 %v1790_v33, %v4662_v12 }
 0x13b   : > { %v1799_v51 = vadd.f32 %v1791_v18, %v4667_v17  ;;  %v1800_v58 = vadd.f32 %v1792_v21, %v4669_v9  ;;  %v1801_v36 = vadd.f32 %v1793_v37, %v4671_v43  ;;  %v1849_v22 = vadd.f32 %v1845_v13, %v1835_v48 }
 0x13c   : > { %v1850_v61 = vadd.f32 %v1846_v31, %v1836_v26  ;;  %v1851_v40 = vadd.f32 %v1847_v20, %v1837_v6  ;;  %v1852_v59 = vadd.f32 %v1848_v8, %v1838_v11  ;;  %v1804_v16 = vadd.f32 %v1803_v32, %v1798_v41  ;;  %v5294_v31 = vld [vmem:[#allocation25_spill] sm:$0xff] }
 0x13d   : > { %v1805_v39 = vadd.f32 %v1803_v32, %v1799_v51  ;;  %v1806_v25 = vadd.f32 %v1803_v32, %v1800_v58  ;;  %v1807_v23 = vadd.f32 %v1803_v32, %v1801_v36  ;;  %v1859_v24 = vmul.f32 %v4370_v38, %v1858_v53  ;;  %v5295_v58 = vld [vmem:[#allocation26_spill] sm:$0xff] }
 0x13e   : > { %v1860_v42 = vmul.f32 %v4377_v0, %v1858_v53  ;;  %v1861_v12 = vmul.f32 %v4380_v1, %v1858_v53  ;;  %v1862_v17 = vmul.f32 %v4383_v2, %v1858_v53  ;;  %v1808_v9 = vmul.f32 0.5, %v1804_v16  ;;  %v5291_v53 = vld [vmem:[#allocation22_spill] sm:$0xff] }
 0x13f   : > { %v1809_v43 = vmul.f32 0.5, %v1805_v39  ;;  %v1810_v28 = vmul.f32 0.5, %v1806_v25  ;;  %v1811_v52 = vmul.f32 0.5, %v1807_v23  ;;  %v1863_v10 = vadd.f32 %v1859_v24, %v1849_v22  ;;  %v5296_v22 = vld [vmem:[#allocation27_spill] sm:$0xff] }
 0x140   : > { %v1864_v32 = vadd.f32 %v1860_v42, %v1850_v61  ;;  %v1865_v29 = vadd.f32 %v1861_v12, %v1851_v40  ;;  %v1866_v38 = vadd.f32 %v1862_v17, %v1852_v59  ;;  %3243 = vtanh.f32 %v1808_v9  ;;  %v5297_v42 = vld [vmem:[#allocation28_spill] sm:$0xff]  ;;  %v5298_v9 = vld [vmem:[#allocation29_spill] sm:$0xff] }
 0x141   : > { %v1873_v0 = vmul.f32 %v4388_v54, %v1872_v56  ;;  %v1874_v1 = vmul.f32 %v4397_v5, %v1872_v56  ;;  %v1875_v2 = vmul.f32 %v4400_v7, %v1872_v56  ;;  %3245 = vtanh.f32 %v1809_v43 }
 0x142   : > { %v1876_v60 = vmul.f32 %v4403_v62, %v1872_v56  ;;  %v1886_v27 = vstv %s4777_s2  ;;  %v1900_v4 = vstv %s4783_s4  ;;  %3247 = vtanh.f32 %v1810_v28  ;;  %v5299_v28 = vld [vmem:[#allocation30_spill] sm:$0xff]  ;;  %s4914_s2 = sld [smem:[#allocation10 + $0x186]] }
 0x143   : > { %v1877_v34 = vadd.f32 %v1873_v0, %v1863_v10  ;;  %v1878_v55 = vadd.f32 %v1874_v1, %v1864_v32  ;;  %v1879_v3 = vadd.f32 %v1875_v2, %v1865_v29  ;;  %3249 = vtanh.f32 %v1811_v52  ;;  %v5300_v10 = vld [vmem:[#allocation31_spill] sm:$0xff]  ;;  %s4930_s4 = sld [smem:[#allocation10 + $0x187]] }
 0x144   : > { %v1880_v35 = vadd.f32 %v1876_v60, %v1866_v38  ;;  %v1887_v19 = vmul.f32 %v4406_v46, %v1886_v27  ;;  %v1888_v54 = vmul.f32 %v4409_v50, %v1886_v27  ;;  %v1889_v5 = vmul.f32 %v4415_v14, %v1886_v27 }
 0x145   : > { %v1890_v7 = vmul.f32 %v4418_v15, %v1886_v27  ;;  %v1901_v62 = vmul.f32 %v4428_v57, %v1900_v4  ;;  %v1902_v56 = vmul.f32 %v4431_v30, %v1900_v4  ;;  %v1903_v46 = vmul.f32 %v5291_v53, %v1900_v4  ;;  %v5293_v30 = vld [vmem:[#allocation24_spill] sm:$0xff]  ;;  %v5307_v53 = vld [vmem:[#allocation38_spill] sm:$0xff] }
 0x146   : > { %v1891_v47 = vadd.f32 %v1887_v19, %v1877_v34  ;;  %v1892_v44 = vadd.f32 %v1888_v54, %v1878_v55  ;;  %v1904_v63 = vmul.f32 %v5292_v49, %v1900_v4  ;;  %v3244_v50 = vpop.eup %3243  ;;  %v1893_v45 = vadd.f32 %v1889_v5, %v1879_v3  ;;  %v5301_v4 = vld [vmem:[#allocation32_spill] sm:$0xff]  ;;  %v5302_v55 = vld [vmem:[#allocation33_spill] sm:$0xff]  ;;  %v5304_v54 = vld [vmem:[#allocation35_spill] sm:$0xff] }
 0x147   : > { %v1894_v48 = vadd.f32 %v1890_v7, %v1880_v35  ;;  %v1914_v14 = vstv %s4793_s29  ;;  %v1928_v26 = vstv %s4795_s10  ;;  %v3246_v15 = vpop.eup %3245  ;;  %v1816_v6 = vmul.f32 0.5, %v3244_v50  ;;  %v5303_v35 = vld [vmem:[#allocation34_spill] sm:$0xff]  ;;  %v5305_v7 = vld [vmem:[#allocation36_spill] sm:$0xff]  ;;  %v5308_v49 = vld [vmem:[#allocation39_spill] sm:$0xff]  ;;  %s4934_s29 = sld [smem:[#allocation10 + $0x188]] }
 0x148   : > { %v1905_v57 = vadd.f32 %v1901_v62, %v1891_v47  ;;  %v1906_v11 = vadd.f32 %v1902_v56, %v1892_v44  ;;  %v1915_v33 = vmul.f32 %v5293_v30, %v1914_v14  ;;  %v3248_v18 = vpop.eup %3247  ;;  %v1817_v21 = vmul.f32 0.5, %v3246_v15  ;;  %v5306_v47 = vld [vmem:[#allocation37_spill] sm:$0xff]  ;;  %s4946_s10 = sld [smem:[#allocation10 + $0x189]] }
 0x149   : > { %v1907_v37 = vadd.f32 %v1903_v46, %v1893_v45  ;;  %v1908_v13 = vadd.f32 %v1904_v63, %v1894_v48  ;;  %v1916_v20 = vmul.f32 %v5294_v31, %v1914_v14  ;;  %v3250_v8 = vpop.eup %3249  ;;  %v1818_v41 = vmul.f32 0.5, %v3248_v18 }
 0x14a   : > { %v1820_v51 = vadd.f32 0.5, %v1816_v6  ;;  %v1917_v36 = vmul.f32 %v5295_v58, %v1914_v14  ;;  %v1918_v61 = vmul.f32 %v5296_v22, %v1914_v14  ;;  %v1819_v40 = vmul.f32 0.5, %v3250_v8  ;;  %v5309_v14 = vld [vmem:[#allocation40_spill] sm:$0xff]  ;;  %v5310_v6 = vld [vmem:[#allocation41_spill] sm:$0xff] }
 0x14b   : > { %v1821_v59 = vadd.f32 0.5, %v1817_v21  ;;  %v1919_v16 = vadd.f32 %v1915_v33, %v1905_v57  ;;  %v1920_v39 = vadd.f32 %v1916_v20, %v1906_v11  ;;  %v1822_v25 = vadd.f32 0.5, %v1818_v41  ;;  %v5311_v11 = vld [vmem:[#allocation42_spill] sm:$0xff]  ;;  %v5312_v33 = vld [vmem:[#allocation43_spill] sm:$0xff]  ;;  %v5313_v8 = vld [vmem:[#allocation44_spill] sm:$0xff] }
 0x14c   : > { %2955 = vst [vmem:[%s4140_s15 + $0x40] sm:$0xff] %v1820_v51  ;;  %v1921_v23 = vadd.f32 %v1917_v36, %v1907_v37  ;;  %v1922_v24 = vadd.f32 %v1918_v61, %v1908_v13  ;;  %v1929_v12 = vmul.f32 %v5297_v42, %v1928_v26  ;;  %v1823_v17 = vadd.f32 0.5, %v1819_v40  ;;  %v5314_v51 = vld [vmem:[#allocation45_spill] sm:$0xff]  ;;  %v5315_v36 = vld [vmem:[#allocation46_spill] sm:$0xff] }
 0x14d   : > { %2956 = vst [vmem:[%s4140_s15 + $0x48] sm:$0xff] %v1821_v59  ;;  %v1930_v43 = vmul.f32 %v5298_v9, %v1928_v26  ;;  %v1931_v52 = vmul.f32 %v5299_v28, %v1928_v26  ;;  %v1932_v32 = vmul.f32 %v5300_v10, %v1928_v26  ;;  %v1942_v38 = vstv %s4805_s9  ;;  %s4949_s9 = sld [smem:[#allocation10 + $0x18a]] }
 0x14e   : > { %2957 = vst [vmem:[%s4140_s15 + $0x50] sm:$0xff] %v1822_v25  ;;  %v1933_v29 = vadd.f32 %v1929_v12, %v1919_v16  ;;  %v1956_v0 = vstv %s4811_s7  ;;  %v1970_v1 = vstv %s4815_s27  ;;  %v1943_v34 = vmul.f32 %v5301_v4, %v1942_v38  ;;  %v5316_v16 = vld [vmem:[#allocation47_spill] sm:$0xff]  ;;  %s4958_s7 = sld [smem:[#allocation10 + $0x18b]] }
 0x14f   : > { %2958 = vst [vmem:[%s4140_s15 + $0x58] sm:$0xff] %v1823_v17  ;;  %v1934_v2 = vadd.f32 %v1930_v43, %v1920_v39  ;;  %v1935_v60 = vadd.f32 %v1931_v52, %v1921_v23  ;;  %v1936_v27 = vadd.f32 %v1932_v32, %v1922_v24  ;;  %v1944_v3 = vmul.f32 %v5302_v55, %v1942_v38  ;;  %v5317_v43 = vld [vmem:[#allocation48_spill] sm:$0xff]  ;;  %v5318_v52 = vld [vmem:[#allocation49_spill] sm:$0xff]  ;;  %v5319_v32 = vld [vmem:[#allocation50_spill] sm:$0xff]  ;;  %s4962_s27 = sld [smem:[#allocation10 + $0x18c]] }
 0x150   : > { %v1945_v19 = vmul.f32 %v5303_v35, %v1942_v38  ;;  %v1946_v5 = vmul.f32 %v5304_v54, %v1942_v38  ;;  %v1957_v62 = vmul.f32 %v5305_v7, %v1956_v0  ;;  %v1947_v56 = vadd.f32 %v1943_v34, %v1933_v29  ;;  %v5320_v38 = vld [vmem:[#allocation51_spill] sm:$0xff]  ;;  %v5323_v34 = vld [vmem:[#allocation54_spill] sm:$0xff]  ;;  %v5325_v7 = vld [vmem:[#allocation56_spill] sm:$0xff] }
 0x151   : > { %v1958_v44 = vmul.f32 %v5306_v47, %v1956_v0  ;;  %v1959_v46 = vmul.f32 %v5307_v53, %v1956_v0  ;;  %v1960_v63 = vmul.f32 %v5308_v49, %v1956_v0  ;;  %v1948_v50 = vadd.f32 %v1944_v3, %v1934_v2  ;;  %v5324_v3 = vld [vmem:[#allocation55_spill] sm:$0xff]  ;;  %v5326_v47 = vld [vmem:[#allocation57_spill] sm:$0xff]  ;;  %v5327_v53 = vld [vmem:[#allocation58_spill] sm:$0xff] }
 0x152   : > { %v1949_v45 = vadd.f32 %v1945_v19, %v1935_v60  ;;  %v1950_v48 = vadd.f32 %v1946_v5, %v1936_v27  ;;  %v1971_v26 = vmul.f32 %v5309_v14, %v1970_v1  ;;  %v1961_v15 = vadd.f32 %v1957_v62, %v1947_v56  ;;  %v5322_v27 = vld [vmem:[#allocation53_spill] sm:$0xff]  ;;  %v5328_v49 = vld [vmem:[#allocation59_spill] sm:$0xff] }
 0x153   : > { %v1972_v57 = vmul.f32 %v5310_v6, %v1970_v1  ;;  %v1973_v30 = vmul.f32 %v5311_v11, %v1970_v1  ;;  %v1974_v18 = vmul.f32 %v5312_v33, %v1970_v1  ;;  %v1962_v21 = vadd.f32 %v1958_v44, %v1948_v50  ;;  %v5321_v1 = vld [vmem:[#allocation52_spill] sm:$0xff]  ;;  %v2052_v6 = vld [vmem:[%s3636_s3 + $0x2] sm:$0x1]  ;;  %v3037_v11 = vld [vmem:[%s3636_s3 + $0x4] sm:$0x1] }
 0x154   : > { %v1963_v37 = vadd.f32 %v1959_v46, %v1949_v45  ;;  %v1964_v13 = vadd.f32 %v1960_v63, %v1950_v48  ;;  %v1984_v31 = vstv %s4825_s8  ;;  %v1975_v20 = vadd.f32 %v1971_v26, %v1961_v15  ;;  %v2050_v26 = vld [vmem:[%s3636_s3] sm:$0x1]  ;;  %v2051_v15 = vld [vmem:[%s3636_s3 + $0x1] sm:$0x1]  ;;  %v5329_v33 = vld [vmem:[#allocation60_spill] sm:$0xff]  ;;  %s4974_s8 = sld [smem:[#allocation10 + $0x18d]] }
 0x155   : > { %v1985_v41 = vmul.f32 %v5313_v8, %v1984_v31  ;;  %v1986_v58 = vmul.f32 %v5314_v51, %v1984_v31  ;;  %v1987_v22 = vmul.f32 %v5315_v36, %v1984_v31  ;;  %v1976_v61 = vadd.f32 %v1972_v57, %v1962_v21  ;;  %v2053_v57 = vld [vmem:[%s3636_s3 + $0x3] sm:$0x1]  ;;  %v5330_v21 = vld [vmem:[#allocation61_spill] sm:$0xff]  ;;  %v3039_v8 = vld [vmem:[%s3636_s3 + $0x6] sm:$0x1] }
 0x156   : > { %v1977_v40 = vadd.f32 %v1973_v30, %v1963_v37  ;;  %v1978_v59 = vadd.f32 %v1974_v18, %v1964_v13  ;;  %v1988_v39 = vmul.f32 %v5316_v16, %v1984_v31  ;;  %v1998_v23 = vstv %s4831_s25  ;;  %v5331_v13 = vld [vmem:[#allocation62_spill] sm:$0xff]  ;;  %v5332_v16 = vld [vmem:[#allocation63_spill] sm:$0xff]  ;;  %s4977_s25 = sld [smem:[#allocation10 + $0x18e]] }
 0x157   : > { %v1989_v25 = vadd.f32 %v1985_v41, %v1975_v20  ;;  %v2012_v24 = vstv %s4837_s12  ;;  %v2026_v42 = vstv %s4841_s11  ;;  %v1990_v12 = vadd.f32 %v1986_v58, %v1976_v61  ;;  %v3038_v20 = vld [vmem:[%s3636_s3 + $0x5] sm:$0x1]  ;;  %v3040_v41 = vld [vmem:[%s3636_s3 + $0x7] sm:$0x1]  ;;  %s4988_s12 = sld [smem:[#allocation10 + $0x18f]] }
 0x158   : > { %v1991_v17 = vadd.f32 %v1987_v22, %v1977_v40  ;;  %v1992_v9 = vadd.f32 %v1988_v39, %v1978_v59  ;;  %v1999_v28 = vmul.f32 %v5317_v43, %v1998_v23  ;;  %v2000_v10 = vmul.f32 %v5318_v52, %v1998_v23  ;;  %v3042_v22 = vld [vmem:[%s3636_s3 + $0x8] sm:$0x1]  ;;  %s5004_s11 = sld [smem:[#allocation12 + $0x3]] }
 0x159   : > { %v2001_v29 = vmul.f32 %v5319_v32, %v1998_v23  ;;  %v2002_v0 = vmul.f32 %v5320_v38, %v1998_v23  ;;  %v2013_v2 = vmul.f32 %v5321_v1, %v2012_v24  ;;  %v2014_v4 = vmul.f32 %v5322_v27, %v2012_v24  ;;  %v3043_v23 = vld [vmem:[%s3636_s3 + $0x9] sm:$0x1]  ;;  %v3048_v38 = vld [vmem:[%s3636_s3 + $0xd] sm:$0x1] }
 0x15a   : > { %v2003_v60 = vadd.f32 %v1999_v28, %v1989_v25  ;;  %v2015_v55 = vmul.f32 %v5323_v34, %v2012_v24  ;;  %v2016_v35 = vmul.f32 %v5324_v3, %v2012_v24  ;;  %v2004_v19 = vadd.f32 %v2000_v10, %v1990_v12  ;;  %v3044_v24 = vld [vmem:[%s3636_s3 + $0xa] sm:$0x1] }
 0x15b   : > { %v2005_v54 = vadd.f32 %v2001_v29, %v1991_v17  ;;  %v2006_v5 = vadd.f32 %v2002_v0, %v1992_v9  ;;  %v2027_v62 = vmul.f32 %v5325_v7, %v2026_v42  ;;  %v2028_v44 = vmul.f32 %v5326_v47, %v2026_v42  ;;  %v3047_v29 = vld [vmem:[%s3636_s3 + $0xc] sm:$0x1]  ;;  %v3049_v0 = vld [vmem:[%s3636_s3 + $0xe] sm:$0x1]  ;;  %v3054_v47 = vld [vmem:[%s3636_s3 + $0x12] sm:$0x1] }
 0x15c   : > { %v2017_v56 = vadd.f32 %v2013_v2, %v2003_v60  ;;  %v2029_v46 = vmul.f32 %v5327_v53, %v2026_v42  ;;  %v2030_v63 = vmul.f32 %v5328_v49, %v2026_v42  ;;  %v2018_v50 = vadd.f32 %v2014_v4, %v2004_v19  ;;  %v3045_v42 = vld [vmem:[%s3636_s3 + $0xb] sm:$0x1]  ;;  %v3050_v4 = vld [vmem:[%s3636_s3 + $0xf] sm:$0x1]  ;;  %v3052_v19 = vld [vmem:[%s3636_s3 + $0x10] sm:$0x1] }
 0x15d   : > { %v2019_v45 = vadd.f32 %v2015_v55, %v2005_v54  ;;  %v2020_v48 = vadd.f32 %v2016_v35, %v2006_v5  ;;  %v2040_v14 = vstv %s4858_s14  ;;  %v2054_v58 = vstv %s4861_s17 }
 0x15e   : > { %v4894_v30 = vadd.f32 %v2027_v62, %v2017_v56  ;;  %v4897_v18 = vmul.f32 %v5329_v33, %v2040_v14  ;;  %v4900_v37 = vmul.f32 %v5330_v21, %v2040_v14  ;;  %v4903_v31 = vmul.f32 %v5331_v13, %v2040_v14  ;;  %v3053_v56 = vld [vmem:[%s3636_s3 + $0x11] sm:$0x1] }
 0x15f   : > { %v4908_v51 = vadd.f32 %v2028_v44, %v2018_v50  ;;  %v2064_v36 = vstv %s4866_s26  ;;  %v2078_v61 = vstv %s4869_s28  ;;  %v4916_v40 = vadd.f32 %v2029_v46, %v2019_v45  ;;  %v3055_v44 = vld [vmem:[%s3636_s3 + $0x13] sm:$0x1]  ;;  %v3057_v50 = vld [vmem:[%s3636_s3 + $0x14] sm:$0x1]  ;;  %s2327_s28 = sshll.u32 %s4140_s15, 4  ;;  %s2328_s28 = int_to_ptr.vmem [resolvable:$true] %s2327_s28 }
 0x160   : > { %v4918_v59 = vadd.f32 %v2030_v63, %v2020_v48  ;;  %v4921_v39 = vmul.f32 %v5332_v16, %v2040_v14  ;;  %v2055_v25 = vmul.f32 %v2054_v58, %v2050_v26  ;;  %v2056_v12 = vmul.f32 %v2054_v58, %v2051_v15  ;;  %v3058_v45 = vld [vmem:[%s3636_s3 + $0x15] sm:$0x1]  ;;  %v3059_v48 = vld [vmem:[%s3636_s3 + $0x16] sm:$0x1]  ;;  %v3060_v15 = vld [vmem:[%s3636_s3 + $0x17] sm:$0x1] }
 0x161   : > { %v2057_v17 = vmul.f32 %v2054_v58, %v2052_v6  ;;  %v2058_v9 = vmul.f32 %v2054_v58, %v2053_v57  ;;  %v2065_v43 = vmul.f32 %v3037_v11, %v2064_v36  ;;  %v2066_v28 = vmul.f32 %v3038_v20, %v2064_v36  ;;  %v3062_v20 = vld [vmem:[%s3636_s3 + $0x18] sm:$0x1]  ;;  %v3065_v16 = vld [vmem:[%s3636_s3 + $0x1b] sm:$0x1] }
 0x162   : > { %v2067_v52 = vmul.f32 %v3039_v8, %v2064_v36  ;;  %v2068_v10 = vmul.f32 %v3040_v41, %v2064_v36  ;;  %v2079_v32 = vmul.f32 %v3042_v22, %v2078_v61  ;;  %v2080_v2 = vmul.f32 %v3043_v23, %v2078_v61  ;;  %v3063_v22 = vld [vmem:[%s3636_s3 + $0x19] sm:$0x1] }
 0x163   : > { %v2069_v1 = vadd.f32 %v2065_v43, %v2055_v25  ;;  %v2081_v60 = vmul.f32 %v3044_v24, %v2078_v61  ;;  %v2082_v27 = vmul.f32 %v3045_v42, %v2078_v61  ;;  %v2070_v34 = vadd.f32 %v2066_v28, %v2056_v12  ;;  %v3064_v61 = vld [vmem:[%s3636_s3 + $0x1a] sm:$0x1]  ;;  %v3067_v28 = vld [vmem:[%s3636_s3 + $0x1c] sm:$0x1] }
 0x164   : > { %v2071_v55 = vadd.f32 %v2067_v52, %v2057_v17  ;;  %v2072_v3 = vadd.f32 %v2068_v10, %v2058_v9  ;;  %v2092_v35 = vstv %s4879_s24  ;;  %v2106_v26 = vstv %s4884_s13  ;;  %v3068_v52 = vld [vmem:[%s3636_s3 + $0x1d] sm:$0x1]  ;;  %v3069_v10 = vld [vmem:[%s3636_s3 + $0x1e] sm:$0x1] }
 0x165   : > { %v2083_v54 = vadd.f32 %v2079_v32, %v2069_v1  ;;  %v2093_v5 = vmul.f32 %v3047_v29, %v2092_v35  ;;  %v2094_v7 = vmul.f32 %v3048_v38, %v2092_v35  ;;  %v2095_v62 = vmul.f32 %v3049_v0, %v2092_v35  ;;  %v3070_v1 = vld [vmem:[%s3636_s3 + $0x1f] sm:$0x1] }
 0x166   : > { %v2084_v53 = vadd.f32 %v2080_v2, %v2070_v34  ;;  %v2085_v46 = vadd.f32 %v2081_v60, %v2071_v55  ;;  %v2086_v49 = vadd.f32 %v2082_v27, %v2072_v3  ;;  %v2096_v63 = vmul.f32 %v3050_v4, %v2092_v35  ;;  %v3072_v34 = vld [vmem:[%s3636_s3 + $0x20] sm:$0x1] }
 0x167   : > { %v2097_v14 = vadd.f32 %v2093_v5, %v2083_v54  ;;  %v2120_v6 = vstv %s4889_s0  ;;  %v2134_v57 = vstv %s4914_s2  ;;  %v2107_v13 = vmul.f32 %v3052_v19, %v2106_v26  ;;  %v3073_v54 = vld [vmem:[%s3636_s3 + $0x21] sm:$0x1]  ;;  %v3074_v5 = vld [vmem:[%s3636_s3 + $0x22] sm:$0x1] }
 0x168   : > { %v2098_v11 = vadd.f32 %v2094_v7, %v2084_v53  ;;  %v2099_v33 = vadd.f32 %v2095_v62, %v2085_v46  ;;  %v2100_v21 = vadd.f32 %v2096_v63, %v2086_v49  ;;  %v2108_v8 = vmul.f32 %v3053_v56, %v2106_v26  ;;  %v3075_v7 = vld [vmem:[%s3636_s3 + $0x23] sm:$0x1]  ;;  %v3077_v53 = vld [vmem:[%s3636_s3 + $0x24] sm:$0x1]  ;;  %v3078_v46 = vld [vmem:[%s3636_s3 + $0x25] sm:$0x1] }
 0x169   : > { %v2109_v41 = vmul.f32 %v3054_v47, %v2106_v26  ;;  %v2110_v58 = vmul.f32 %v3055_v44, %v2106_v26  ;;  %v2121_v36 = vmul.f32 %v3057_v50, %v2120_v6  ;;  %v2111_v25 = vadd.f32 %v2107_v13, %v2097_v14  ;;  %v3079_v49 = vld [vmem:[%s3636_s3 + $0x26] sm:$0x1] }
 0x16a   : > { %v2122_v23 = vmul.f32 %v3058_v45, %v2120_v6  ;;  %v2123_v24 = vmul.f32 %v3059_v48, %v2120_v6  ;;  %v2124_v42 = vmul.f32 %v3060_v15, %v2120_v6  ;;  %v2112_v12 = vadd.f32 %v2108_v8, %v2098_v11  ;;  %v3080_v45 = vld [vmem:[%s3636_s3 + $0x27] sm:$0x1]  ;;  %v3082_v11 = vld [vmem:[%s3636_s3 + $0x28] sm:$0x1]  ;;  %v3083_v8 = vld [vmem:[%s3636_s3 + $0x29] sm:$0x1] }
 0x16b   : > { %v2113_v17 = vadd.f32 %v2109_v41, %v2099_v33  ;;  %v2114_v9 = vadd.f32 %v2110_v58, %v2100_v21  ;;  %v2135_v43 = vmul.f32 %v3062_v20, %v2134_v57  ;;  %v2125_v32 = vadd.f32 %v2121_v36, %v2111_v25  ;;  %v3084_v41 = vld [vmem:[%s3636_s3 + $0x2a] sm:$0x1]  ;;  %v3085_v58 = vld [vmem:[%s3636_s3 + $0x2b] sm:$0x1] }
 0x16c   : > { %v2136_v29 = vmul.f32 %v3063_v22, %v2134_v57  ;;  %v2137_v38 = vmul.f32 %v3064_v61, %v2134_v57  ;;  %v2138_v0 = vmul.f32 %v3065_v16, %v2134_v57  ;;  %v2126_v2 = vadd.f32 %v2122_v23, %v2112_v12  ;;  %v3087_v12 = vld [vmem:[%s3636_s3 + $0x2c] sm:$0x1] }
 0x16d   : > { %v2127_v60 = vadd.f32 %v2123_v24, %v2113_v17  ;;  %v2128_v27 = vadd.f32 %v2124_v42, %v2114_v9  ;;  %v2148_v4 = vstv %s4930_s4  ;;  %v2139_v55 = vadd.f32 %v2135_v43, %v2125_v32  ;;  %v3088_v17 = vld [vmem:[%s3636_s3 + $0x2d] sm:$0x1]  ;;  %v3089_v9 = vld [vmem:[%s3636_s3 + $0x2e] sm:$0x1]  ;;  %v3090_v32 = vld [vmem:[%s3636_s3 + $0x2f] sm:$0x1] }
 0x16e   : > { %v2149_v3 = vmul.f32 %v3067_v28, %v2148_v4  ;;  %v2150_v35 = vmul.f32 %v3068_v52, %v2148_v4  ;;  %v2151_v19 = vmul.f32 %v3069_v10, %v2148_v4  ;;  %v2140_v62 = vadd.f32 %v2136_v29, %v2126_v2  ;;  %v3092_v2 = vld [vmem:[%s3636_s3 + $0x30] sm:$0x1] }
 0x16f   : > { %v2141_v56 = vadd.f32 %v2137_v38, %v2127_v60  ;;  %v2142_v47 = vadd.f32 %v2138_v0, %v2128_v27  ;;  %v2152_v44 = vmul.f32 %v3070_v1, %v2148_v4  ;;  %v2162_v50 = vstv %s4934_s29  ;;  %s3384_s29 = scalar_lea.hbm %s5068_s5, 256 }
 0x170   : > { %v2153_v63 = vadd.f32 %v2149_v3, %v2139_v55  ;;  %v2176_v48 = vstv %s4946_s10  ;;  %v2190_v14 = vstv %s4949_s9  ;;  %v2154_v26 = vadd.f32 %v2150_v35, %v2140_v62  ;;  %v3093_v55 = vld [vmem:[%s3636_s3 + $0x31] sm:$0x1]  ;;  %v3094_v3 = vld [vmem:[%s3636_s3 + $0x32] sm:$0x1] }
 0x171   : > { %v2155_v15 = vadd.f32 %v2151_v19, %v2141_v56  ;;  %v2156_v6 = vadd.f32 %v2152_v44, %v2142_v47  ;;  %v2163_v57 = vmul.f32 %v3072_v34, %v2162_v50  ;;  %v2164_v33 = vmul.f32 %v3073_v54, %v2162_v50  ;;  %v3095_v35 = vld [vmem:[%s3636_s3 + $0x33] sm:$0x1]  ;;  %v3097_v62 = vld [vmem:[%s3636_s3 + $0x34] sm:$0x1]  ;;  %v3098_v56 = vld [vmem:[%s3636_s3 + $0x35] sm:$0x1] }
 0x172   : > { %v2165_v21 = vmul.f32 %v3074_v5, %v2162_v50  ;;  %v2166_v13 = vmul.f32 %v3075_v7, %v2162_v50  ;;  %v2177_v20 = vmul.f32 %v3077_v53, %v2176_v48  ;;  %v2178_v22 = vmul.f32 %v3078_v46, %v2176_v48  ;;  %v3099_v47 = vld [vmem:[%s3636_s3 + $0x36] sm:$0x1]  ;;  %v3100_v46 = vld [vmem:[%s3636_s3 + $0x37] sm:$0x1] }
 0x173   : > { %v2167_v36 = vadd.f32 %v2163_v57, %v2153_v63  ;;  %v2179_v61 = vmul.f32 %v3079_v49, %v2176_v48  ;;  %v2180_v16 = vmul.f32 %v3080_v45, %v2176_v48  ;;  %v2168_v25 = vadd.f32 %v2164_v33, %v2154_v26  ;;  %v3102_v26 = vld [vmem:[%s3636_s3 + $0x38] sm:$0x1]  ;;  %v3103_v33 = vld [vmem:[%s3636_s3 + $0x39] sm:$0x1] }
 0x174   : > { %v2169_v23 = vadd.f32 %v2165_v21, %v2155_v15  ;;  %v2170_v24 = vadd.f32 %v2166_v13, %v2156_v6  ;;  %v2191_v42 = vmul.f32 %v3082_v11, %v2190_v14  ;;  %v2192_v28 = vmul.f32 %v3083_v8, %v2190_v14  ;;  %v3104_v21 = vld [vmem:[%s3636_s3 + $0x3a] sm:$0x1]  ;;  %v3105_v13 = vld [vmem:[%s3636_s3 + $0x3b] sm:$0x1] }
 0x175   : > { %v2181_v43 = vadd.f32 %v2177_v20, %v2167_v36  ;;  %v2193_v52 = vmul.f32 %v3084_v41, %v2190_v14  ;;  %v2194_v10 = vmul.f32 %v3085_v58, %v2190_v14  ;;  %v2182_v29 = vadd.f32 %v2178_v22, %v2168_v25  ;;  %v3107_v25 = vld [vmem:[%s3636_s3 + $0x3c] sm:$0x1] }
 0x176   : > { %v2183_v38 = vadd.f32 %v2179_v61, %v2169_v23  ;;  %v2184_v0 = vadd.f32 %v2180_v16, %v2170_v24  ;;  %v2204_v1 = vstv %s4958_s7  ;;  %v2218_v53 = vstv %s4962_s27  ;;  %v3108_v23 = vld [vmem:[%s3636_s3 + $0x3d] sm:$0x1]  ;;  %v3109_v24 = vld [vmem:[%s3636_s3 + $0x3e] sm:$0x1] }
 0x177   : > { %v2195_v60 = vadd.f32 %v2191_v42, %v2181_v43  ;;  %v2205_v27 = vmul.f32 %v3087_v12, %v2204_v1  ;;  %v2206_v4 = vmul.f32 %v3088_v17, %v2204_v1  ;;  %v2207_v34 = vmul.f32 %v3089_v9, %v2204_v1  ;;  %v3110_v43 = vld [vmem:[%s3636_s3 + $0x3f] sm:$0x1]  ;;  %s3122_s3 = sshll.u32 %s3454_s21, 7  ;;  %s2313_s21 = scalar_lea.sflag [#allocation4], %s3624_s16 }
 0x178   : > { %v2196_v19 = vadd.f32 %v2192_v28, %v2182_v29  ;;  %v2197_v54 = vadd.f32 %v2193_v52, %v2183_v38  ;;  %v2198_v5 = vadd.f32 %v2194_v10, %v2184_v0  ;;  %v2208_v7 = vmul.f32 %v3090_v32, %v2204_v1  ;;  %s2326_s26 = scalar_lea.hbm %s5068_s5, %s3122_s3 }
 0x179   : > { %v2209_v44 = vadd.f32 %v2205_v27, %v2195_v60  ;;  %v2232_v49 = vstv %s4974_s8  ;;  %v2246_v63 = vstv %s4977_s25  ;;  %v2219_v14 = vmul.f32 %v3092_v2, %v2218_v53  ;;  %s2329_s24 = sshll.u32 %s2326_s26, 4  ;;  %s2330_s24 = int_to_ptr.hbm [resolvable:$true] %s2329_s24 }
 0x17a   : > { %v2210_v50 = vadd.f32 %v2206_v4, %v2196_v19  ;;  %v2211_v45 = vadd.f32 %v2207_v34, %v2197_v54  ;;  %v2212_v48 = vadd.f32 %v2208_v7, %v2198_v5  ;;  %v2220_v15 = vmul.f32 %v3093_v55, %v2218_v53  ;;  %s3378_s13 = sshra.s32 %s2330_s24, 4  ;;  %s3379_s13 = int_to_ptr.hbm [resolvable:$true] %s3378_s13 }
 0x17b   : > { %v2221_v6 = vmul.f32 %v3094_v3, %v2218_v53  ;;  %v2222_v57 = vmul.f32 %v3095_v35, %v2218_v53  ;;  %v2233_v11 = vmul.f32 %v3097_v62, %v2232_v49  ;;  %v2223_v20 = vadd.f32 %v2219_v14, %v2209_v44  ;;  %s3380_s0 = scalar_lea.hbm %s3379_s13, 128  ;;  %p3385_p11 = scmp.lt.s32.totalorder %s3379_s13, %s5068_s5 }
 0x17c   : > { %v2234_v8 = vmul.f32 %v3098_v56, %v2232_v49  ;;  %v2235_v41 = vmul.f32 %v3099_v47, %v2232_v49  ;;  %v2236_v58 = vmul.f32 %v3100_v46, %v2232_v49  ;;  %v2224_v36 = vadd.f32 %v2220_v15, %v2210_v50  ;;  %p3381_p3 = scmp.ne.s32.totalorder %s3379_s13, %s3380_s0  ;;  %p3386_p12 = scmp.lt.s32.totalorder %s3384_s29, %s3380_s0 }
 0x17d   : > { %v2225_v22 = vadd.f32 %v2221_v6, %v2211_v45  ;;  %v2226_v61 = vadd.f32 %v2222_v57, %v2212_v48  ;;  %v2247_v16 = vmul.f32 %v3102_v26, %v2246_v63  ;;  %v2237_v42 = vadd.f32 %v2233_v11, %v2223_v20 }
 0x17e   : > { %v2248_v12 = vmul.f32 %v3103_v33, %v2246_v63  ;;  %v2249_v17 = vmul.f32 %v3104_v21, %v2246_v63  ;;  %v2250_v9 = vmul.f32 %v3105_v13, %v2246_v63  ;;  %v2238_v28 = vadd.f32 %v2234_v8, %v2224_v36  ;;  %p3382_p5 = pnand %p3381_p3, %p3555_p8  ;;  %p3387_p0 = por %p3386_p12, %p3385_p11 }
 0x17f   : > { %v2239_v52 = vadd.f32 %v2235_v41, %v2225_v22  ;;  %v2240_v10 = vadd.f32 %v2236_v58, %v2226_v61  ;;  %v2260_v32 = vstv %s4988_s12  ;;  %v2251_v29 = vadd.f32 %v2247_v16, %v2237_v42 }
 0x180   : > { %v2261_v38 = vmul.f32 %v3107_v25, %v2260_v32  ;;  %v2262_v0 = vmul.f32 %v3108_v23, %v2260_v32  ;;  %v2263_v1 = vmul.f32 %v3109_v24, %v2260_v32  ;;  %v2252_v2 = vadd.f32 %v2248_v12, %v2238_v28  ;;  %p3383_p7 = pneg %p3382_p5 }
 0x181   : > { %v2253_v60 = vadd.f32 %v2249_v17, %v2239_v52  ;;  %v2254_v27 = vadd.f32 %v2250_v9, %v2240_v10  ;;  %v2264_v4 = vmul.f32 %v3110_v43, %v2260_v32  ;;  %v2045_v34 = vadd.f32 %v4897_v18, %v4894_v30 }
 0x182   : > { %v2046_v55 = vadd.f32 %v4900_v37, %v4908_v51  ;;  %v2047_v3 = vadd.f32 %v4903_v31, %v4916_v40  ;;  %v2265_v35 = vadd.f32 %v2261_v38, %v2251_v29  ;;  %v2048_v19 = vadd.f32 %v4921_v39, %v4918_v59  ;;  %p3388_p1 = pnand %p3387_p0, %p3383_p7 }
 0x183   : > { %v2266_v54 = vadd.f32 %v2262_v0, %v2252_v2  ;;  %v2267_v5 = vadd.f32 %v2263_v1, %v2253_v60  ;;  %v2268_v7 = vadd.f32 %v2264_v4, %v2254_v27  ;;  %v2286_v53 = vstv %s5004_s11 }
 0x184   : > { %v2273_v62 = vperm.slane %v2265_v35, 0 }
 0x185   : > { %v2274_v56 = vperm.slane %v2266_v54, 0  ;;  %v2275_v47 = vperm.slane %v2267_v5, 0  ;;  %v2276_v44 = vperm.slane %v2268_v7, 0 }
 0x186   : > { %v2281_v30 = vadd.f32 %v2273_v62, %v2045_v34 }
 0x187   : > { %v2282_v18 = vadd.f32 %v2274_v56, %v2046_v55  ;;  %v2283_v46 = vadd.f32 %v2275_v47, %v2047_v3  ;;  %v2284_v37 = vadd.f32 %v2276_v44, %v2048_v19 }
 0x188   : > { %v2287_v51 = vadd.f32 %v2286_v53, %v2281_v30 }
 0x189   : > { %v2288_v49 = vadd.f32 %v2286_v53, %v2282_v18  ;;  %v2289_v31 = vadd.f32 %v2286_v53, %v2283_v46  ;;  %v2290_v40 = vadd.f32 %v2286_v53, %v2284_v37 }
 0x18a   : > { %v2291_v63 = vmul.f32 0.5, %v2287_v51 }
 0x18b   : > { %v2292_v59 = vmul.f32 0.5, %v2288_v49  ;;  %v2293_v39 = vmul.f32 0.5, %v2289_v31  ;;  %v2294_v50 = vmul.f32 0.5, %v2290_v40 }
 0x18c   : > { %3251 = vtanh.f32 %v2291_v63 }
 0x18d   : > { %3253 = vtanh.f32 %v2292_v59 }
 0x18e   : > { %3255 = vtanh.f32 %v2293_v39 }
 0x18f   : > { %3257 = vtanh.f32 %v2294_v50 }
 0x192   : > { %v3252_v45 = vpop.eup %3251 }
 0x193   : > { %v3254_v48 = vpop.eup %3253  ;;  %v2299_v14 = vmul.f32 0.5, %v3252_v45 }
 0x194   : > { %v3256_v26 = vpop.eup %3255  ;;  %v2300_v15 = vmul.f32 0.5, %v3254_v48 }
 0x195   : > { %v3258_v6 = vpop.eup %3257  ;;  %v2301_v57 = vmul.f32 0.5, %v3256_v26  ;;  %v2303_v11 = vadd.f32 0.5, %v2299_v14 }
 0x196   : > { %v2302_v33 = vmul.f32 0.5, %v3258_v6  ;;  %v2304_v21 = vadd.f32 0.5, %v2300_v15 }
 0x197   : > { %v2305_v13 = vadd.f32 0.5, %v2301_v57  ;;  %3112 = vst [vmem:[%s4140_s15 + $0x60] sm:$0xff] %v2303_v11 }
 0x198   : > { %v2306_v20 = vadd.f32 0.5, %v2302_v33  ;;  %3113 = vst [vmem:[%s4140_s15 + $0x68] sm:$0xff] %v2304_v21 }
 0x199   : > { %3114 = vst [vmem:[%s4140_s15 + $0x70] sm:$0xff] %v2305_v13 }
 0x19a   : > { %3115 = vst [vmem:[%s4140_s15 + $0x78] sm:$0xff] %v2306_v20 }
 0x19b   : > { %3391 = shalt.err (!%p3388_p1)
}
 0x19c   : > { %s3471_s16 = smov 128   ;;  %s3472_s15 = smov 8  }
 0x19d   : > { %3139 = dma.vmem_to_hbm [thread:$0]  (%p3555_p8), %s2328_s28, 2048, %s2330_s24, %s2313_s21, %s3471_s16, %s3471_s16, %s3472_s15  }
 0x19e PF: > { %s2344_s7 = sand.u32 1, %s3442_s18   ;;  %p3159_p2 = pnand %p2482_p13, %p3559_p9 }
 0x19f   : > { %s2345_s27 = scalar_lea.sflag [#allocation4], %s2344_s7 }
 0x1a0   : > { %p3160_p4 = pneg %p3159_p2 }
 0x1a2   : > { %3437 = dma.done.wait (%p3160_p4), %s2345_s27, 2048  }
 0x1a3   : > { %3439 = vsyncadd (%p3160_p4), %s2345_s27, 4294965248  ;;  %s27_s23 = sadd.s32 1, %s3462_s23   ;;  %s5333_s8 = sld [smem:[#allocation21_spill]] }
 0x1a4   : > { %p24_p6 = scmp.ge.s32.totalorder %s27_s23, 4   ;;  %s5334_s30 = sld [smem:[#allocation20_spill]] }
 0x1a5   : > { %s5335_s18 = smov %s3446_s19  ;;  %s5336_s19 = smov %s3450_s20 }
 0x1a6   : > { %s5338_s21 = smov %s3458_s22  ;;  %26 = sbr.rel (!%p24_p6) target bundleno = 16 (0x10), region = 145 }
 0x1a9   : > { %s5337_s20 = smov %s5333_s8 }
 0x1aa   : > { %s5339_s22 = smov %s5334_s30 }
 0x1ab   :  { %2351 = vsyncpa [#allocation3], 1 }
 0x1ac   :  { %2353 = vsyncpa [#allocation3 + $0x1], 1 }
 0x1ad   :  { %2354 = vsyncpa [#allocation8], 1 }
 0x1ae   :  { %2356 = vsyncpa [#allocation8 + $0x1], 1 }
 0x1af   :  { %2357 = vsyncpa [#allocation4], 1 }
 0x1b0   :  { %2359 = vsyncpa [#allocation4 + $0x1], 1 }
 0x1b1   :  { %2360 = vsyncpa [#allocation5], 1 }
 0x1b2   :  { %2362 = vsyncpa [#allocation5 + $0x1], 1 }
 0x1b3   :  { %2363 = vsyncpa [#allocation11], 1 }
 0x1b4   :  { %2364 = vsyncpa [#allocation6], 1 }
 0x1b5   :  { %2366 = vsyncpa [#allocation6 + $0x1], 1 }

</bundles_post_ra>
